<compile_context>
chip_gen: v7x
topology: tpu7x:2x2x1
jax: 0.10.0
libtpu: 0.0.40
codegen_flags: <defaults>
</compile_context>

<pallas_src>
import functools

import jax
import jax.numpy as jnp
from jax.experimental import pallas as pl
from jax.experimental.pallas import tpu as pltpu

LRELU_SLOPE = 0.2
BN_EPS = 1e-5
LANE = 128
SUBLANE = 8
MAX_TM = 512                               # row-tile upper bound
VMEM_WORKSET_BUDGET = 40 * 1024 * 1024     # 2x(in)+2x(out)+weights target
VMEM_LIMIT_BYTES = 48 * 1024 * 1024        # v7x-safe scoped-VMEM limit


def _round_up(x, m):
    return (x + m - 1) // m * m


def _choose_tm(m, k, cpad):
    """Largest row tile <= MAX_TM whose double-buffered footprint fits budget."""
    tm = _round_up(min(MAX_TM, _round_up(m, SUBLANE)), SUBLANE)

    def footprint(t):
        return (2 * t * k * 2            # bf16 patch tile, double buffered
                + 2 * t * cpad * 4       # output tile (f32 worst case), x2
                + 2 * k * cpad * 2)      # bf16 weights (conservatively x2)

    while tm > SUBLANE and footprint(tm) > VMEM_WORKSET_BUDGET:
        tm = _round_up(tm // 2, SUBLANE)
    return max(SUBLANE, tm)


# --------------------------------------------------------------------------
# Kernels
# --------------------------------------------------------------------------
def _conv_bias_act_kernel(p_ref, w_ref, b_ref, o_ref, *, use_lrelu):
    # Conv as im2col matmul on the MXU: bf16 operands, f32 accumulation.
    y = jnp.dot(p_ref[...], w_ref[...], preferred_element_type=jnp.float32)
    y = y + b_ref[...]                                   # (1, Cpad) broadcast
    if use_lrelu:
        y = jnp.where(y > 0, y, LRELU_SLOPE * y)
    o_ref[...] = y.astype(o_ref.dtype)


def _conv_stats_kernel(p_ref, w_ref, y_ref, sum_ref, ssq_ref):
    # Pass A of BN layers: matmul + per-channel sum / sum-of-squares.
    y = jnp.dot(p_ref[...], w_ref[...], preferred_element_type=jnp.float32)
    y_ref[...] = y

    @pl.when(pl.program_id(0) == 0)
    def _():
        sum_ref[...] = jnp.zeros_like(sum_ref)
        ssq_ref[...] = jnp.zeros_like(ssq_ref)

    sum_ref[...] += jnp.sum(y, axis=0, keepdims=True)
    ssq_ref[...] += jnp.sum(y * y, axis=0, keepdims=True)


def _bn_lrelu_kernel(y_ref, sum_ref, ssq_ref, g_ref, b_ref, o_ref, *, m_true):
    # Pass B: BatchNorm (batch statistics over TRUE M rows) + LeakyReLU(0.2).
    inv_m = jnp.float32(1.0 / m_true)
    mean = sum_ref[...] * inv_m
    var = ssq_ref[...] * inv_m - mean * mean             # f32 accumulators
    scale = g_ref[...] * jax.lax.rsqrt(var + BN_EPS)     # rsqrt -> EUP slot
    shift = b_ref[...] - mean * scale
    y = y_ref[...] * scale + shift
    y = jnp.where(y > 0, y, LRELU_SLOPE * y)
    o_ref[...] = y.astype(o_ref.dtype)


# --------------------------------------------------------------------------
# Wrapper glue (pure-JAX data movement)
# --------------------------------------------------------------------------
def _im2col(x_nhwc, k, stride, pad):
    """Patch extraction, emitted directly in bf16 for the MXU operand stream."""
    if pad:
        x_nhwc = jnp.pad(x_nhwc, ((0, 0), (pad, pad), (pad, pad), (0, 0)))
    n, hp, wp, c = x_nhwc.shape
    ho = (hp - k) // stride + 1
    wo = (wp - k) // stride + 1
    taps = []
    for kh in range(k):
        for kw in range(k):
            taps.append(x_nhwc[:, kh:kh + stride * ho:stride,
                               kw:kw + stride * wo:stride, :])
    patches = jnp.stack(taps, axis=3)                    # (N, Ho, Wo, KH*KW, C)
    patches = patches.reshape(n * ho * wo, k * k * c)    # (M, K)
    return patches.astype(jnp.bfloat16), (n, ho, wo)


def _prep_operands(x_nhwc, w_oihw, stride, pad):
    cout, cin, kh, kw = w_oihw.shape
    patches, (n, ho, wo) = _im2col(x_nhwc, kh, stride, pad)
    m, k = patches.shape
    cpad = _round_up(cout, LANE)            # lane-dense output stores
    tm = _choose_tm(m, k, cpad)
    m_pad = _round_up(m, tm)
    if m_pad > m:
        patches = jnp.pad(patches, ((0, m_pad - m), (0, 0)))
    # (Cout, Cin, KH, KW) -> (KH, KW, Cin, Cout) -> (K, Cout) -> pad to Cpad.
    w_mat = jnp.transpose(w_oihw, (2, 3, 1, 0)).reshape(kh * kw * cin, cout)
    w_mat = jnp.pad(w_mat, ((0, 0), (0, cpad - cout))).astype(jnp.bfloat16)
    meta = dict(n=n, ho=ho, wo=wo, m=m, k=k, cout=cout, cpad=cpad,
                tm=tm, m_pad=m_pad)
    return patches, w_mat, meta


def _pad_row(v, cout, cpad):
    return jnp.pad(v.astype(jnp.float32), (0, cpad - cout)).reshape(1, cpad)


# --------------------------------------------------------------------------
# Layer wrappers
# --------------------------------------------------------------------------
def conv_bias_act(x_nhwc, w_oihw, bias, *, stride, pad, use_lrelu, out_dtype):
    patches, w_mat, d = _prep_operands(x_nhwc, w_oihw, stride, pad)
    m, k = d["m"], d["k"]
    cout, cpad, tm, m_pad = d["cout"], d["cpad"], d["tm"], d["m_pad"]
    grid = (m_pad // tm,)
    b_row = _pad_row(bias, cout, cpad)
    out_bytes = jnp.dtype(out_dtype).itemsize

    y = pl.pallas_call(
        functools.partial(_conv_bias_act_kernel, use_lrelu=use_lrelu),
        out_shape=jax.ShapeDtypeStruct((m_pad, cpad), out_dtype),
        grid_spec=pltpu.PrefetchScalarGridSpec(
            num_scalar_prefetch=0,
            grid=grid,
            in_specs=[
                pl.BlockSpec((tm, k), lambda i: (i, 0)),      # patch row tile
                pl.BlockSpec((k, cpad), lambda i: (0, 0)),    # resident weights
                pl.BlockSpec((1, cpad), lambda i: (0, 0)),    # resident bias
            ],
            out_specs=pl.BlockSpec((tm, cpad), lambda i: (i, 0)),
        ),
        compiler_params=pltpu.CompilerParams(
            dimension_semantics=("parallel",),   # v7x: rows split over 2 TCs
            vmem_limit_bytes=VMEM_LIMIT_BYTES,
        ),
        cost_estimate=pl.CostEstimate(
            flops=2 * m_pad * k * cpad,
            transcendentals=0,
            bytes_accessed=(m_pad * k * 2 + k * cpad * 2
                            + m_pad * cpad * out_bytes),
        ),
    )(patches, w_mat, b_row)
    return y[:m, :cout].reshape(d["n"], d["ho"], d["wo"], cout)


def conv_bn_lrelu(x_nhwc, w_oihw, gamma, beta, *, stride, pad,
                  out_dtype=jnp.bfloat16):
    patches, w_mat, d = _prep_operands(x_nhwc, w_oihw, stride, pad)
    m, k = d["m"], d["k"]
    cout, cpad, tm, m_pad = d["cout"], d["cpad"], d["tm"], d["m_pad"]
    grid = (m_pad // tm,)
    out_bytes = jnp.dtype(out_dtype).itemsize

    # Pass A: matmul + per-channel stats (resident accumulators -> "arbitrary").
    y, ch_sum, ch_ssq = pl.pallas_call(
        _conv_stats_kernel,
        out_shape=(
            jax.ShapeDtypeStruct((m_pad, cpad), jnp.float32),
            jax.ShapeDtypeStruct((1, cpad), jnp.float32),
            jax.ShapeDtypeStruct((1, cpad), jnp.float32),
        ),
        grid_spec=pltpu.PrefetchScalarGridSpec(
            num_scalar_prefetch=0,
            grid=grid,
            in_specs=[
                pl.BlockSpec((tm, k), lambda i: (i, 0)),
                pl.BlockSpec((k, cpad), lambda i: (0, 0)),
            ],
            out_specs=(
                pl.BlockSpec((tm, cpad), lambda i: (i, 0)),
                pl.BlockSpec((1, cpad), lambda i: (0, 0)),
                pl.BlockSpec((1, cpad), lambda i: (0, 0)),
            ),
        ),
        compiler_params=pltpu.CompilerParams(
            dimension_semantics=("arbitrary",),
            vmem_limit_bytes=VMEM_LIMIT_BYTES,
        ),
        cost_estimate=pl.CostEstimate(
            flops=2 * m_pad * k * cpad + 4 * m_pad * cpad,
            transcendentals=0,
            bytes_accessed=m_pad * k * 2 + k * cpad * 2 + m_pad * cpad * 4,
        ),
    )(patches, w_mat)

    # Pass B: BN normalize + LeakyReLU, fully tiled and parallel.
    g_row = _pad_row(gamma, cout, cpad)   # padded channels get gamma=0 -> y=0
    b_row = _pad_row(beta, cout, cpad)
    out = pl.pallas_call(
        functools.partial(_bn_lrelu_kernel, m_true=float(m)),
        out_shape=jax.ShapeDtypeStruct((m_pad, cpad), out_dtype),
        grid_spec=pltpu.PrefetchScalarGridSpec(
            num_scalar_prefetch=0,
            grid=grid,
            in_specs=[
                pl.BlockSpec((tm, cpad), lambda i: (i, 0)),
                pl.BlockSpec((1, cpad), lambda i: (0, 0)),
                pl.BlockSpec((1, cpad), lambda i: (0, 0)),
                pl.BlockSpec((1, cpad), lambda i: (0, 0)),
                pl.BlockSpec((1, cpad), lambda i: (0, 0)),
            ],
            out_specs=pl.BlockSpec((tm, cpad), lambda i: (i, 0)),
        ),
        compiler_params=pltpu.CompilerParams(
            dimension_semantics=("parallel",),
            vmem_limit_bytes=VMEM_LIMIT_BYTES,
        ),
        cost_estimate=pl.CostEstimate(
            flops=6 * m_pad * cpad,
            transcendentals=grid[0] * cpad,
            bytes_accessed=m_pad * cpad * 4 + m_pad * cpad * out_bytes,
        ),
    )(y, ch_sum, ch_ssq, g_row, b_row)
    return out[:m, :cout].reshape(d["n"], d["ho"], d["wo"], cout)


# --------------------------------------------------------------------------
# Model
# --------------------------------------------------------------------------
def init_discriminator_params(key, channels_img, features_d):
    f = features_d

    def conv_w(k, cout, cin, ksz):
        return 0.02 * jax.random.normal(k, (cout, cin, ksz, ksz), jnp.float32)

    ks = jax.random.split(key, 7)
    return {
        # Conv2d(channels_img, f, 4, 2, 1)  (bias=True by default)
        "c1_w": conv_w(ks[0], f, channels_img, 4),
        "c1_b": 0.01 * jax.random.normal(ks[1], (f,), jnp.float32),
        # _block convs (bias=False) + BatchNorm affine params
        "c2_w": conv_w(ks[2], 2 * f, f, 4),
        "bn2_g": jnp.ones((2 * f,), jnp.float32),
        "bn2_b": jnp.zeros((2 * f,), jnp.float32),
        "c3_w": conv_w(ks[3], 4 * f, 2 * f, 4),
        "bn3_g": jnp.ones((4 * f,), jnp.float32),
        "bn3_b": jnp.zeros((4 * f,), jnp.float32),
        "c4_w": conv_w(ks[4], 8 * f, 4 * f, 4),
        "bn4_g": jnp.ones((8 * f,), jnp.float32),
        "bn4_b": jnp.zeros((8 * f,), jnp.float32),
        # Conv2d(8f, 1, 4, 2, 0)  (bias=True by default)
        "c5_w": conv_w(ks[5], 1, 8 * f, 4),
        "c5_b": 0.01 * jax.random.normal(ks[6], (1,), jnp.float32),
    }


def discriminator_forward(params, x_nchw, features_d):
    del features_d  # shapes are carried by the params
    x = jnp.transpose(x_nchw, (0, 2, 3, 1)).astype(jnp.float32)  # NCHW -> NHWC

    # Conv(cimg, f, 4, 2, 1) + LeakyReLU(0.2)
    x = conv_bias_act(x, params["c1_w"], params["c1_b"], stride=2, pad=1,
                      use_lrelu=True, out_dtype=jnp.bfloat16)
    # _block(f, 2f): Conv(bias=False) + BatchNorm(batch stats) + LeakyReLU
    x = conv_bn_lrelu(x, params["c2_w"], params["bn2_g"], params["bn2_b"],
                      stride=2, pad=1)
    # _block(2f, 4f)
    x = conv_bn_lrelu(x, params["c3_w"], params["bn3_g"], params["bn3_b"],
                      stride=2, pad=1)
    # _block(4f, 8f)
    x = conv_bn_lrelu(x, params["c4_w"], params["bn4_g"], params["bn4_b"],
                      stride=2, pad=1)
    # Conv(8f, 1, 4, 2, 0) — no BN, no activation
    x = conv_bias_act(x, params["c5_w"], params["c5_b"], stride=2, pad=0,
                      use_lrelu=False, out_dtype=jnp.float32)

    return jnp.transpose(x, (0, 3, 1, 2))  # NHWC -> NCHW  => (N, 1, 1, 1)


if __name__ == "__main__":
    CHANNELS_IMG = 3
    FEATURES_D = 8
    BATCH = 2
    IMG = 64  # architecture's native size: 64 -> 32 -> 16 -> 8 -> 4 -> 1

    key = jax.random.PRNGKey(0)
    k_x, k_p = jax.random.split(key)
    x = jax.random.normal(k_x, (BATCH, CHANNELS_IMG, IMG, IMG), jnp.float32)
    params = init_discriminator_params(k_p, CHANNELS_IMG, FEATURES_D)

    fwd = jax.jit(functools.partial(discriminator_forward,
                                    features_d=FEATURES_D))
    out = jax.block_until_ready(fwd(params, x))

    assert out.shape == (BATCH, 1, 1, 1), out.shape
    assert out.dtype == jnp.float32, out.dtype
    print("KERNEL_OK")
</pallas_src>

<mosaic_0001>
module attributes {stable_mosaic.version = 11 : i64} {
  func.func @_conv_bias_act_kernel(%arg0: i32, %arg1: memref<512x48xbf16, #tpu.memory_space<vmem>>, %arg2: memref<48x128xbf16, #tpu.memory_space<vmem>>, %arg3: memref<1x128xf32, #tpu.memory_space<vmem>>, %arg4: memref<512x128xbf16, #tpu.memory_space<vmem>>) attributes {dimension_semantics = [#tpu.dimension_semantics<parallel>], iteration_bounds = array<i64: 4>, scalar_prefetch = 0 : i64, scratch_operands = 0 : i64, tpu.core_type = #tpu.core_type<tc>, window_params = [{transform_indices = @transform_0, window_bounds = array<i64: 512, 48>}, {pipeline_mode = #tpu.pipeline_mode<synchronous>, transform_indices = @transform_1, window_bounds = array<i64: 48, 128>}, {pipeline_mode = #tpu.pipeline_mode<synchronous>, transform_indices = @transform_2, window_bounds = array<i64: 1, 128>}, {transform_indices = @transform_3, window_bounds = array<i64: 512, 128>}]} {
    %c0 = arith.constant 0 : index
    %c0_0 = arith.constant 0 : index
    %0 = vector.load %arg1[%c0, %c0_0] : memref<512x48xbf16, #tpu.memory_space<vmem>>, vector<512x48xbf16>
    %c0_1 = arith.constant 0 : index
    %c0_2 = arith.constant 0 : index
    %1 = vector.load %arg2[%c0_1, %c0_2] : memref<48x128xbf16, #tpu.memory_space<vmem>>, vector<48x128xbf16>
    %cst = arith.constant dense<0.000000e+00> : vector<512x128xf32>
    %2 = tpu.matmul %0, %1, %cst {dimension_numbers = #tpu.dot_dimension_numbers<[1], [0], [0], [1], [0, 0, 1, 1], [], []>} : vector<512x48xbf16>, vector<48x128xbf16>, vector<512x128xf32> -> vector<512x128xf32>
    %c0_3 = arith.constant 0 : index
    %c0_4 = arith.constant 0 : index
    %3 = vector.load %arg3[%c0_3, %c0_4] : memref<1x128xf32, #tpu.memory_space<vmem>>, vector<1x128xf32>
    %4 = vector.broadcast %3 : vector<1x128xf32> to vector<512x128xf32>
    %5 = arith.addf %2, %4 : vector<512x128xf32>
    %cst_5 = arith.constant 0.000000e+00 : f32
    %6 = vector.broadcast %cst_5 : f32 to vector<512x128xf32>
    %7 = arith.cmpf ogt, %5, %6 : vector<512x128xf32>
    %cst_6 = arith.constant 2.000000e-01 : f32
    %8 = vector.broadcast %cst_6 : f32 to vector<512x128xf32>
    %9 = arith.mulf %8, %5 : vector<512x128xf32>
    %10 = arith.select %7, %5, %9 : vector<512x128xi1>, vector<512x128xf32>
    %11 = arith.truncf %10 : vector<512x128xf32> to vector<512x128xbf16>
    %c0_7 = arith.constant 0 : index
    %c0_8 = arith.constant 0 : index
    %12 = vector.load %arg4[%c0_7, %c0_8] : memref<512x128xbf16, #tpu.memory_space<vmem>>, vector<512x128xbf16>
    tpu.vector_store %arg4[%c0_7, %c0_8], %11 {strides = array<i32>} : memref<512x128xbf16, #tpu.memory_space<vmem>>, vector<512x128xbf16>,
    return
  }
  func.func @transform_0(%arg0: i32) -> (i32, i32) {
    %c0_i32 = arith.constant 0 : i32
    %c0_i32_0 = arith.constant 0 : i32
    return %arg0, %c0_i32 : i32, i32
  }
  func.func @transform_1(%arg0: i32) -> (i32, i32) {
    %c0_i32 = arith.constant 0 : i32
    %c0_i32_0 = arith.constant 0 : i32
    %c0_i32_1 = arith.constant 0 : i32
    return %c0_i32, %c0_i32_0 : i32, i32
  }
  func.func @transform_2(%arg0: i32) -> (i32, i32) {
    %c0_i32 = arith.constant 0 : i32
    %c0_i32_0 = arith.constant 0 : i32
    %c0_i32_1 = arith.constant 0 : i32
    return %c0_i32, %c0_i32_0 : i32, i32
  }
  func.func @transform_3(%arg0: i32) -> (i32, i32) {
    %c0_i32 = arith.constant 0 : i32
    %c0_i32_0 = arith.constant 0 : i32
    return %arg0, %c0_i32 : i32, i32
  }
}

module attributes {stable_mosaic.version = 11 : i64} {
  func.func @_conv_stats_kernel(%arg0: i32, %arg1: memref<512x128xbf16, #tpu.memory_space<vmem>>, %arg2: memref<128x128xbf16, #tpu.memory_space<vmem>>, %arg3: memref<512x128xf32, #tpu.memory_space<vmem>>, %arg4: memref<1x128xf32, #tpu.memory_space<vmem>>, %arg5: memref<1x128xf32, #tpu.memory_space<vmem>>) attributes {dimension_semantics = [#tpu.dimension_semantics<arbitrary>], iteration_bounds = array<i64: 1>, scalar_prefetch = 0 : i64, scratch_operands = 0 : i64, tpu.core_type = #tpu.core_type<tc>, window_params = [{transform_indices = @transform_0, window_bounds = array<i64: 512, 128>}, {pipeline_mode = #tpu.pipeline_mode<synchronous>, transform_indices = @transform_1, window_bounds = array<i64: 128, 128>}, {transform_indices = @transform_2, window_bounds = array<i64: 512, 128>}, {pipeline_mode = #tpu.pipeline_mode<synchronous>, transform_indices = @transform_3, window_bounds = array<i64: 1, 128>}, {pipeline_mode = #tpu.pipeline_mode<synchronous>, transform_indices = @transform_4, window_bounds = array<i64: 1, 128>}]} {
    %c0 = arith.constant 0 : index
    %c0_0 = arith.constant 0 : index
    %0 = vector.load %arg1[%c0, %c0_0] : memref<512x128xbf16, #tpu.memory_space<vmem>>, vector<512x128xbf16>
    %c0_1 = arith.constant 0 : index
    %c0_2 = arith.constant 0 : index
    %1 = vector.load %arg2[%c0_1, %c0_2] : memref<128x128xbf16, #tpu.memory_space<vmem>>, vector<128x128xbf16>
    %cst = arith.constant dense<0.000000e+00> : vector<512x128xf32>
    %2 = tpu.matmul %0, %1, %cst {dimension_numbers = #tpu.dot_dimension_numbers<[1], [0], [0], [1], [0, 0, 1, 1], [], []>} : vector<512x128xbf16>, vector<128x128xbf16>, vector<512x128xf32> -> vector<512x128xf32>
    %c0_3 = arith.constant 0 : index
    %c0_4 = arith.constant 0 : index
    %3 = vector.load %arg3[%c0_3, %c0_4] : memref<512x128xf32, #tpu.memory_space<vmem>>, vector<512x128xf32>
    tpu.vector_store %arg3[%c0_3, %c0_4], %2 {strides = array<i32>} : memref<512x128xf32, #tpu.memory_space<vmem>>, vector<512x128xf32>,
    %c0_i32 = arith.constant 0 : i32
    %4 = arith.cmpi eq, %arg0, %c0_i32 : i32
    %5 = arith.extui %4 : i1 to i32
    %c0_i32_5 = arith.constant 0 : i32
    %6 = arith.cmpi ne, %5, %c0_i32_5 : i32
    scf.if %6 {
      %cst_16 = arith.constant 0.000000e+00 : f32
      %18 = vector.broadcast %cst_16 : f32 to vector<1x128xf32>
      %c0_17 = arith.constant 0 : index
      %c0_18 = arith.constant 0 : index
      %19 = vector.load %arg4[%c0_17, %c0_18] : memref<1x128xf32, #tpu.memory_space<vmem>>, vector<1x128xf32>
      tpu.vector_store %arg4[%c0_17, %c0_18], %18 {strides = array<i32>} : memref<1x128xf32, #tpu.memory_space<vmem>>, vector<1x128xf32>,
      %cst_19 = arith.constant 0.000000e+00 : f32
      %20 = vector.broadcast %cst_19 : f32 to vector<1x128xf32>
      %c0_20 = arith.constant 0 : index
      %c0_21 = arith.constant 0 : index
      %21 = vector.load %arg5[%c0_20, %c0_21] : memref<1x128xf32, #tpu.memory_space<vmem>>, vector<1x128xf32>
      tpu.vector_store %arg5[%c0_20, %c0_21], %20 {strides = array<i32>} : memref<1x128xf32, #tpu.memory_space<vmem>>, vector<1x128xf32>,
    } else {
    }
    %c0_6 = arith.constant 0 : index
    %c0_7 = arith.constant 0 : index
    %7 = vector.load %arg4[%c0_6, %c0_7] : memref<1x128xf32, #tpu.memory_space<vmem>>, vector<1x128xf32>
    %cst_8 = arith.constant dense<0.000000e+00> : vector<128xf32>
    %8 = vector.multi_reduction <add>, %2, %cst_8 [0] : vector<512x128xf32> to vector<128xf32>
    %9 = vector.shape_cast %8 : vector<128xf32> to vector<1x128xf32>
    %10 = arith.addf %7, %9 : vector<1x128xf32>
    %c0_9 = arith.constant 0 : index
    %c0_10 = arith.constant 0 : index
    %11 = vector.load %arg4[%c0_9, %c0_10] : memref<1x128xf32, #tpu.memory_space<vmem>>, vector<1x128xf32>
    tpu.vector_store %arg4[%c0_9, %c0_10], %10 {strides = array<i32>} : memref<1x128xf32, #tpu.memory_space<vmem>>, vector<1x128xf32>,
    %c0_11 = arith.constant 0 : index
    %c0_12 = arith.constant 0 : index
    %12 = vector.load %arg5[%c0_11, %c0_12] : memref<1x128xf32, #tpu.memory_space<vmem>>, vector<1x128xf32>
    %13 = arith.mulf %2, %2 : vector<512x128xf32>
    %cst_13 = arith.constant dense<0.000000e+00> : vector<128xf32>
    %14 = vector.multi_reduction <add>, %13, %cst_13 [0] : vector<512x128xf32> to vector<128xf32>
    %15 = vector.shape_cast %14 : vector<128xf32> to vector<1x128xf32>
    %16 = arith.addf %12, %15 : vector<1x128xf32>
    %c0_14 = arith.constant 0 : index
    %c0_15 = arith.constant 0 : index
    %17 = vector.load %arg5[%c0_14, %c0_15] : memref<1x128xf32, #tpu.memory_space<vmem>>, vector<1x128xf32>
    tpu.vector_store %arg5[%c0_14, %c0_15], %16 {strides = array<i32>} : memref<1x128xf32, #tpu.memory_space<vmem>>, vector<1x128xf32>,
    return
  }
  func.func @transform_0(%arg0: i32) -> (i32, i32) {
    %c0_i32 = arith.constant 0 : i32
    %c0_i32_0 = arith.constant 0 : i32
    return %arg0, %c0_i32 : i32, i32
  }
  func.func @transform_1(%arg0: i32) -> (i32, i32) {
    %c0_i32 = arith.constant 0 : i32
    %c0_i32_0 = arith.constant 0 : i32
    %c0_i32_1 = arith.constant 0 : i32
    return %c0_i32, %c0_i32_0 : i32, i32
  }
  func.func @transform_2(%arg0: i32) -> (i32, i32) {
    %c0_i32 = arith.constant 0 : i32
    %c0_i32_0 = arith.constant 0 : i32
    return %arg0, %c0_i32 : i32, i32
  }
  func.func @transform_3(%arg0: i32) -> (i32, i32) {
    %c0_i32 = arith.constant 0 : i32
    %c0_i32_0 = arith.constant 0 : i32
    %c0_i32_1 = arith.constant 0 : i32
    return %c0_i32, %c0_i32_0 : i32, i32
  }
  func.func @transform_4(%arg0: i32) -> (i32, i32) {
    %c0_i32 = arith.constant 0 : i32
    %c0_i32_0 = arith.constant 0 : i32
    %c0_i32_1 = arith.constant 0 : i32
    return %c0_i32, %c0_i32_0 : i32, i32
  }
}

module attributes {stable_mosaic.version = 11 : i64} {
  func.func @_bn_lrelu_kernel(%arg0: i32, %arg1: memref<512x128xf32, #tpu.memory_space<vmem>>, %arg2: memref<1x128xf32, #tpu.memory_space<vmem>>, %arg3: memref<1x128xf32, #tpu.memory_space<vmem>>, %arg4: memref<1x128xf32, #tpu.memory_space<vmem>>, %arg5: memref<1x128xf32, #tpu.memory_space<vmem>>, %arg6: memref<512x128xbf16, #tpu.memory_space<vmem>>) attributes {dimension_semantics = [#tpu.dimension_semantics<parallel>], iteration_bounds = array<i64: 1>, scalar_prefetch = 0 : i64, scratch_operands = 0 : i64, tpu.core_type = #tpu.core_type<tc>, window_params = [{transform_indices = @transform_0, window_bounds = array<i64: 512, 128>}, {pipeline_mode = #tpu.pipeline_mode<synchronous>, transform_indices = @transform_1, window_bounds = array<i64: 1, 128>}, {pipeline_mode = #tpu.pipeline_mode<synchronous>, transform_indices = @transform_2, window_bounds = array<i64: 1, 128>}, {pipeline_mode = #tpu.pipeline_mode<synchronous>, transform_indices = @transform_3, window_bounds = array<i64: 1, 128>}, {pipeline_mode = #tpu.pipeline_mode<synchronous>, transform_indices = @transform_4, window_bounds = array<i64: 1, 128>}, {transform_indices = @transform_5, window_bounds = array<i64: 512, 128>}]} {
    %c0 = arith.constant 0 : index
    %c0_0 = arith.constant 0 : index
    %0 = vector.load %arg2[%c0, %c0_0] : memref<1x128xf32, #tpu.memory_space<vmem>>, vector<1x128xf32>
    %cst = arith.constant 0.001953125 : f32
    %1 = vector.broadcast %cst : f32 to vector<1x128xf32>
    %2 = arith.mulf %0, %1 : vector<1x128xf32>
    %c0_1 = arith.constant 0 : index
    %c0_2 = arith.constant 0 : index
    %3 = vector.load %arg3[%c0_1, %c0_2] : memref<1x128xf32, #tpu.memory_space<vmem>>, vector<1x128xf32>
    %cst_3 = arith.constant 0.001953125 : f32
    %4 = vector.broadcast %cst_3 : f32 to vector<1x128xf32>
    %5 = arith.mulf %3, %4 : vector<1x128xf32>
    %6 = arith.mulf %2, %2 : vector<1x128xf32>
    %7 = arith.subf %5, %6 : vector<1x128xf32>
    %c0_4 = arith.constant 0 : index
    %c0_5 = arith.constant 0 : index
    %8 = vector.load %arg4[%c0_4, %c0_5] : memref<1x128xf32, #tpu.memory_space<vmem>>, vector<1x128xf32>
    %cst_6 = arith.constant 9.99999974E-6 : f32
    %9 = vector.broadcast %cst_6 : f32 to vector<1x128xf32>
    %10 = arith.addf %7, %9 : vector<1x128xf32>
    %11 = math.rsqrt %10 : vector<1x128xf32>
    %12 = arith.mulf %8, %11 : vector<1x128xf32>
    %c0_7 = arith.constant 0 : index
    %c0_8 = arith.constant 0 : index
    %13 = vector.load %arg5[%c0_7, %c0_8] : memref<1x128xf32, #tpu.memory_space<vmem>>, vector<1x128xf32>
    %14 = arith.mulf %2, %12 : vector<1x128xf32>
    %15 = arith.subf %13, %14 : vector<1x128xf32>
    %c0_9 = arith.constant 0 : index
    %c0_10 = arith.constant 0 : index
    %16 = vector.load %arg1[%c0_9, %c0_10] : memref<512x128xf32, #tpu.memory_space<vmem>>, vector<512x128xf32>
    %17 = vector.broadcast %12 : vector<1x128xf32> to vector<512x128xf32>
    %18 = arith.mulf %16, %17 : vector<512x128xf32>
    %19 = vector.broadcast %15 : vector<1x128xf32> to vector<512x128xf32>
    %20 = arith.addf %18, %19 : vector<512x128xf32>
    %cst_11 = arith.constant 0.000000e+00 : f32
    %21 = vector.broadcast %cst_11 : f32 to vector<512x128xf32>
    %22 = arith.cmpf ogt, %20, %21 : vector<512x128xf32>
    %cst_12 = arith.constant 2.000000e-01 : f32
    %23 = vector.broadcast %cst_12 : f32 to vector<512x128xf32>
    %24 = arith.mulf %23, %20 : vector<512x128xf32>
    %25 = arith.select %22, %20, %24 : vector<512x128xi1>, vector<512x128xf32>
    %26 = arith.truncf %25 : vector<512x128xf32> to vector<512x128xbf16>
    %c0_13 = arith.constant 0 : index
    %c0_14 = arith.constant 0 : index
    %27 = vector.load %arg6[%c0_13, %c0_14] : memref<512x128xbf16, #tpu.memory_space<vmem>>, vector<512x128xbf16>
    tpu.vector_store %arg6[%c0_13, %c0_14], %26 {strides = array<i32>} : memref<512x128xbf16, #tpu.memory_space<vmem>>, vector<512x128xbf16>,
    return
  }
  func.func @transform_0(%arg0: i32) -> (i32, i32) {
    %c0_i32 = arith.constant 0 : i32
    %c0_i32_0 = arith.constant 0 : i32
    return %arg0, %c0_i32 : i32, i32
  }
  func.func @transform_1(%arg0: i32) -> (i32, i32) {
    %c0_i32 = arith.constant 0 : i32
    %c0_i32_0 = arith.constant 0 : i32
    %c0_i32_1 = arith.constant 0 : i32
    return %c0_i32, %c0_i32_0 : i32, i32
  }
  func.func @transform_2(%arg0: i32) -> (i32, i32) {
    %c0_i32 = arith.constant 0 : i32
    %c0_i32_0 = arith.constant 0 : i32
    %c0_i32_1 = arith.constant 0 : i32
    return %c0_i32, %c0_i32_0 : i32, i32
  }
  func.func @transform_3(%arg0: i32) -> (i32, i32) {
    %c0_i32 = arith.constant 0 : i32
    %c0_i32_0 = arith.constant 0 : i32
    %c0_i32_1 = arith.constant 0 : i32
    return %c0_i32, %c0_i32_0 : i32, i32
  }
  func.func @transform_4(%arg0: i32) -> (i32, i32) {
    %c0_i32 = arith.constant 0 : i32
    %c0_i32_0 = arith.constant 0 : i32
    %c0_i32_1 = arith.constant 0 : i32
    return %c0_i32, %c0_i32_0 : i32, i32
  }
  func.func @transform_5(%arg0: i32) -> (i32, i32) {
    %c0_i32 = arith.constant 0 : i32
    %c0_i32_0 = arith.constant 0 : i32
    return %arg0, %c0_i32 : i32, i32
  }
}

module attributes {stable_mosaic.version = 11 : i64} {
  func.func @_conv_stats_kernel(%arg0: i32, %arg1: memref<128x256xbf16, #tpu.memory_space<vmem>>, %arg2: memref<256x128xbf16, #tpu.memory_space<vmem>>, %arg3: memref<128x128xf32, #tpu.memory_space<vmem>>, %arg4: memref<1x128xf32, #tpu.memory_space<vmem>>, %arg5: memref<1x128xf32, #tpu.memory_space<vmem>>) attributes {dimension_semantics = [#tpu.dimension_semantics<arbitrary>], iteration_bounds = array<i64: 1>, scalar_prefetch = 0 : i64, scratch_operands = 0 : i64, tpu.core_type = #tpu.core_type<tc>, window_params = [{transform_indices = @transform_0, window_bounds = array<i64: 128, 256>}, {pipeline_mode = #tpu.pipeline_mode<synchronous>, transform_indices = @transform_1, window_bounds = array<i64: 256, 128>}, {transform_indices = @transform_2, window_bounds = array<i64: 128, 128>}, {pipeline_mode = #tpu.pipeline_mode<synchronous>, transform_indices = @transform_3, window_bounds = array<i64: 1, 128>}, {pipeline_mode = #tpu.pipeline_mode<synchronous>, transform_indices = @transform_4, window_bounds = array<i64: 1, 128>}]} {
    %c0 = arith.constant 0 : index
    %c0_0 = arith.constant 0 : index
    %0 = vector.load %arg1[%c0, %c0_0] : memref<128x256xbf16, #tpu.memory_space<vmem>>, vector<128x256xbf16>
    %c0_1 = arith.constant 0 : index
    %c0_2 = arith.constant 0 : index
    %1 = vector.load %arg2[%c0_1, %c0_2] : memref<256x128xbf16, #tpu.memory_space<vmem>>, vector<256x128xbf16>
    %cst = arith.constant dense<0.000000e+00> : vector<128x128xf32>
    %2 = tpu.matmul %0, %1, %cst {dimension_numbers = #tpu.dot_dimension_numbers<[1], [0], [0], [1], [0, 0, 1, 1], [], []>} : vector<128x256xbf16>, vector<256x128xbf16>, vector<128x128xf32> -> vector<128x128xf32>
    %c0_3 = arith.constant 0 : index
    %c0_4 = arith.constant 0 : index
    %3 = vector.load %arg3[%c0_3, %c0_4] : memref<128x128xf32, #tpu.memory_space<vmem>>, vector<128x128xf32>
    tpu.vector_store %arg3[%c0_3, %c0_4], %2 {strides = array<i32>} : memref<128x128xf32, #tpu.memory_space<vmem>>, vector<128x128xf32>,
    %c0_i32 = arith.constant 0 : i32
    %4 = arith.cmpi eq, %arg0, %c0_i32 : i32
    %5 = arith.extui %4 : i1 to i32
    %c0_i32_5 = arith.constant 0 : i32
    %6 = arith.cmpi ne, %5, %c0_i32_5 : i32
    scf.if %6 {
      %cst_16 = arith.constant 0.000000e+00 : f32
      %18 = vector.broadcast %cst_16 : f32 to vector<1x128xf32>
      %c0_17 = arith.constant 0 : index
      %c0_18 = arith.constant 0 : index
      %19 = vector.load %arg4[%c0_17, %c0_18] : memref<1x128xf32, #tpu.memory_space<vmem>>, vector<1x128xf32>
      tpu.vector_store %arg4[%c0_17, %c0_18], %18 {strides = array<i32>} : memref<1x128xf32, #tpu.memory_space<vmem>>, vector<1x128xf32>,
      %cst_19 = arith.constant 0.000000e+00 : f32
      %20 = vector.broadcast %cst_19 : f32 to vector<1x128xf32>
      %c0_20 = arith.constant 0 : index
      %c0_21 = arith.constant 0 : index
      %21 = vector.load %arg5[%c0_20, %c0_21] : memref<1x128xf32, #tpu.memory_space<vmem>>, vector<1x128xf32>
      tpu.vector_store %arg5[%c0_20, %c0_21], %20 {strides = array<i32>} : memref<1x128xf32, #tpu.memory_space<vmem>>, vector<1x128xf32>,
    } else {
    }
    %c0_6 = arith.constant 0 : index
    %c0_7 = arith.constant 0 : index
    %7 = vector.load %arg4[%c0_6, %c0_7] : memref<1x128xf32, #tpu.memory_space<vmem>>, vector<1x128xf32>
    %cst_8 = arith.constant dense<0.000000e+00> : vector<128xf32>
    %8 = vector.multi_reduction <add>, %2, %cst_8 [0] : vector<128x128xf32> to vector<128xf32>
    %9 = vector.shape_cast %8 : vector<128xf32> to vector<1x128xf32>
    %10 = arith.addf %7, %9 : vector<1x128xf32>
    %c0_9 = arith.constant 0 : index
    %c0_10 = arith.constant 0 : index
    %11 = vector.load %arg4[%c0_9, %c0_10] : memref<1x128xf32, #tpu.memory_space<vmem>>, vector<1x128xf32>
    tpu.vector_store %arg4[%c0_9, %c0_10], %10 {strides = array<i32>} : memref<1x128xf32, #tpu.memory_space<vmem>>, vector<1x128xf32>,
    %c0_11 = arith.constant 0 : index
    %c0_12 = arith.constant 0 : index
    %12 = vector.load %arg5[%c0_11, %c0_12] : memref<1x128xf32, #tpu.memory_space<vmem>>, vector<1x128xf32>
    %13 = arith.mulf %2, %2 : vector<128x128xf32>
    %cst_13 = arith.constant dense<0.000000e+00> : vector<128xf32>
    %14 = vector.multi_reduction <add>, %13, %cst_13 [0] : vector<128x128xf32> to vector<128xf32>
    %15 = vector.shape_cast %14 : vector<128xf32> to vector<1x128xf32>
    %16 = arith.addf %12, %15 : vector<1x128xf32>
    %c0_14 = arith.constant 0 : index
    %c0_15 = arith.constant 0 : index
    %17 = vector.load %arg5[%c0_14, %c0_15] : memref<1x128xf32, #tpu.memory_space<vmem>>, vector<1x128xf32>
    tpu.vector_store %arg5[%c0_14, %c0_15], %16 {strides = array<i32>} : memref<1x128xf32, #tpu.memory_space<vmem>>, vector<1x128xf32>,
    return
  }
  func.func @transform_0(%arg0: i32) -> (i32, i32) {
    %c0_i32 = arith.constant 0 : i32
    %c0_i32_0 = arith.constant 0 : i32
    return %arg0, %c0_i32 : i32, i32
  }
  func.func @transform_1(%arg0: i32) -> (i32, i32) {
    %c0_i32 = arith.constant 0 : i32
    %c0_i32_0 = arith.constant 0 : i32
    %c0_i32_1 = arith.constant 0 : i32
    return %c0_i32, %c0_i32_0 : i32, i32
  }
  func.func @transform_2(%arg0: i32) -> (i32, i32) {
    %c0_i32 = arith.constant 0 : i32
    %c0_i32_0 = arith.constant 0 : i32
    return %arg0, %c0_i32 : i32, i32
  }
  func.func @transform_3(%arg0: i32) -> (i32, i32) {
    %c0_i32 = arith.constant 0 : i32
    %c0_i32_0 = arith.constant 0 : i32
    %c0_i32_1 = arith.constant 0 : i32
    return %c0_i32, %c0_i32_0 : i32, i32
  }
  func.func @transform_4(%arg0: i32) -> (i32, i32) {
    %c0_i32 = arith.constant 0 : i32
    %c0_i32_0 = arith.constant 0 : i32
    %c0_i32_1 = arith.constant 0 : i32
    return %c0_i32, %c0_i32_0 : i32, i32
  }
}

module attributes {stable_mosaic.version = 11 : i64} {
  func.func @_bn_lrelu_kernel(%arg0: i32, %arg1: memref<128x128xf32, #tpu.memory_space<vmem>>, %arg2: memref<1x128xf32, #tpu.memory_space<vmem>>, %arg3: memref<1x128xf32, #tpu.memory_space<vmem>>, %arg4: memref<1x128xf32, #tpu.memory_space<vmem>>, %arg5: memref<1x128xf32, #tpu.memory_space<vmem>>, %arg6: memref<128x128xbf16, #tpu.memory_space<vmem>>) attributes {dimension_semantics = [#tpu.dimension_semantics<parallel>], iteration_bounds = array<i64: 1>, scalar_prefetch = 0 : i64, scratch_operands = 0 : i64, tpu.core_type = #tpu.core_type<tc>, window_params = [{transform_indices = @transform_0, window_bounds = array<i64: 128, 128>}, {pipeline_mode = #tpu.pipeline_mode<synchronous>, transform_indices = @transform_1, window_bounds = array<i64: 1, 128>}, {pipeline_mode = #tpu.pipeline_mode<synchronous>, transform_indices = @transform_2, window_bounds = array<i64: 1, 128>}, {pipeline_mode = #tpu.pipeline_mode<synchronous>, transform_indices = @transform_3, window_bounds = array<i64: 1, 128>}, {pipeline_mode = #tpu.pipeline_mode<synchronous>, transform_indices = @transform_4, window_bounds = array<i64: 1, 128>}, {transform_indices = @transform_5, window_bounds = array<i64: 128, 128>}]} {
    %c0 = arith.constant 0 : index
    %c0_0 = arith.constant 0 : index
    %0 = vector.load %arg2[%c0, %c0_0] : memref<1x128xf32, #tpu.memory_space<vmem>>, vector<1x128xf32>
    %cst = arith.constant 7.812500e-03 : f32
    %1 = vector.broadcast %cst : f32 to vector<1x128xf32>
    %2 = arith.mulf %0, %1 : vector<1x128xf32>
    %c0_1 = arith.constant 0 : index
    %c0_2 = arith.constant 0 : index
    %3 = vector.load %arg3[%c0_1, %c0_2] : memref<1x128xf32, #tpu.memory_space<vmem>>, vector<1x128xf32>
    %cst_3 = arith.constant 7.812500e-03 : f32
    %4 = vector.broadcast %cst_3 : f32 to vector<1x128xf32>
    %5 = arith.mulf %3, %4 : vector<1x128xf32>
    %6 = arith.mulf %2, %2 : vector<1x128xf32>
    %7 = arith.subf %5, %6 : vector<1x128xf32>
    %c0_4 = arith.constant 0 : index
    %c0_5 = arith.constant 0 : index
    %8 = vector.load %arg4[%c0_4, %c0_5] : memref<1x128xf32, #tpu.memory_space<vmem>>, vector<1x128xf32>
    %cst_6 = arith.constant 9.99999974E-6 : f32
    %9 = vector.broadcast %cst_6 : f32 to vector<1x128xf32>
    %10 = arith.addf %7, %9 : vector<1x128xf32>
    %11 = math.rsqrt %10 : vector<1x128xf32>
    %12 = arith.mulf %8, %11 : vector<1x128xf32>
    %c0_7 = arith.constant 0 : index
    %c0_8 = arith.constant 0 : index
    %13 = vector.load %arg5[%c0_7, %c0_8] : memref<1x128xf32, #tpu.memory_space<vmem>>, vector<1x128xf32>
    %14 = arith.mulf %2, %12 : vector<1x128xf32>
    %15 = arith.subf %13, %14 : vector<1x128xf32>
    %c0_9 = arith.constant 0 : index
    %c0_10 = arith.constant 0 : index
    %16 = vector.load %arg1[%c0_9, %c0_10] : memref<128x128xf32, #tpu.memory_space<vmem>>, vector<128x128xf32>
    %17 = vector.broadcast %12 : vector<1x128xf32> to vector<128x128xf32>
    %18 = arith.mulf %16, %17 : vector<128x128xf32>
    %19 = vector.broadcast %15 : vector<1x128xf32> to vector<128x128xf32>
    %20 = arith.addf %18, %19 : vector<128x128xf32>
    %cst_11 = arith.constant 0.000000e+00 : f32
    %21 = vector.broadcast %cst_11 : f32 to vector<128x128xf32>
    %22 = arith.cmpf ogt, %20, %21 : vector<128x128xf32>
    %cst_12 = arith.constant 2.000000e-01 : f32
    %23 = vector.broadcast %cst_12 : f32 to vector<128x128xf32>
    %24 = arith.mulf %23, %20 : vector<128x128xf32>
    %25 = arith.select %22, %20, %24 : vector<128x128xi1>, vector<128x128xf32>
    %26 = arith.truncf %25 : vector<128x128xf32> to vector<128x128xbf16>
    %c0_13 = arith.constant 0 : index
    %c0_14 = arith.constant 0 : index
    %27 = vector.load %arg6[%c0_13, %c0_14] : memref<128x128xbf16, #tpu.memory_space<vmem>>, vector<128x128xbf16>
    tpu.vector_store %arg6[%c0_13, %c0_14], %26 {strides = array<i32>} : memref<128x128xbf16, #tpu.memory_space<vmem>>, vector<128x128xbf16>,
    return
  }
  func.func @transform_0(%arg0: i32) -> (i32, i32) {
    %c0_i32 = arith.constant 0 : i32
    %c0_i32_0 = arith.constant 0 : i32
    return %arg0, %c0_i32 : i32, i32
  }
  func.func @transform_1(%arg0: i32) -> (i32, i32) {
    %c0_i32 = arith.constant 0 : i32
    %c0_i32_0 = arith.constant 0 : i32
    %c0_i32_1 = arith.constant 0 : i32
    return %c0_i32, %c0_i32_0 : i32, i32
  }
  func.func @transform_2(%arg0: i32) -> (i32, i32) {
    %c0_i32 = arith.constant 0 : i32
    %c0_i32_0 = arith.constant 0 : i32
    %c0_i32_1 = arith.constant 0 : i32
    return %c0_i32, %c0_i32_0 : i32, i32
  }
  func.func @transform_3(%arg0: i32) -> (i32, i32) {
    %c0_i32 = arith.constant 0 : i32
    %c0_i32_0 = arith.constant 0 : i32
    %c0_i32_1 = arith.constant 0 : i32
    return %c0_i32, %c0_i32_0 : i32, i32
  }
  func.func @transform_4(%arg0: i32) -> (i32, i32) {
    %c0_i32 = arith.constant 0 : i32
    %c0_i32_0 = arith.constant 0 : i32
    %c0_i32_1 = arith.constant 0 : i32
    return %c0_i32, %c0_i32_0 : i32, i32
  }
  func.func @transform_5(%arg0: i32) -> (i32, i32) {
    %c0_i32 = arith.constant 0 : i32
    %c0_i32_0 = arith.constant 0 : i32
    return %arg0, %c0_i32 : i32, i32
  }
}

module attributes {stable_mosaic.version = 11 : i64} {
  func.func @_conv_stats_kernel(%arg0: i32, %arg1: memref<32x512xbf16, #tpu.memory_space<vmem>>, %arg2: memref<512x128xbf16, #tpu.memory_space<vmem>>, %arg3: memref<32x128xf32, #tpu.memory_space<vmem>>, %arg4: memref<1x128xf32, #tpu.memory_space<vmem>>, %arg5: memref<1x128xf32, #tpu.memory_space<vmem>>) attributes {dimension_semantics = [#tpu.dimension_semantics<arbitrary>], iteration_bounds = array<i64: 1>, scalar_prefetch = 0 : i64, scratch_operands = 0 : i64, tpu.core_type = #tpu.core_type<tc>, window_params = [{transform_indices = @transform_0, window_bounds = array<i64: 32, 512>}, {pipeline_mode = #tpu.pipeline_mode<synchronous>, transform_indices = @transform_1, window_bounds = array<i64: 512, 128>}, {transform_indices = @transform_2, window_bounds = array<i64: 32, 128>}, {pipeline_mode = #tpu.pipeline_mode<synchronous>, transform_indices = @transform_3, window_bounds = array<i64: 1, 128>}, {pipeline_mode = #tpu.pipeline_mode<synchronous>, transform_indices = @transform_4, window_bounds = array<i64: 1, 128>}]} {
    %c0 = arith.constant 0 : index
    %c0_0 = arith.constant 0 : index
    %0 = vector.load %arg1[%c0, %c0_0] : memref<32x512xbf16, #tpu.memory_space<vmem>>, vector<32x512xbf16>
    %c0_1 = arith.constant 0 : index
    %c0_2 = arith.constant 0 : index
    %1 = vector.load %arg2[%c0_1, %c0_2] : memref<512x128xbf16, #tpu.memory_space<vmem>>, vector<512x128xbf16>
    %cst = arith.constant dense<0.000000e+00> : vector<32x128xf32>
    %2 = tpu.matmul %0, %1, %cst {dimension_numbers = #tpu.dot_dimension_numbers<[1], [0], [0], [1], [0, 0, 1, 1], [], []>} : vector<32x512xbf16>, vector<512x128xbf16>, vector<32x128xf32> -> vector<32x128xf32>
    %c0_3 = arith.constant 0 : index
    %c0_4 = arith.constant 0 : index
    %3 = vector.load %arg3[%c0_3, %c0_4] : memref<32x128xf32, #tpu.memory_space<vmem>>, vector<32x128xf32>
    tpu.vector_store %arg3[%c0_3, %c0_4], %2 {strides = array<i32>} : memref<32x128xf32, #tpu.memory_space<vmem>>, vector<32x128xf32>,
    %c0_i32 = arith.constant 0 : i32
    %4 = arith.cmpi eq, %arg0, %c0_i32 : i32
    %5 = arith.extui %4 : i1 to i32
    %c0_i32_5 = arith.constant 0 : i32
    %6 = arith.cmpi ne, %5, %c0_i32_5 : i32
    scf.if %6 {
      %cst_16 = arith.constant 0.000000e+00 : f32
      %18 = vector.broadcast %cst_16 : f32 to vector<1x128xf32>
      %c0_17 = arith.constant 0 : index
      %c0_18 = arith.constant 0 : index
      %19 = vector.load %arg4[%c0_17, %c0_18] : memref<1x128xf32, #tpu.memory_space<vmem>>, vector<1x128xf32>
      tpu.vector_store %arg4[%c0_17, %c0_18], %18 {strides = array<i32>} : memref<1x128xf32, #tpu.memory_space<vmem>>, vector<1x128xf32>,
      %cst_19 = arith.constant 0.000000e+00 : f32
      %20 = vector.broadcast %cst_19 : f32 to vector<1x128xf32>
      %c0_20 = arith.constant 0 : index
      %c0_21 = arith.constant 0 : index
      %21 = vector.load %arg5[%c0_20, %c0_21] : memref<1x128xf32, #tpu.memory_space<vmem>>, vector<1x128xf32>
      tpu.vector_store %arg5[%c0_20, %c0_21], %20 {strides = array<i32>} : memref<1x128xf32, #tpu.memory_space<vmem>>, vector<1x128xf32>,
    } else {
    }
    %c0_6 = arith.constant 0 : index
    %c0_7 = arith.constant 0 : index
    %7 = vector.load %arg4[%c0_6, %c0_7] : memref<1x128xf32, #tpu.memory_space<vmem>>, vector<1x128xf32>
    %cst_8 = arith.constant dense<0.000000e+00> : vector<128xf32>
    %8 = vector.multi_reduction <add>, %2, %cst_8 [0] : vector<32x128xf32> to vector<128xf32>
    %9 = vector.shape_cast %8 : vector<128xf32> to vector<1x128xf32>
    %10 = arith.addf %7, %9 : vector<1x128xf32>
    %c0_9 = arith.constant 0 : index
    %c0_10 = arith.constant 0 : index
    %11 = vector.load %arg4[%c0_9, %c0_10] : memref<1x128xf32, #tpu.memory_space<vmem>>, vector<1x128xf32>
    tpu.vector_store %arg4[%c0_9, %c0_10], %10 {strides = array<i32>} : memref<1x128xf32, #tpu.memory_space<vmem>>, vector<1x128xf32>,
    %c0_11 = arith.constant 0 : index
    %c0_12 = arith.constant 0 : index
    %12 = vector.load %arg5[%c0_11, %c0_12] : memref<1x128xf32, #tpu.memory_space<vmem>>, vector<1x128xf32>
    %13 = arith.mulf %2, %2 : vector<32x128xf32>
    %cst_13 = arith.constant dense<0.000000e+00> : vector<128xf32>
    %14 = vector.multi_reduction <add>, %13, %cst_13 [0] : vector<32x128xf32> to vector<128xf32>
    %15 = vector.shape_cast %14 : vector<128xf32> to vector<1x128xf32>
    %16 = arith.addf %12, %15 : vector<1x128xf32>
    %c0_14 = arith.constant 0 : index
    %c0_15 = arith.constant 0 : index
    %17 = vector.load %arg5[%c0_14, %c0_15] : memref<1x128xf32, #tpu.memory_space<vmem>>, vector<1x128xf32>
    tpu.vector_store %arg5[%c0_14, %c0_15], %16 {strides = array<i32>} : memref<1x128xf32, #tpu.memory_space<vmem>>, vector<1x128xf32>,
    return
  }
  func.func @transform_0(%arg0: i32) -> (i32, i32) {
    %c0_i32 = arith.constant 0 : i32
    %c0_i32_0 = arith.constant 0 : i32
    return %arg0, %c0_i32 : i32, i32
  }
  func.func @transform_1(%arg0: i32) -> (i32, i32) {
    %c0_i32 = arith.constant 0 : i32
    %c0_i32_0 = arith.constant 0 : i32
    %c0_i32_1 = arith.constant 0 : i32
    return %c0_i32, %c0_i32_0 : i32, i32
  }
  func.func @transform_2(%arg0: i32) -> (i32, i32) {
    %c0_i32 = arith.constant 0 : i32
    %c0_i32_0 = arith.constant 0 : i32
    return %arg0, %c0_i32 : i32, i32
  }
  func.func @transform_3(%arg0: i32) -> (i32, i32) {
    %c0_i32 = arith.constant 0 : i32
    %c0_i32_0 = arith.constant 0 : i32
    %c0_i32_1 = arith.constant 0 : i32
    return %c0_i32, %c0_i32_0 : i32, i32
  }
  func.func @transform_4(%arg0: i32) -> (i32, i32) {
    %c0_i32 = arith.constant 0 : i32
    %c0_i32_0 = arith.constant 0 : i32
    %c0_i32_1 = arith.constant 0 : i32
    return %c0_i32, %c0_i32_0 : i32, i32
  }
}

module attributes {stable_mosaic.version = 11 : i64} {
  func.func @_bn_lrelu_kernel(%arg0: i32, %arg1: memref<32x128xf32, #tpu.memory_space<vmem>>, %arg2: memref<1x128xf32, #tpu.memory_space<vmem>>, %arg3: memref<1x128xf32, #tpu.memory_space<vmem>>, %arg4: memref<1x128xf32, #tpu.memory_space<vmem>>, %arg5: memref<1x128xf32, #tpu.memory_space<vmem>>, %arg6: memref<32x128xbf16, #tpu.memory_space<vmem>>) attributes {dimension_semantics = [#tpu.dimension_semantics<parallel>], iteration_bounds = array<i64: 1>, scalar_prefetch = 0 : i64, scratch_operands = 0 : i64, tpu.core_type = #tpu.core_type<tc>, window_params = [{transform_indices = @transform_0, window_bounds = array<i64: 32, 128>}, {pipeline_mode = #tpu.pipeline_mode<synchronous>, transform_indices = @transform_1, window_bounds = array<i64: 1, 128>}, {pipeline_mode = #tpu.pipeline_mode<synchronous>, transform_indices = @transform_2, window_bounds = array<i64: 1, 128>}, {pipeline_mode = #tpu.pipeline_mode<synchronous>, transform_indices = @transform_3, window_bounds = array<i64: 1, 128>}, {pipeline_mode = #tpu.pipeline_mode<synchronous>, transform_indices = @transform_4, window_bounds = array<i64: 1, 128>}, {transform_indices = @transform_5, window_bounds = array<i64: 32, 128>}]} {
    %c0 = arith.constant 0 : index
    %c0_0 = arith.constant 0 : index
    %0 = vector.load %arg2[%c0, %c0_0] : memref<1x128xf32, #tpu.memory_space<vmem>>, vector<1x128xf32>
    %cst = arith.constant 3.125000e-02 : f32
    %1 = vector.broadcast %cst : f32 to vector<1x128xf32>
    %2 = arith.mulf %0, %1 : vector<1x128xf32>
    %c0_1 = arith.constant 0 : index
    %c0_2 = arith.constant 0 : index
    %3 = vector.load %arg3[%c0_1, %c0_2] : memref<1x128xf32, #tpu.memory_space<vmem>>, vector<1x128xf32>
    %cst_3 = arith.constant 3.125000e-02 : f32
    %4 = vector.broadcast %cst_3 : f32 to vector<1x128xf32>
    %5 = arith.mulf %3, %4 : vector<1x128xf32>
    %6 = arith.mulf %2, %2 : vector<1x128xf32>
    %7 = arith.subf %5, %6 : vector<1x128xf32>
    %c0_4 = arith.constant 0 : index
    %c0_5 = arith.constant 0 : index
    %8 = vector.load %arg4[%c0_4, %c0_5] : memref<1x128xf32, #tpu.memory_space<vmem>>, vector<1x128xf32>
    %cst_6 = arith.constant 9.99999974E-6 : f32
    %9 = vector.broadcast %cst_6 : f32 to vector<1x128xf32>
    %10 = arith.addf %7, %9 : vector<1x128xf32>
    %11 = math.rsqrt %10 : vector<1x128xf32>
    %12 = arith.mulf %8, %11 : vector<1x128xf32>
    %c0_7 = arith.constant 0 : index
    %c0_8 = arith.constant 0 : index
    %13 = vector.load %arg5[%c0_7, %c0_8] : memref<1x128xf32, #tpu.memory_space<vmem>>, vector<1x128xf32>
    %14 = arith.mulf %2, %12 : vector<1x128xf32>
    %15 = arith.subf %13, %14 : vector<1x128xf32>
    %c0_9 = arith.constant 0 : index
    %c0_10 = arith.constant 0 : index
    %16 = vector.load %arg1[%c0_9, %c0_10] : memref<32x128xf32, #tpu.memory_space<vmem>>, vector<32x128xf32>
    %17 = vector.broadcast %12 : vector<1x128xf32> to vector<32x128xf32>
    %18 = arith.mulf %16, %17 : vector<32x128xf32>
    %19 = vector.broadcast %15 : vector<1x128xf32> to vector<32x128xf32>
    %20 = arith.addf %18, %19 : vector<32x128xf32>
    %cst_11 = arith.constant 0.000000e+00 : f32
    %21 = vector.broadcast %cst_11 : f32 to vector<32x128xf32>
    %22 = arith.cmpf ogt, %20, %21 : vector<32x128xf32>
    %cst_12 = arith.constant 2.000000e-01 : f32
    %23 = vector.broadcast %cst_12 : f32 to vector<32x128xf32>
    %24 = arith.mulf %23, %20 : vector<32x128xf32>
    %25 = arith.select %22, %20, %24 : vector<32x128xi1>, vector<32x128xf32>
    %26 = arith.truncf %25 : vector<32x128xf32> to vector<32x128xbf16>
    %c0_13 = arith.constant 0 : index
    %c0_14 = arith.constant 0 : index
    %27 = vector.load %arg6[%c0_13, %c0_14] : memref<32x128xbf16, #tpu.memory_space<vmem>>, vector<32x128xbf16>
    tpu.vector_store %arg6[%c0_13, %c0_14], %26 {strides = array<i32>} : memref<32x128xbf16, #tpu.memory_space<vmem>>, vector<32x128xbf16>,
    return
  }
  func.func @transform_0(%arg0: i32) -> (i32, i32) {
    %c0_i32 = arith.constant 0 : i32
    %c0_i32_0 = arith.constant 0 : i32
    return %arg0, %c0_i32 : i32, i32
  }
  func.func @transform_1(%arg0: i32) -> (i32, i32) {
    %c0_i32 = arith.constant 0 : i32
    %c0_i32_0 = arith.constant 0 : i32
    %c0_i32_1 = arith.constant 0 : i32
    return %c0_i32, %c0_i32_0 : i32, i32
  }
  func.func @transform_2(%arg0: i32) -> (i32, i32) {
    %c0_i32 = arith.constant 0 : i32
    %c0_i32_0 = arith.constant 0 : i32
    %c0_i32_1 = arith.constant 0 : i32
    return %c0_i32, %c0_i32_0 : i32, i32
  }
  func.func @transform_3(%arg0: i32) -> (i32, i32) {
    %c0_i32 = arith.constant 0 : i32
    %c0_i32_0 = arith.constant 0 : i32
    %c0_i32_1 = arith.constant 0 : i32
    return %c0_i32, %c0_i32_0 : i32, i32
  }
  func.func @transform_4(%arg0: i32) -> (i32, i32) {
    %c0_i32 = arith.constant 0 : i32
    %c0_i32_0 = arith.constant 0 : i32
    %c0_i32_1 = arith.constant 0 : i32
    return %c0_i32, %c0_i32_0 : i32, i32
  }
  func.func @transform_5(%arg0: i32) -> (i32, i32) {
    %c0_i32 = arith.constant 0 : i32
    %c0_i32_0 = arith.constant 0 : i32
    return %arg0, %c0_i32 : i32, i32
  }
}

module attributes {stable_mosaic.version = 11 : i64} {
  func.func @_conv_bias_act_kernel(%arg0: i32, %arg1: memref<8x1024xbf16, #tpu.memory_space<vmem>>, %arg2: memref<1024x128xbf16, #tpu.memory_space<vmem>>, %arg3: memref<1x128xf32, #tpu.memory_space<vmem>>, %arg4: memref<8x128xf32, #tpu.memory_space<vmem>>) attributes {dimension_semantics = [#tpu.dimension_semantics<parallel>], iteration_bounds = array<i64: 1>, scalar_prefetch = 0 : i64, scratch_operands = 0 : i64, tpu.core_type = #tpu.core_type<tc>, window_params = [{transform_indices = @transform_0, window_bounds = array<i64: 8, 1024>}, {pipeline_mode = #tpu.pipeline_mode<synchronous>, transform_indices = @transform_1, window_bounds = array<i64: 1024, 128>}, {pipeline_mode = #tpu.pipeline_mode<synchronous>, transform_indices = @transform_2, window_bounds = array<i64: 1, 128>}, {transform_indices = @transform_3, window_bounds = array<i64: 8, 128>}]} {
    %c0 = arith.constant 0 : index
    %c0_0 = arith.constant 0 : index
    %0 = vector.load %arg1[%c0, %c0_0] : memref<8x1024xbf16, #tpu.memory_space<vmem>>, vector<8x1024xbf16>
    %c0_1 = arith.constant 0 : index
    %c0_2 = arith.constant 0 : index
    %1 = vector.load %arg2[%c0_1, %c0_2] : memref<1024x128xbf16, #tpu.memory_space<vmem>>, vector<1024x128xbf16>
    %cst = arith.constant dense<0.000000e+00> : vector<8x128xf32>
    %2 = tpu.matmul %0, %1, %cst {dimension_numbers = #tpu.dot_dimension_numbers<[1], [0], [0], [1], [0, 0, 1, 1], [], []>} : vector<8x1024xbf16>, vector<1024x128xbf16>, vector<8x128xf32> -> vector<8x128xf32>
    %c0_3 = arith.constant 0 : index
    %c0_4 = arith.constant 0 : index
    %3 = vector.load %arg3[%c0_3, %c0_4] : memref<1x128xf32, #tpu.memory_space<vmem>>, vector<1x128xf32>
    %4 = vector.broadcast %3 : vector<1x128xf32> to vector<8x128xf32>
    %5 = arith.addf %2, %4 : vector<8x128xf32>
    %c0_5 = arith.constant 0 : index
    %c0_6 = arith.constant 0 : index
    %6 = vector.load %arg4[%c0_5, %c0_6] : memref<8x128xf32, #tpu.memory_space<vmem>>, vector<8x128xf32>
    tpu.vector_store %arg4[%c0_5, %c0_6], %5 {strides = array<i32>} : memref<8x128xf32, #tpu.memory_space<vmem>>, vector<8x128xf32>,
    return
  }
  func.func @transform_0(%arg0: i32) -> (i32, i32) {
    %c0_i32 = arith.constant 0 : i32
    %c0_i32_0 = arith.constant 0 : i32
    return %arg0, %c0_i32 : i32, i32
  }
  func.func @transform_1(%arg0: i32) -> (i32, i32) {
    %c0_i32 = arith.constant 0 : i32
    %c0_i32_0 = arith.constant 0 : i32
    %c0_i32_1 = arith.constant 0 : i32
    return %c0_i32, %c0_i32_0 : i32, i32
  }
  func.func @transform_2(%arg0: i32) -> (i32, i32) {
    %c0_i32 = arith.constant 0 : i32
    %c0_i32_0 = arith.constant 0 : i32
    %c0_i32_1 = arith.constant 0 : i32
    return %c0_i32, %c0_i32_0 : i32, i32
  }
  func.func @transform_3(%arg0: i32) -> (i32, i32) {
    %c0_i32 = arith.constant 0 : i32
    %c0_i32_0 = arith.constant 0 : i32
    return %arg0, %c0_i32 : i32, i32
  }
}

</mosaic_0001>

<bundles_post_ra>
// kernel: discriminator_forward.8
= control target key start
LH: loop header
LB: loop body
LE: loop exit
PB: predicated region body
PF: predicated region fallthrough
CT: control target
= control target key end

     0   :  { %s1964_s12 = smov 0   ;;  %s2175_s0 = inlined_call_operand.vmem [shape: bf16[2048,48], index: 0, kind: input, shape index: {}]   ;;  %s2176_s1 = inlined_call_operand.vmem [shape: bf16[48,128], index: 1, kind: input, shape index: {}]   ;;  %s2177_s2 = inlined_call_operand.vmem [shape: f32[1,128], index: 2, kind: input, shape index: {}]   ;;  %s2178_s3 = inlined_call_operand.vmem [shape: bf16[2048,128], index: 3, kind: output, shape index: {}]  }
   0x1 LB: > { %s1384_s13 = sadd.s32 4294967295, %s1942_s12   ;;  %p1388_p0 = scmp.ge.s32.totalorder %s1942_s12, 1  ;;  %s1942_s12 = sphi %s1964_s12, %s13_s12  }
   0x2   : > { %p138_p1 = scmp.lt.s32.totalorder %s1942_s12, 5 }
   0x4   : > { %p139_p2 = pnand %p1388_p0, %p138_p1 }
   0x5   : > { %v1901_v0 = vld [vmem:[%s2176_s1] sm:$0xff] (!%p139_p2)   ;;  %s1389_s16 = sshll.u32 (!%p139_p2), %s1384_s13, 6  ;;  %v1902_v1 = vld [vmem:[%s2176_s1 + $0x8] sm:$0xff] (!%p139_p2)   ;;  %v1903_v2 = vld [vmem:[%s2176_s1 + $0x10] sm:$0xff] (!%p139_p2)   ;;  %vm430_vm0 = vcmask (!%p139_p2), 392192  }
   0x6   : > { %142 = sbr.rel (%p139_p2) target bundleno = 307 (0x133), region = 32  ;;  %p163_p3 = scmp.lt.s32.totalorder (!%p139_p2), %s1389_s16, 255  ;;  %1817 = vmatprep.subr.bf16.mxu0 (!%p139_p2), %v1901_v0  ;;  %1887 = vmatprep.subr.bf16.mxu1 (!%p139_p2), %v1901_v0  ;;  %v2058_v35 = vld [vmem:[%s2177_s2] ss:$0 sm:$0xff] (!%p139_p2) }
   0x7   : > { %1818 = vmatpush3.bf16.msra.mxu0 (!%p139_p2), %v1901_v0  ;;  %1890 = vmatpush3.bf16.msra.mxu1 (!%p139_p2), %v1901_v0 }
   0x8   : > { %1819 = vmatprep.subr.bf16.mxu0 (!%p139_p2), %v1902_v1  ;;  %1888 = vmatprep.subr.bf16.mxu1 (!%p139_p2), %v1902_v1 }
   0xb   : > { %1820 = vmatpush3.bf16.msra.mxu0 (!%p139_p2), %v1902_v1  ;;  %1891 = vmatpush3.bf16.msra.mxu1 (!%p139_p2), %v1902_v1 }
   0xc   : > { %1821 = vmatprep.subr.bf16.mxu0 (!%p139_p2), %v1903_v2  ;;  %1889 = vmatprep.subr.bf16.mxu1 (!%p139_p2), %v1903_v2 }
   0xd   : > { %s2180_s16 = smov (!%p163_p3, %s1389_s16), 255 }
   0xe   : > { %s1390_s21 = sshll.u32 %s2180_s16, 2 }
   0xf   : > { %s1989_s24 = scalar_lea.vmem %s2175_s0, %s1390_s21  ;;  %1822 = vmatpush3.bf16.msra.mxu0 %v1903_v2  ;;  %1892 = vmatpush3.bf16.msra.mxu1 %v1903_v2  ;;  %s2075_s29 = scalar_lea.vmem %s2178_s3, %s1390_s21 }
  0x10   : > { %v1904_v3 = vld [vmem:[%s1989_s24] sm:$0xff]   ;;  %v1906_v5 = vld [vmem:[%s1989_s24 + $0x8] sm:$0xff]   ;;  %v1908_v7 = vld [vmem:[%s1989_s24 + $0x10] sm:$0xff]  }
  0x11   : > { %v1905_v4 = vld [vmem:[%s1989_s24 + $0x80] sm:$0xff]   ;;  %1823 = vmatprep.mubr.msk.bf16.mxu0 %vm430_vm0, %v1904_v3  ;;  %v1907_v6 = vld [vmem:[%s1989_s24 + $0x88] sm:$0xff]   ;;  %v1909_v8 = vld [vmem:[%s1989_s24 + $0x90] sm:$0xff]  }
  0x12   : > { %1855 = vmatprep.mubr.msk.bf16.mxu1 %vm430_vm0, %v1905_v4  ;;  %1824 = vmatmul.mubr.msk.bf16.vlgmr.msra.gmra.mrb[0].mxu0 %vm430_vm0, %v1906_v5  ;;  %v1910_v9 = vld [vmem:[%s1989_s24 + $0x18] sm:$0xff]   ;;  %v1912_v11 = vld [vmem:[%s1989_s24 + $0x20] sm:$0xff]   ;;  %v1914_v13 = vld [vmem:[%s1989_s24 + $0x28] sm:$0xff]  }
  0x13   : > { %1856 = vmatmul.mubr.msk.bf16.vlgmr.msra.gmra.mrb[0].mxu1 %vm430_vm0, %v1907_v6  ;;  %1827 = vmatprep.mubr.msk.bf16.mxu0 %vm430_vm0, %v1908_v7  ;;  %v1911_v10 = vld [vmem:[%s1989_s24 + $0x98] sm:$0xff]   ;;  %v1913_v12 = vld [vmem:[%s1989_s24 + $0xa0] sm:$0xff]   ;;  %v1915_v14 = vld [vmem:[%s1989_s24 + $0xa8] sm:$0xff]  }
  0x14   : > { %1859 = vmatprep.mubr.msk.bf16.mxu1 %vm430_vm0, %v1909_v8  ;;  %v1916_v15 = vld [vmem:[%s1989_s24 + $0x30] sm:$0xff]   ;;  %v1918_v17 = vld [vmem:[%s1989_s24 + $0x38] sm:$0xff]   ;;  %v1920_v19 = vld [vmem:[%s1989_s24 + $0x40] sm:$0xff]  }
  0x15   : > { %v1917_v16 = vld [vmem:[%s1989_s24 + $0xb0] sm:$0xff]   ;;  %v1919_v18 = vld [vmem:[%s1989_s24 + $0xb8] sm:$0xff]   ;;  %v1921_v20 = vld [vmem:[%s1989_s24 + $0xc0] sm:$0xff]  }
  0x16   : > { %v1922_v21 = vld [vmem:[%s1989_s24 + $0x48] sm:$0xff]   ;;  %v1924_v23 = vld [vmem:[%s1989_s24 + $0x50] sm:$0xff]   ;;  %v1926_v25 = vld [vmem:[%s1989_s24 + $0x58] sm:$0xff]  }
  0x17   : > { %v1923_v22 = vld [vmem:[%s1989_s24 + $0xc8] sm:$0xff]   ;;  %v1925_v24 = vld [vmem:[%s1989_s24 + $0xd0] sm:$0xff]   ;;  %v1927_v26 = vld [vmem:[%s1989_s24 + $0xd8] sm:$0xff]  }
  0x18   : > { %v1928_v27 = vld [vmem:[%s1989_s24 + $0x60] sm:$0xff]   ;;  %v1930_v29 = vld [vmem:[%s1989_s24 + $0x68] sm:$0xff]   ;;  %v1932_v31 = vld [vmem:[%s1989_s24 + $0x70] sm:$0xff]  }
  0x19   : > { %v1929_v28 = vld [vmem:[%s1989_s24 + $0xe0] sm:$0xff]   ;;  %v1931_v30 = vld [vmem:[%s1989_s24 + $0xe8] sm:$0xff]   ;;  %v1933_v32 = vld [vmem:[%s1989_s24 + $0xf0] sm:$0xff]  }
  0x1a   : > { %1828 = vmatmul.mubr.msk.bf16.gmra.mrb[4].mxu0 %vm430_vm0, %v1910_v9  ;;  %v1934_v33 = vld [vmem:[%s1989_s24 + $0x78] sm:$0xff]  }
  0x1b   : > { %1860 = vmatmul.mubr.msk.bf16.gmra.mrb[4].mxu1 %vm430_vm0, %v1911_v10  ;;  %1831 = vmatprep.mubr.msk.bf16.mxu0 %vm430_vm0, %v1912_v11  ;;  %v1935_v34 = vld [vmem:[%s1989_s24 + $0xf8] sm:$0xff]  }
  0x1c   : > { %1863 = vmatprep.mubr.msk.bf16.mxu1 %vm430_vm0, %v1913_v12 }
  0x22   : > { %1832 = vmatmul.mubr.msk.bf16.gmra.mrb[8].mxu0 %vm430_vm0, %v1914_v13 }
  0x23   : > { %1864 = vmatmul.mubr.msk.bf16.gmra.mrb[8].mxu1 %vm430_vm0, %v1915_v14  ;;  %1835 = vmatprep.mubr.msk.bf16.mxu0 %vm430_vm0, %v1916_v15 }
  0x24   : > { %1867 = vmatprep.mubr.msk.bf16.mxu1 %vm430_vm0, %v1917_v16 }
  0x2a   : > { %1836 = vmatmul.mubr.msk.bf16.gmra.mrb[12].mxu0 %vm430_vm0, %v1918_v17 }
  0x2b   : > { %1868 = vmatmul.mubr.msk.bf16.gmra.mrb[12].mxu1 %vm430_vm0, %v1919_v18  ;;  %1839 = vmatprep.mubr.msk.bf16.mxu0 %vm430_vm0, %v1920_v19 }
  0x2c   : > { %1871 = vmatprep.mubr.msk.bf16.mxu1 %vm430_vm0, %v1921_v20 }
  0x32   : > { %1840 = vmatmul.mubr.msk.bf16.gmra.mrb[16].mxu0 %vm430_vm0, %v1922_v21 }
  0x33   : > { %1872 = vmatmul.mubr.msk.bf16.gmra.mrb[16].mxu1 %vm430_vm0, %v1923_v22  ;;  %1843 = vmatprep.mubr.msk.bf16.mxu0 %vm430_vm0, %v1924_v23 }
  0x34   : > { %1875 = vmatprep.mubr.msk.bf16.mxu1 %vm430_vm0, %v1925_v24 }
  0x3a   : > { %1844 = vmatmul.mubr.msk.bf16.gmra.mrb[20].mxu0 %vm430_vm0, %v1926_v25 }
  0x3b   : > { %1876 = vmatmul.mubr.msk.bf16.gmra.mrb[20].mxu1 %vm430_vm0, %v1927_v26  ;;  %1847 = vmatprep.mubr.msk.bf16.mxu0 %vm430_vm0, %v1928_v27 }
  0x3c   : > { %1879 = vmatprep.mubr.msk.bf16.mxu1 %vm430_vm0, %v1929_v28 }
  0x42   : > { %1848 = vmatmul.mubr.msk.bf16.gmra.mrb[24].mxu0 %vm430_vm0, %v1930_v29 }
  0x43   : > { %1880 = vmatmul.mubr.msk.bf16.gmra.mrb[24].mxu1 %vm430_vm0, %v1931_v30  ;;  %1851 = vmatprep.mubr.msk.bf16.mxu0 %vm430_vm0, %v1932_v31 }
  0x44   : > { %1883 = vmatprep.mubr.msk.bf16.mxu1 %vm430_vm0, %v1933_v32 }
  0x4a   : > { %1852 = vmatmul.mubr.msk.bf16.gmra.mrb[28].mxu0 %vm430_vm0, %v1934_v33 }
  0x4b   : > { %1884 = vmatmul.mubr.msk.bf16.gmra.mrb[28].mxu1 %vm430_vm0, %v1935_v34 }
  0xe5   : > { %v1825_v36 = vpop.f32.mrb[0].mxu0 }
  0xe6   : > { %v1857_v37 = vpop.f32.mrb[0].mxu1  ;;  %v570_v38 = vadd.f32 %v1825_v36, %v2058_v35  ;;  %v561_v40 = vpop.f32.mrb[1].mxu0 }
  0xe7   : > { %v698_v39 = vadd.f32 %v1857_v37, %v2058_v35  ;;  %v689_v41 = vpop.f32.mrb[1].mxu1  ;;  %v562_v42 = vadd.f32 %v2058_v35, %v561_v40  ;;  %v1826_v44 = vpop.f32.mrb[2].mxu0 }
  0xe8   : > { %v690_v43 = vadd.f32 %v2058_v35, %v689_v41  ;;  %v1858_v45 = vpop.f32.mrb[2].mxu1  ;;  %vm818_vm1 = vcmp.gt.f32.partialorder %v570_v38, 0.0  ;;  %v882_v46 = vmul.f32 0.2, %v570_v38  ;;  %v573_v50 = vadd.f32 %v1826_v44, %v2058_v35  ;;  %v564_v52 = vpop.f32.mrb[3].mxu0 }
  0xe9   : > { %vm850_vm2 = vcmp.gt.f32.partialorder %v698_v39, 0.0  ;;  %v914_v47 = vmul.f32 0.2, %v698_v39  ;;  %vm816_vm3 = vcmp.gt.f32.partialorder %v562_v42, 0.0  ;;  %v880_v48 = vmul.f32 0.2, %v562_v42 }
  0xea   : > { %vm848_vm4 = vcmp.gt.f32.partialorder %v690_v43, 0.0  ;;  %v912_v49 = vmul.f32 0.2, %v690_v43  ;;  %v701_v51 = vadd.f32 %v1858_v45, %v2058_v35  ;;  %v692_v53 = vpop.f32.mrb[3].mxu1  ;;  %v946_v54 = vsel %vm818_vm1, %v570_v38, %v882_v46 }
  0xeb   : > { %v978_v55 = vsel %vm850_vm2, %v698_v39, %v914_v47  ;;  %v565_v56 = vadd.f32 %v2058_v35, %v564_v52  ;;  %v693_v57 = vadd.f32 %v2058_v35, %v692_v53  ;;  %vm819_vm5 = vcmp.gt.f32.partialorder %v573_v50, 0.0 }
  0xec   : > { %v883_v58 = vmul.f32 0.2, %v573_v50  ;;  %vm851_vm6 = vcmp.gt.f32.partialorder %v701_v51, 0.0  ;;  %v915_v59 = vmul.f32 0.2, %v701_v51  ;;  %v944_v62 = vsel %vm816_vm3, %v562_v42, %v880_v48 }
  0xed   : > { %vm817_vm7 = vcmp.gt.f32.partialorder %v565_v56, 0.0  ;;  %v881_v60 = vmul.f32 0.2, %v565_v56  ;;  %vm849_vm8 = vcmp.gt.f32.partialorder %v693_v57, 0.0  ;;  %v913_v61 = vmul.f32 0.2, %v693_v57 }
  0xee   : > { %v976_v63 = vsel %vm848_vm4, %v690_v43, %v912_v49  ;;  %v947_v0 = vsel %vm819_vm5, %v573_v50, %v883_v58  ;;  %v979_v1 = vsel %vm851_vm6, %v701_v51, %v915_v59  ;;  %v1829_v2 = vpop.f32.mrb[4].mxu0  ;;  %v1861_v3 = vpop.f32.mrb[4].mxu1 }
  0xef   : > { %v1599_v4 = vpack.c.bf16 %v947_v0, %v946_v54  ;;  %v1679_v5 = vpack.c.bf16 %v979_v1, %v978_v55  ;;  %v945_v6 = vsel %vm817_vm7, %v565_v56, %v881_v60  ;;  %v977_v7 = vsel %vm849_vm8, %v693_v57, %v913_v61  ;;  %v577_v8 = vpop.f32.mrb[5].mxu0  ;;  %v705_v9 = vpop.f32.mrb[5].mxu1 }
  0xf0   : > { %v1594_v10 = vpack.c.bf16 %v945_v6, %v944_v62  ;;  %v1674_v11 = vpack.c.bf16 %v977_v7, %v976_v63  ;;  %v586_v12 = vadd.f32 %v1829_v2, %v2058_v35  ;;  %v714_v13 = vadd.f32 %v1861_v3, %v2058_v35  ;;  %v1830_v14 = vpop.f32.mrb[6].mxu0  ;;  %v1862_v15 = vpop.f32.mrb[6].mxu1 }
  0xf1   : > { %1751 = vst [vmem:[%s2075_s29 + $0x8] sm:$0xff] %v1599_v4   ;;  %1767 = vst [vmem:[%s2075_s29 + $0x88] sm:$0xff] %v1679_v5   ;;  %v578_v16 = vadd.f32 %v2058_v35, %v577_v8  ;;  %v706_v17 = vadd.f32 %v2058_v35, %v705_v9  ;;  %v589_v18 = vadd.f32 %v1830_v14, %v2058_v35  ;;  %v580_v20 = vpop.f32.mrb[7].mxu0  ;;  %v708_v21 = vpop.f32.mrb[7].mxu1 }
  0xf2   : > { %v717_v19 = vadd.f32 %v1862_v15, %v2058_v35  ;;  %1595 = vst [vmem:[%s2075_s29] sm:$0xff] %v1594_v10   ;;  %1766 = vst [vmem:[%s2075_s29 + $0x80] sm:$0xff] %v1674_v11   ;;  %vm822_vm9 = vcmp.gt.f32.partialorder %v586_v12, 0.0  ;;  %v886_v22 = vmul.f32 0.2, %v586_v12  ;;  %vm854_vm10 = vcmp.gt.f32.partialorder %v714_v13, 0.0 }
  0xf3   : > { %v918_v23 = vmul.f32 0.2, %v714_v13  ;;  %vm820_vm11 = vcmp.gt.f32.partialorder %v578_v16, 0.0  ;;  %v884_v24 = vmul.f32 0.2, %v578_v16  ;;  %vm852_vm12 = vcmp.gt.f32.partialorder %v706_v17, 0.0 }
  0xf4   : > { %v916_v25 = vmul.f32 0.2, %v706_v17  ;;  %v950_v26 = vsel %vm822_vm9, %v586_v12, %v886_v22  ;;  %vm823_vm13 = vcmp.gt.f32.partialorder %v589_v18, 0.0  ;;  %v887_v28 = vmul.f32 0.2, %v589_v18 }
  0xf5   : > { %v982_v27 = vsel %vm854_vm10, %v714_v13, %v918_v23  ;;  %v948_v29 = vsel %vm820_vm11, %v578_v16, %v884_v24  ;;  %vm855_vm14 = vcmp.gt.f32.partialorder %v717_v19, 0.0  ;;  %v919_v31 = vmul.f32 0.2, %v717_v19  ;;  %v1833_v32 = vpop.f32.mrb[8].mxu0 }
  0xf6   : > { %v980_v30 = vsel %vm852_vm12, %v706_v17, %v916_v25  ;;  %v1865_v33 = vpop.f32.mrb[8].mxu1  ;;  %v951_v34 = vsel %vm823_vm13, %v589_v18, %v887_v28  ;;  %v581_v36 = vadd.f32 %v2058_v35, %v580_v20  ;;  %v709_v37 = vadd.f32 %v2058_v35, %v708_v21  ;;  %v593_v39 = vpop.f32.mrb[9].mxu0 }
  0xf7   : > { %v602_v38 = vadd.f32 %v1833_v32, %v2058_v35  ;;  %v721_v40 = vpop.f32.mrb[9].mxu1  ;;  %v1609_v41 = vpack.c.bf16 %v951_v34, %v950_v26  ;;  %v983_v42 = vsel %vm855_vm14, %v717_v19, %v919_v31  ;;  %v730_v43 = vadd.f32 %v1865_v33, %v2058_v35  ;;  %v1834_v45 = vpop.f32.mrb[10].mxu0 }
  0xf8   : > { %v594_v44 = vadd.f32 %v2058_v35, %v593_v39  ;;  %v1866_v46 = vpop.f32.mrb[10].mxu1  ;;  %v1689_v47 = vpack.c.bf16 %v983_v42, %v982_v27  ;;  %vm821_vm15 = vcmp.gt.f32.partialorder %v581_v36, 0.0  ;;  %v885_v48 = vmul.f32 0.2, %v581_v36  ;;  %v596_v49 = vpop.f32.mrb[11].mxu0 }
  0xf9   : > { %vm853_vm0 = vcmp.gt.f32.partialorder %v709_v37, 0.0  ;;  %v724_v50 = vpop.f32.mrb[11].mxu1  ;;  %1753 = vst [vmem:[%s2075_s29 + $0x18] sm:$0xff] %v1609_v41   ;;  %v917_v51 = vmul.f32 0.2, %v709_v37  ;;  %vm826_vm1 = vcmp.gt.f32.partialorder %v602_v38, 0.0  ;;  %v722_v59 = vadd.f32 %v2058_v35, %v721_v40 }
  0xfa   : > { %v890_v52 = vmul.f32 0.2, %v602_v38  ;;  %vm858_vm2 = vcmp.gt.f32.partialorder %v730_v43, 0.0  ;;  %1769 = vst [vmem:[%s2075_s29 + $0x98] sm:$0xff] %v1689_v47   ;;  %v949_v53 = vsel %vm821_vm15, %v581_v36, %v885_v48  ;;  %v922_v54 = vmul.f32 0.2, %v730_v43 }
  0xfb   : > { %vm824_vm3 = vcmp.gt.f32.partialorder %v594_v44, 0.0  ;;  %v888_v55 = vmul.f32 0.2, %v594_v44  ;;  %v1604_v56 = vpack.c.bf16 %v949_v53, %v948_v29  ;;  %v981_v57 = vsel %vm853_vm0, %v709_v37, %v917_v51 }
  0xfc   : > { %v954_v58 = vsel %vm826_vm1, %v602_v38, %v890_v52  ;;  %v1684_v60 = vpack.c.bf16 %v981_v57, %v980_v30  ;;  %v986_v61 = vsel %vm858_vm2, %v730_v43, %v922_v54  ;;  %v605_v63 = vadd.f32 %v1834_v45, %v2058_v35 }
  0xfd   : > { %v952_v62 = vsel %vm824_vm3, %v594_v44, %v888_v55  ;;  %1752 = vst [vmem:[%s2075_s29 + $0x10] sm:$0xff] %v1604_v56   ;;  %vm856_vm4 = vcmp.gt.f32.partialorder %v722_v59, 0.0  ;;  %v920_v0 = vmul.f32 0.2, %v722_v59  ;;  %v733_v1 = vadd.f32 %v1866_v46, %v2058_v35  ;;  %v1837_v3 = vpop.f32.mrb[12].mxu0 }
  0xfe   : > { %v597_v2 = vadd.f32 %v2058_v35, %v596_v49  ;;  %v1869_v4 = vpop.f32.mrb[12].mxu1  ;;  %1768 = vst [vmem:[%s2075_s29 + $0x90] sm:$0xff] %v1684_v60   ;;  %vm827_vm5 = vcmp.gt.f32.partialorder %v605_v63, 0.0  ;;  %v891_v5 = vmul.f32 0.2, %v605_v63  ;;  %v725_v6 = vadd.f32 %v2058_v35, %v724_v50  ;;  %v609_v8 = vpop.f32.mrb[13].mxu0 }
  0xff   : > { %v618_v7 = vadd.f32 %v1837_v3, %v2058_v35  ;;  %v737_v9 = vpop.f32.mrb[13].mxu1  ;;  %v984_v10 = vsel %vm856_vm4, %v722_v59, %v920_v0  ;;  %vm859_vm6 = vcmp.gt.f32.partialorder %v733_v1, 0.0  ;;  %v923_v11 = vmul.f32 0.2, %v733_v1  ;;  %v1838_v12 = vpop.f32.mrb[14].mxu0 }
 0x100   : > { %vm825_vm7 = vcmp.gt.f32.partialorder %v597_v2, 0.0  ;;  %v1870_v13 = vpop.f32.mrb[14].mxu1  ;;  %v955_v14 = vsel %vm827_vm5, %v605_v63, %v891_v5  ;;  %v889_v15 = vmul.f32 0.2, %v597_v2  ;;  %vm857_vm8 = vcmp.gt.f32.partialorder %v725_v6, 0.0  ;;  %v612_v17 = vpop.f32.mrb[15].mxu0 }
 0x101   : > { %v921_v16 = vmul.f32 0.2, %v725_v6  ;;  %v1619_v18 = vpack.c.bf16 %v955_v14, %v954_v58  ;;  %v987_v19 = vsel %vm859_vm6, %v733_v1, %v923_v11  ;;  %vm830_vm9 = vcmp.gt.f32.partialorder %v618_v7, 0.0  ;;  %v740_v21 = vpop.f32.mrb[15].mxu1 }
 0x102   : > { %v894_v20 = vmul.f32 0.2, %v618_v7  ;;  %v1699_v22 = vpack.c.bf16 %v987_v19, %v986_v61  ;;  %v953_v23 = vsel %vm825_vm7, %v597_v2, %v889_v15  ;;  %v746_v25 = vadd.f32 %v1869_v4, %v2058_v35 }
 0x103   : > { %v985_v24 = vsel %vm857_vm8, %v725_v6, %v921_v16  ;;  %1755 = vst [vmem:[%s2075_s29 + $0x28] sm:$0xff] %v1619_v18   ;;  %v1614_v26 = vpack.c.bf16 %v953_v23, %v952_v62  ;;  %v610_v29 = vadd.f32 %v2058_v35, %v609_v8  ;;  %v738_v31 = vadd.f32 %v2058_v35, %v737_v9 }
 0x104   : > { %v1694_v27 = vpack.c.bf16 %v985_v24, %v984_v10  ;;  %v958_v28 = vsel %vm830_vm9, %v618_v7, %v894_v20  ;;  %1771 = vst [vmem:[%s2075_s29 + $0xa8] sm:$0xff] %v1699_v22   ;;  %vm862_vm10 = vcmp.gt.f32.partialorder %v746_v25, 0.0  ;;  %v926_v30 = vmul.f32 0.2, %v746_v25 }
 0x105   : > { %v621_v32 = vadd.f32 %v1838_v12, %v2058_v35  ;;  %1754 = vst [vmem:[%s2075_s29 + $0x20] sm:$0xff] %v1614_v26   ;;  %vm828_vm11 = vcmp.gt.f32.partialorder %v610_v29, 0.0  ;;  %v892_v33 = vmul.f32 0.2, %v610_v29  ;;  %v749_v34 = vadd.f32 %v1870_v13, %v2058_v35  ;;  %v1841_v37 = vpop.f32.mrb[16].mxu0 }
 0x106   : > { %1770 = vst [vmem:[%s2075_s29 + $0xa0] sm:$0xff] %v1694_v27   ;;  %v613_v36 = vadd.f32 %v2058_v35, %v612_v17  ;;  %v1873_v38 = vpop.f32.mrb[16].mxu1  ;;  %v990_v39 = vsel %vm862_vm10, %v746_v25, %v926_v30  ;;  %vm860_vm12 = vcmp.gt.f32.partialorder %v738_v31, 0.0  ;;  %v924_v40 = vmul.f32 0.2, %v738_v31  ;;  %v625_v41 = vpop.f32.mrb[17].mxu0 }
 0x107   : > { %vm831_vm13 = vcmp.gt.f32.partialorder %v621_v32, 0.0  ;;  %v753_v42 = vpop.f32.mrb[17].mxu1  ;;  %v956_v43 = vsel %vm828_vm11, %v610_v29, %v892_v33  ;;  %v895_v44 = vmul.f32 0.2, %v621_v32  ;;  %vm863_vm14 = vcmp.gt.f32.partialorder %v749_v34, 0.0  ;;  %v1842_v46 = vpop.f32.mrb[18].mxu0 }
 0x108   : > { %v927_v45 = vmul.f32 0.2, %v749_v34  ;;  %v988_v47 = vsel %vm860_vm12, %v738_v31, %v924_v40  ;;  %vm829_vm15 = vcmp.gt.f32.partialorder %v613_v36, 0.0  ;;  %v893_v48 = vmul.f32 0.2, %v613_v36  ;;  %v1874_v50 = vpop.f32.mrb[18].mxu1 }
 0x109   : > { %v741_v49 = vadd.f32 %v2058_v35, %v740_v21  ;;  %v628_v51 = vpop.f32.mrb[19].mxu0  ;;  %v959_v52 = vsel %vm831_vm13, %v621_v32, %v895_v44  ;;  %v634_v54 = vadd.f32 %v1841_v37, %v2058_v35  ;;  %v762_v55 = vadd.f32 %v1873_v38, %v2058_v35  ;;  %v756_v56 = vpop.f32.mrb[19].mxu1 }
 0x10a   : > { %v991_v53 = vsel %vm863_vm14, %v749_v34, %v927_v45  ;;  %v1629_v57 = vpack.c.bf16 %v959_v52, %v958_v28  ;;  %v957_v59 = vsel %vm829_vm15, %v613_v36, %v893_v48  ;;  %v626_v0 = vadd.f32 %v2058_v35, %v625_v41 }
 0x10b   : > { %v1709_v58 = vpack.c.bf16 %v991_v53, %v990_v39  ;;  %vm861_vm0 = vcmp.gt.f32.partialorder %v741_v49, 0.0  ;;  %v1624_v60 = vpack.c.bf16 %v957_v59, %v956_v43  ;;  %v925_v61 = vmul.f32 0.2, %v741_v49 }
 0x10c   : > { %vm834_vm1 = vcmp.gt.f32.partialorder %v634_v54, 0.0  ;;  %v898_v62 = vmul.f32 0.2, %v634_v54  ;;  %1757 = vst [vmem:[%s2075_s29 + $0x38] sm:$0xff] %v1629_v57   ;;  %vm866_vm2 = vcmp.gt.f32.partialorder %v762_v55, 0.0  ;;  %v754_v1 = vadd.f32 %v2058_v35, %v753_v42 }
 0x10d   : > { %1773 = vst [vmem:[%s2075_s29 + $0xb8] sm:$0xff] %v1709_v58   ;;  %v930_v63 = vmul.f32 0.2, %v762_v55  ;;  %1756 = vst [vmem:[%s2075_s29 + $0x30] sm:$0xff] %v1624_v60   ;;  %v989_v2 = vsel %vm861_vm0, %v741_v49, %v925_v61  ;;  %v637_v4 = vadd.f32 %v1842_v46, %v2058_v35  ;;  %v765_v5 = vadd.f32 %v1874_v50, %v2058_v35  ;;  %v1845_v6 = vpop.f32.mrb[20].mxu0 }
 0x10e   : > { %v962_v3 = vsel %vm834_vm1, %v634_v54, %v898_v62  ;;  %v1877_v7 = vpop.f32.mrb[20].mxu1  ;;  %v1704_v8 = vpack.c.bf16 %v989_v2, %v988_v47  ;;  %vm832_vm3 = vcmp.gt.f32.partialorder %v626_v0, 0.0  ;;  %v896_v10 = vmul.f32 0.2, %v626_v0  ;;  %v641_v11 = vpop.f32.mrb[21].mxu0 }
 0x10f   : > { %v994_v9 = vsel %vm866_vm2, %v762_v55, %v930_v63  ;;  %v769_v12 = vpop.f32.mrb[21].mxu1  ;;  %vm864_vm4 = vcmp.gt.f32.partialorder %v754_v1, 0.0  ;;  %v928_v13 = vmul.f32 0.2, %v754_v1  ;;  %vm835_vm5 = vcmp.gt.f32.partialorder %v637_v4, 0.0  ;;  %v1846_v18 = vpop.f32.mrb[22].mxu0 }
 0x110   : > { %v899_v14 = vmul.f32 0.2, %v637_v4  ;;  %1772 = vst [vmem:[%s2075_s29 + $0xb0] sm:$0xff] %v1704_v8   ;;  %v960_v15 = vsel %vm832_vm3, %v626_v0, %v896_v10  ;;  %vm867_vm6 = vcmp.gt.f32.partialorder %v765_v5, 0.0  ;;  %v931_v16 = vmul.f32 0.2, %v765_v5 }
 0x111   : > { %v629_v17 = vadd.f32 %v2058_v35, %v628_v51  ;;  %v1878_v19 = vpop.f32.mrb[22].mxu1  ;;  %v992_v20 = vsel %vm864_vm4, %v754_v1, %v928_v13  ;;  %v757_v22 = vadd.f32 %v2058_v35, %v756_v56  ;;  %v650_v23 = vadd.f32 %v1845_v6, %v2058_v35  ;;  %v644_v24 = vpop.f32.mrb[23].mxu0 }
 0x112   : > { %v963_v21 = vsel %vm835_vm5, %v637_v4, %v899_v14  ;;  %v772_v25 = vpop.f32.mrb[23].mxu1  ;;  %v995_v27 = vsel %vm867_vm6, %v765_v5, %v931_v16  ;;  %v778_v33 = vadd.f32 %v1877_v7, %v2058_v35  ;;  %v642_v34 = vadd.f32 %v2058_v35, %v641_v11 }
 0x113   : > { %v1639_v26 = vpack.c.bf16 %v963_v21, %v962_v3  ;;  %vm833_vm7 = vcmp.gt.f32.partialorder %v629_v17, 0.0  ;;  %v897_v28 = vmul.f32 0.2, %v629_v17  ;;  %v1719_v29 = vpack.c.bf16 %v995_v27, %v994_v9 }
 0x114   : > { %vm865_vm8 = vcmp.gt.f32.partialorder %v757_v22, 0.0  ;;  %v929_v30 = vmul.f32 0.2, %v757_v22  ;;  %vm838_vm9 = vcmp.gt.f32.partialorder %v650_v23, 0.0  ;;  %v902_v32 = vmul.f32 0.2, %v650_v23 }
 0x115   : > { %1759 = vst [vmem:[%s2075_s29 + $0x48] sm:$0xff] %v1639_v26   ;;  %v961_v31 = vsel %vm833_vm7, %v629_v17, %v897_v28  ;;  %1775 = vst [vmem:[%s2075_s29 + $0xc8] sm:$0xff] %v1719_v29   ;;  %v770_v38 = vadd.f32 %v2058_v35, %v769_v12  ;;  %v653_v39 = vadd.f32 %v1846_v18, %v2058_v35  ;;  %v1849_v40 = vpop.f32.mrb[24].mxu0  ;;  %vm870_vm10 = vcmp.gt.f32.partialorder %v778_v33, 0.0 }
 0x116   : > { %v1634_v36 = vpack.c.bf16 %v961_v31, %v960_v15  ;;  %v993_v37 = vsel %vm865_vm8, %v757_v22, %v929_v30  ;;  %v1881_v41 = vpop.f32.mrb[24].mxu1  ;;  %v934_v43 = vmul.f32 0.2, %v778_v33  ;;  %v657_v44 = vpop.f32.mrb[25].mxu0  ;;  %v966_v46 = vsel %vm838_vm9, %v650_v23, %v902_v32 }
 0x117   : > { %v1714_v42 = vpack.c.bf16 %v993_v37, %v992_v20  ;;  %v785_v45 = vpop.f32.mrb[25].mxu1  ;;  %vm836_vm11 = vcmp.gt.f32.partialorder %v642_v34, 0.0  ;;  %v900_v47 = vmul.f32 0.2, %v642_v34  ;;  %v932_v48 = vmul.f32 0.2, %v770_v38 }
 0x118   : > { %1758 = vst [vmem:[%s2075_s29 + $0x40] sm:$0xff] %v1634_v36   ;;  %vm868_vm12 = vcmp.gt.f32.partialorder %v770_v38, 0.0  ;;  %vm839_vm13 = vcmp.gt.f32.partialorder %v653_v39, 0.0  ;;  %v903_v49 = vmul.f32 0.2, %v653_v39  ;;  %v781_v50 = vadd.f32 %v1878_v19, %v2058_v35  ;;  %v1850_v51 = vpop.f32.mrb[26].mxu0 }
 0x119   : > { %1774 = vst [vmem:[%s2075_s29 + $0xc0] sm:$0xff] %v1714_v42   ;;  %v1882_v52 = vpop.f32.mrb[26].mxu1  ;;  %v998_v53 = vsel %vm870_vm10, %v778_v33, %v934_v43  ;;  %v964_v54 = vsel %vm836_vm11, %v642_v34, %v900_v47  ;;  %v645_v55 = vadd.f32 %v2058_v35, %v644_v24  ;;  %v773_v56 = vadd.f32 %v2058_v35, %v772_v25  ;;  %v660_v57 = vpop.f32.mrb[27].mxu0 }
 0x11a   : > { %v788_v58 = vpop.f32.mrb[27].mxu1  ;;  %v967_v59 = vsel %vm839_vm13, %v653_v39, %v903_v49  ;;  %vm871_vm14 = vcmp.gt.f32.partialorder %v781_v50, 0.0  ;;  %v935_v60 = vmul.f32 0.2, %v781_v50  ;;  %v666_v61 = vadd.f32 %v1849_v40, %v2058_v35 }
 0x11b   : > { %v1649_v62 = vpack.c.bf16 %v967_v59, %v966_v46  ;;  %vm837_vm15 = vcmp.gt.f32.partialorder %v645_v55, 0.0  ;;  %v901_v63 = vmul.f32 0.2, %v645_v55  ;;  %vm869_vm0 = vcmp.gt.f32.partialorder %v773_v56, 0.0 }
 0x11c   : > { %v999_v0 = vsel %vm871_vm14, %v781_v50, %v935_v60  ;;  %v933_v1 = vmul.f32 0.2, %v773_v56  ;;  %vm842_vm1 = vcmp.gt.f32.partialorder %v666_v61, 0.0  ;;  %v906_v2 = vmul.f32 0.2, %v666_v61 }
 0x11d   : > { %1761 = vst [vmem:[%s2075_s29 + $0x58] sm:$0xff] %v1649_v62   ;;  %v1729_v3 = vpack.c.bf16 %v999_v0, %v998_v53  ;;  %v965_v4 = vsel %vm837_vm15, %v645_v55, %v901_v63  ;;  %v794_v5 = vadd.f32 %v1881_v41, %v2058_v35  ;;  %v658_v6 = vadd.f32 %v2058_v35, %v657_v44  ;;  %v1853_v7 = vpop.f32.mrb[28].mxu0 }
 0x11e   : > { %v1885_v8 = vpop.f32.mrb[28].mxu1  ;;  %v996_v9 = vsel %vm868_vm12, %v770_v38, %v932_v48  ;;  %v1644_v10 = vpack.c.bf16 %v965_v4, %v964_v54  ;;  %v997_v11 = vsel %vm869_vm0, %v773_v56, %v933_v1  ;;  %v786_v12 = vadd.f32 %v2058_v35, %v785_v45  ;;  %v673_v13 = vpop.f32.mrb[29].mxu0 }
 0x11f   : > { %v801_v14 = vpop.f32.mrb[29].mxu1  ;;  %1777 = vst [vmem:[%s2075_s29 + $0xd8] sm:$0xff] %v1729_v3   ;;  %v1724_v15 = vpack.c.bf16 %v997_v11, %v996_v9  ;;  %vm874_vm2 = vcmp.gt.f32.partialorder %v794_v5, 0.0  ;;  %v938_v16 = vmul.f32 0.2, %v794_v5  ;;  %vm840_vm3 = vcmp.gt.f32.partialorder %v658_v6, 0.0 }
 0x120   : > { %v1854_v17 = vpop.f32.mrb[30].mxu0  ;;  %v1886_v18 = vpop.f32.mrb[30].mxu1  ;;  %1760 = vst [vmem:[%s2075_s29 + $0x50] sm:$0xff] %v1644_v10   ;;  %v970_v19 = vsel %vm842_vm1, %v666_v61, %v906_v2  ;;  %v904_v20 = vmul.f32 0.2, %v658_v6  ;;  %vm872_vm4 = vcmp.gt.f32.partialorder %v786_v12, 0.0  ;;  %v669_v21 = vadd.f32 %v1850_v51, %v2058_v35 }
 0x121   : > { %v676_v22 = vpop.f32.mrb[31].mxu0  ;;  %1776 = vst [vmem:[%s2075_s29 + $0xd0] sm:$0xff] %v1724_v15   ;;  %v936_v23 = vmul.f32 0.2, %v786_v12  ;;  %v797_v24 = vadd.f32 %v1882_v52, %v2058_v35  ;;  %v661_v25 = vadd.f32 %v2058_v35, %v660_v57  ;;  %v789_v26 = vadd.f32 %v2058_v35, %v788_v58  ;;  %v804_v27 = vpop.f32.mrb[31].mxu1 }
 0x122   : > { %v1002_v28 = vsel %vm874_vm2, %v794_v5, %v938_v16  ;;  %v968_v29 = vsel %vm840_vm3, %v658_v6, %v904_v20  ;;  %vm843_vm5 = vcmp.gt.f32.partialorder %v669_v21, 0.0  ;;  %v907_v30 = vmul.f32 0.2, %v669_v21 }
 0x123   : > { %vm875_vm6 = vcmp.gt.f32.partialorder %v797_v24, 0.0  ;;  %v939_v31 = vmul.f32 0.2, %v797_v24  ;;  %vm841_vm7 = vcmp.gt.f32.partialorder %v661_v25, 0.0  ;;  %v905_v32 = vmul.f32 0.2, %v661_v25 }
 0x124   : > { %v971_v33 = vsel %vm843_vm5, %v669_v21, %v907_v30  ;;  %vm873_vm8 = vcmp.gt.f32.partialorder %v789_v26, 0.0  ;;  %v937_v34 = vmul.f32 0.2, %v789_v26  ;;  %v682_v36 = vadd.f32 %v1853_v7, %v2058_v35 }
 0x125   : > { %v1659_v37 = vpack.c.bf16 %v971_v33, %v970_v19  ;;  %v1003_v38 = vsel %vm875_vm6, %v797_v24, %v939_v31  ;;  %v969_v39 = vsel %vm841_vm7, %v661_v25, %v905_v32  ;;  %v810_v40 = vadd.f32 %v1885_v8, %v2058_v35 }
 0x126   : > { %v1000_v41 = vsel %vm872_vm4, %v786_v12, %v936_v23  ;;  %v1739_v42 = vpack.c.bf16 %v1003_v38, %v1002_v28  ;;  %v1654_v43 = vpack.c.bf16 %v969_v39, %v968_v29  ;;  %v1001_v44 = vsel %vm873_vm8, %v789_v26, %v937_v34 }
 0x127   : > { %1763 = vst [vmem:[%s2075_s29 + $0x68] sm:$0xff] %v1659_v37   ;;  %v1734_v45 = vpack.c.bf16 %v1001_v44, %v1000_v41  ;;  %vm846_vm9 = vcmp.gt.f32.partialorder %v682_v36, 0.0  ;;  %v910_v46 = vmul.f32 0.2, %v682_v36  ;;  %v942_v47 = vmul.f32 0.2, %v810_v40 }
 0x128   : > { %1779 = vst [vmem:[%s2075_s29 + $0xe8] sm:$0xff] %v1739_v42   ;;  %1762 = vst [vmem:[%s2075_s29 + $0x60] sm:$0xff] %v1654_v43   ;;  %v674_v48 = vadd.f32 %v2058_v35, %v673_v13  ;;  %v802_v49 = vadd.f32 %v2058_v35, %v801_v14  ;;  %v685_v50 = vadd.f32 %v1854_v17, %v2058_v35  ;;  %vm878_vm10 = vcmp.gt.f32.partialorder %v810_v40, 0.0 }
 0x129   : > { %v813_v51 = vadd.f32 %v1886_v18, %v2058_v35  ;;  %1778 = vst [vmem:[%s2075_s29 + $0xe0] sm:$0xff] %v1734_v45   ;;  %v677_v52 = vadd.f32 %v2058_v35, %v676_v22  ;;  %v805_v53 = vadd.f32 %v2058_v35, %v804_v27  ;;  %v974_v54 = vsel %vm846_vm9, %v682_v36, %v910_v46 }
 0x12a   : > { %vm844_vm11 = vcmp.gt.f32.partialorder %v674_v48, 0.0  ;;  %v908_v55 = vmul.f32 0.2, %v674_v48  ;;  %v940_v56 = vmul.f32 0.2, %v802_v49  ;;  %vm847_vm12 = vcmp.gt.f32.partialorder %v685_v50, 0.0 }
 0x12b   : > { %v911_v57 = vmul.f32 0.2, %v685_v50  ;;  %vm879_vm13 = vcmp.gt.f32.partialorder %v813_v51, 0.0  ;;  %v943_v58 = vmul.f32 0.2, %v813_v51  ;;  %v1006_v59 = vsel %vm878_vm10, %v810_v40, %v942_v47 }
 0x12c   : > { %vm876_vm14 = vcmp.gt.f32.partialorder %v802_v49, 0.0  ;;  %vm845_vm15 = vcmp.gt.f32.partialorder %v677_v52, 0.0  ;;  %v909_v60 = vmul.f32 0.2, %v677_v52  ;;  %vm877_vm0 = vcmp.gt.f32.partialorder %v805_v53, 0.0 }
 0x12d   : > { %v975_v61 = vsel %vm847_vm12, %v685_v50, %v911_v57  ;;  %v1007_v62 = vsel %vm879_vm13, %v813_v51, %v943_v58  ;;  %v941_v35 = vmul.f32 0.2, %v805_v53  ;;  %v972_v63 = vsel %vm844_vm11, %v674_v48, %v908_v55 }
 0x12e   : > { %v1669_v0 = vpack.c.bf16 %v975_v61, %v974_v54  ;;  %v1749_v1 = vpack.c.bf16 %v1007_v62, %v1006_v59  ;;  %v973_v2 = vsel %vm845_vm15, %v677_v52, %v909_v60  ;;  %v1004_v3 = vsel %vm876_vm14, %v802_v49, %v940_v56 }
 0x12f   : > { %v1664_v4 = vpack.c.bf16 %v973_v2, %v972_v63  ;;  %v1005_v5 = vsel %vm877_vm0, %v805_v53, %v941_v35 }
 0x130   : > { %1765 = vst [vmem:[%s2075_s29 + $0x78] sm:$0xff] %v1669_v0   ;;  %1781 = vst [vmem:[%s2075_s29 + $0xf8] sm:$0xff] %v1749_v1   ;;  %v1744_v6 = vpack.c.bf16 %v1005_v5, %v1004_v3 }
 0x131   : > { %1764 = vst [vmem:[%s2075_s29 + $0x70] sm:$0xff] %v1664_v4  }
 0x132   : > { %1780 = vst [vmem:[%s2075_s29 + $0xf0] sm:$0xff] %v1744_v6  }
 0x133 PF: > { %s13_s12 = sadd.s32 1, %s1942_s12  }
 0x134   : > { %p10_p4 = scmp.ge.s32.totalorder %s13_s12, 6  }
 0x136   :  { %12 = sbr.rel (!%p10_p4) target bundleno = 1 (0x1), region = 62 }

// kernel: discriminator_forward.9
= control target key start
LH: loop header
LB: loop body
LE: loop exit
PB: predicated region body
PF: predicated region fallthrough
CT: control target
= control target key end

     0   :  { %v1131_v40 = vmov 0.0   ;;  %s1679_s1 = inlined_call_operand.vmem [shape: bf16[128,128], index: 1, kind: input, shape index: {}]   ;;  %s1680_s0 = inlined_call_operand.vmem [shape: bf16[512,128], index: 0, kind: input, shape index: {}]   ;;  %s1681_s3 = inlined_call_operand.vmem [shape: f32[1,128], index: 3, kind: output, shape index: {1}]   ;;  %s1682_s4 = inlined_call_operand.vmem [shape: f32[1,128], index: 4, kind: output, shape index: {2}]   ;;  %s1683_s2 = inlined_call_operand.vmem [shape: f32[512,128], index: 2, kind: output, shape index: {0}]  }
   0x1   :  { %v1091_v0 = vld [vmem:[%s1679_s1] sm:$0xff]   ;;  %v1092_v1 = vld [vmem:[%s1679_s1 + $0x8] sm:$0xff]   ;;  %v1093_v2 = vld [vmem:[%s1679_s1 + $0x10] sm:$0xff]   ;;  %692 = vst [vmem:[%s1681_s3] sm:$0x1] %v1131_v40 }
   0x2   :  { %994 = vmatprep.subr.bf16.mxu0 %v1091_v0  ;;  %1074 = vmatprep.subr.bf16.mxu1 %v1091_v0  ;;  %v1094_v3 = vld [vmem:[%s1679_s1 + $0x18] sm:$0xff]   ;;  %v1099_v4 = vld [vmem:[%s1680_s0] sm:$0xff]   ;;  %v1096_v6 = vld [vmem:[%s1679_s1 + $0x28] sm:$0xff]   ;;  %693 = vst [vmem:[%s1682_s4] sm:$0x1] %v1131_v40 }
   0x3   :  { %995 = vmatpush3.bf16.msra.mxu0 %v1091_v0  ;;  %1082 = vmatpush3.bf16.msra.mxu1 %v1091_v0  ;;  %v1095_v5 = vld [vmem:[%s1679_s1 + $0x20] sm:$0xff]   ;;  %v1097_v7 = vld [vmem:[%s1679_s1 + $0x30] sm:$0xff]   ;;  %v1098_v8 = vld [vmem:[%s1679_s1 + $0x38] sm:$0xff]  }
   0x4   :  { %996 = vmatprep.subr.bf16.mxu0 %v1092_v1  ;;  %1075 = vmatprep.subr.bf16.mxu1 %v1092_v1  ;;  %v1115_v9 = vld [vmem:[%s1680_s0 + $0x80] sm:$0xff]   ;;  %v1100_v10 = vld [vmem:[%s1680_s0 + $0x8] sm:$0xff]   ;;  %v1101_v11 = vld [vmem:[%s1680_s0 + $0x10] sm:$0xff]  }
   0x5   :  { %1010 = vmatprep.mubr.bf16.mxu0 %v1099_v4  ;;  %1042 = vmatprep.mubr.bf16.mxu1 %v1115_v9  ;;  %v1116_v12 = vld [vmem:[%s1680_s0 + $0x88] sm:$0xff]   ;;  %v1117_v13 = vld [vmem:[%s1680_s0 + $0x90] sm:$0xff]   ;;  %v1102_v14 = vld [vmem:[%s1680_s0 + $0x18] sm:$0xff]  }
   0x6   :  { %v1103_v15 = vld [vmem:[%s1680_s0 + $0x20] sm:$0xff]   ;;  %v1118_v16 = vld [vmem:[%s1680_s0 + $0x98] sm:$0xff]   ;;  %v1104_v18 = vld [vmem:[%s1680_s0 + $0x28] sm:$0xff]  }
   0x7   :  { %997 = vmatpush3.bf16.msra.mxu0 %v1092_v1  ;;  %1083 = vmatpush3.bf16.msra.mxu1 %v1092_v1  ;;  %v1119_v17 = vld [vmem:[%s1680_s0 + $0xa0] sm:$0xff]   ;;  %v1120_v19 = vld [vmem:[%s1680_s0 + $0xa8] sm:$0xff]   ;;  %v1105_v20 = vld [vmem:[%s1680_s0 + $0x30] sm:$0xff]  }
   0x8   :  { %998 = vmatprep.subr.bf16.mxu0 %v1093_v2  ;;  %1076 = vmatprep.subr.bf16.mxu1 %v1093_v2  ;;  %v1121_v21 = vld [vmem:[%s1680_s0 + $0xb0] sm:$0xff]   ;;  %v1106_v22 = vld [vmem:[%s1680_s0 + $0x38] sm:$0xff]   ;;  %v1107_v24 = vld [vmem:[%s1680_s0 + $0x40] sm:$0xff]  }
   0x9   :  { %v1122_v23 = vld [vmem:[%s1680_s0 + $0xb8] sm:$0xff]   ;;  %v1123_v25 = vld [vmem:[%s1680_s0 + $0xc0] sm:$0xff]   ;;  %v1108_v26 = vld [vmem:[%s1680_s0 + $0x48] sm:$0xff]  }
   0xa   :  { %v1124_v27 = vld [vmem:[%s1680_s0 + $0xc8] sm:$0xff]   ;;  %v1109_v28 = vld [vmem:[%s1680_s0 + $0x50] sm:$0xff]   ;;  %v1110_v30 = vld [vmem:[%s1680_s0 + $0x58] sm:$0xff]  }
   0xb   :  { %999 = vmatpush3.bf16.msra.mxu0 %v1093_v2  ;;  %1084 = vmatpush3.bf16.msra.mxu1 %v1093_v2  ;;  %v1125_v29 = vld [vmem:[%s1680_s0 + $0xd0] sm:$0xff]   ;;  %v1126_v31 = vld [vmem:[%s1680_s0 + $0xd8] sm:$0xff]   ;;  %v1111_v32 = vld [vmem:[%s1680_s0 + $0x60] sm:$0xff]  }
   0xc   :  { %1000 = vmatprep.subr.bf16.mxu0 %v1094_v3  ;;  %1077 = vmatprep.subr.bf16.mxu1 %v1094_v3  ;;  %v1127_v33 = vld [vmem:[%s1680_s0 + $0xe0] sm:$0xff]   ;;  %v1112_v34 = vld [vmem:[%s1680_s0 + $0x68] sm:$0xff]   ;;  %v1113_v36 = vld [vmem:[%s1680_s0 + $0x70] sm:$0xff]  }
   0xd   :  { %v1128_v35 = vld [vmem:[%s1680_s0 + $0xe8] sm:$0xff]   ;;  %v1129_v37 = vld [vmem:[%s1680_s0 + $0xf0] sm:$0xff]   ;;  %v1114_v38 = vld [vmem:[%s1680_s0 + $0x78] sm:$0xff]  }
   0xe   :  { %v1130_v39 = vld [vmem:[%s1680_s0 + $0xf8] sm:$0xff]  }
   0xf   :  { %1001 = vmatpush3.bf16.msra.mxu0 %v1094_v3  ;;  %1085 = vmatpush3.bf16.msra.mxu1 %v1094_v3 }
  0x10   :  { %1002 = vmatprep.subr.bf16.mxu0 %v1095_v5  ;;  %1078 = vmatprep.subr.bf16.mxu1 %v1095_v5 }
  0x13   :  { %1003 = vmatpush3.bf16.msra.mxu0 %v1095_v5  ;;  %1086 = vmatpush3.bf16.msra.mxu1 %v1095_v5 }
  0x14   :  { %1004 = vmatprep.subr.bf16.mxu0 %v1096_v6  ;;  %1079 = vmatprep.subr.bf16.mxu1 %v1096_v6 }
  0x17   :  { %1005 = vmatpush3.bf16.msra.mxu0 %v1096_v6  ;;  %1087 = vmatpush3.bf16.msra.mxu1 %v1096_v6 }
  0x18   :  { %1006 = vmatprep.subr.bf16.mxu0 %v1097_v7  ;;  %1080 = vmatprep.subr.bf16.mxu1 %v1097_v7 }
  0x1b   :  { %1007 = vmatpush3.bf16.msra.mxu0 %v1097_v7  ;;  %1088 = vmatpush3.bf16.msra.mxu1 %v1097_v7 }
  0x1c   :  { %1008 = vmatprep.subr.bf16.mxu0 %v1098_v8  ;;  %1081 = vmatprep.subr.bf16.mxu1 %v1098_v8 }
  0x1f   :  { %1009 = vmatpush3.bf16.msra.mxu0 %v1098_v8  ;;  %1089 = vmatpush3.bf16.msra.mxu1 %v1098_v8 }
  0x22   :  { %1011 = vmatmul.mubr.bf16.vlgmr.msra.gmra.mrb[0].mxu0 %v1100_v10  ;;  %1043 = vmatmul.mubr.bf16.vlgmr.msra.gmra.mrb[0].mxu1 %v1116_v12 }
  0x23   :  { %1014 = vmatprep.mubr.bf16.mxu0 %v1101_v11  ;;  %1046 = vmatprep.mubr.bf16.mxu1 %v1117_v13 }
  0x2a   :  { %1015 = vmatmul.mubr.bf16.gmra.mrb[4].mxu0 %v1102_v14  ;;  %1047 = vmatmul.mubr.bf16.gmra.mrb[4].mxu1 %v1118_v16 }
  0x2b   :  { %1018 = vmatprep.mubr.bf16.mxu0 %v1103_v15  ;;  %1050 = vmatprep.mubr.bf16.mxu1 %v1119_v17 }
  0x32   :  { %1019 = vmatmul.mubr.bf16.gmra.mrb[8].mxu0 %v1104_v18  ;;  %1051 = vmatmul.mubr.bf16.gmra.mrb[8].mxu1 %v1120_v19 }
  0x33   :  { %1022 = vmatprep.mubr.bf16.mxu0 %v1105_v20  ;;  %1054 = vmatprep.mubr.bf16.mxu1 %v1121_v21 }
  0x3a   :  { %1023 = vmatmul.mubr.bf16.gmra.mrb[12].mxu0 %v1106_v22  ;;  %1055 = vmatmul.mubr.bf16.gmra.mrb[12].mxu1 %v1122_v23 }
  0x3b   :  { %1026 = vmatprep.mubr.bf16.mxu0 %v1107_v24  ;;  %1058 = vmatprep.mubr.bf16.mxu1 %v1123_v25 }
  0x42   :  { %1027 = vmatmul.mubr.bf16.gmra.mrb[16].mxu0 %v1108_v26  ;;  %1059 = vmatmul.mubr.bf16.gmra.mrb[16].mxu1 %v1124_v27 }
  0x43   :  { %1030 = vmatprep.mubr.bf16.mxu0 %v1109_v28  ;;  %1062 = vmatprep.mubr.bf16.mxu1 %v1125_v29 }
  0x4a   :  { %1031 = vmatmul.mubr.bf16.gmra.mrb[20].mxu0 %v1110_v30  ;;  %1063 = vmatmul.mubr.bf16.gmra.mrb[20].mxu1 %v1126_v31 }
  0x4b   :  { %1034 = vmatprep.mubr.bf16.mxu0 %v1111_v32  ;;  %1066 = vmatprep.mubr.bf16.mxu1 %v1127_v33 }
  0x52   :  { %1035 = vmatmul.mubr.bf16.gmra.mrb[24].mxu0 %v1112_v34  ;;  %1067 = vmatmul.mubr.bf16.gmra.mrb[24].mxu1 %v1128_v35 }
  0x53   :  { %1038 = vmatprep.mubr.bf16.mxu0 %v1113_v36  ;;  %1070 = vmatprep.mubr.bf16.mxu1 %v1129_v37 }
  0x5a   :  { %1039 = vmatmul.mubr.bf16.gmra.mrb[28].mxu0 %v1114_v38  ;;  %1071 = vmatmul.mubr.bf16.gmra.mrb[28].mxu1 %v1130_v39 }
  0xf5   :  { %v1012_v41 = vpop.f32.mrb[0].mxu0  ;;  %v1283_v42 = vpop.f32.mrb[0].mxu1 }
  0xf6   :  { %626 = vst [vmem:[%s1683_s2 + $0x10] sm:$0xff] %v1012_v41  ;;  %v369_v43 = vpop.f32.mrb[1].mxu0  ;;  %658 = vst [vmem:[%s1683_s2 + $0x110] sm:$0xff] %v1283_v42  ;;  %v1292_v44 = vpop.f32.mrb[1].mxu1  ;;  %v769_v52 = vmul.f32 %v1012_v41, %v1012_v41 }
  0xf7   :  { %624 = vst [vmem:[%s1683_s2] sm:$0xff] %v369_v43  ;;  %v1013_v45 = vpop.f32.mrb[2].mxu0  ;;  %656 = vst [vmem:[%s1683_s2 + $0x100] sm:$0xff] %v1292_v44  ;;  %v1301_v46 = vpop.f32.mrb[2].mxu1  ;;  %v767_v49 = vmul.f32 %v369_v43, %v369_v43 }
  0xf8   :  { %627 = vst [vmem:[%s1683_s2 + $0x18] sm:$0xff] %v1013_v45  ;;  %v372_v47 = vpop.f32.mrb[3].mxu0  ;;  %659 = vst [vmem:[%s1683_s2 + $0x118] sm:$0xff] %v1301_v46  ;;  %v1310_v48 = vpop.f32.mrb[3].mxu1  ;;  %v770_v55 = vmul.f32 %v1013_v45, %v1013_v45 }
  0xf9   :  { %625 = vst [vmem:[%s1683_s2 + $0x8] sm:$0xff] %v372_v47  ;;  %v695_v50 = vadd.f32 %v372_v47, %v369_v43  ;;  %v768_v51 = vmul.f32 %v372_v47, %v372_v47  ;;  %657 = vst [vmem:[%s1683_s2 + $0x108] sm:$0xff] %v1310_v48 }
  0xfb   :  { %v696_v53 = vadd.f32 %v1012_v41, %v695_v50  ;;  %v831_v54 = vadd.f32 %v768_v51, %v767_v49 }
  0xfd   :  { %v832_v56 = vadd.f32 %v831_v54, %v769_v52  ;;  %v1016_v57 = vpop.f32.mrb[4].mxu0  ;;  %v697_v58 = vadd.f32 %v1013_v45, %v696_v53  ;;  %v1319_v59 = vpop.f32.mrb[4].mxu1 }
  0xfe   :  { %630 = vst [vmem:[%s1683_s2 + $0x30] sm:$0xff] %v1016_v57  ;;  %v385_v60 = vpop.f32.mrb[5].mxu0  ;;  %662 = vst [vmem:[%s1683_s2 + $0x130] sm:$0xff] %v1319_v59  ;;  %v1328_v61 = vpop.f32.mrb[5].mxu1  ;;  %v773_v8 = vmul.f32 %v1016_v57, %v1016_v57 }
  0xff   :  { %628 = vst [vmem:[%s1683_s2 + $0x20] sm:$0xff] %v385_v60  ;;  %v698_v62 = vadd.f32 %v697_v58, %v385_v60  ;;  %v771_v63 = vmul.f32 %v385_v60, %v385_v60  ;;  %v833_v0 = vadd.f32 %v832_v56, %v770_v55  ;;  %v1017_v1 = vpop.f32.mrb[6].mxu0  ;;  %660 = vst [vmem:[%s1683_s2 + $0x120] sm:$0xff] %v1328_v61  ;;  %v1337_v2 = vpop.f32.mrb[6].mxu1 }
 0x100   :  { %631 = vst [vmem:[%s1683_s2 + $0x38] sm:$0xff] %v1017_v1  ;;  %v388_v3 = vpop.f32.mrb[7].mxu0  ;;  %663 = vst [vmem:[%s1683_s2 + $0x138] sm:$0xff] %v1337_v2  ;;  %v1346_v4 = vpop.f32.mrb[7].mxu1  ;;  %v774_v11 = vmul.f32 %v1017_v1, %v1017_v1 }
 0x101   :  { %v834_v5 = vadd.f32 %v833_v0, %v771_v63  ;;  %629 = vst [vmem:[%s1683_s2 + $0x28] sm:$0xff] %v388_v3  ;;  %v699_v6 = vadd.f32 %v698_v62, %v388_v3  ;;  %v772_v7 = vmul.f32 %v388_v3, %v388_v3  ;;  %661 = vst [vmem:[%s1683_s2 + $0x128] sm:$0xff] %v1346_v4 }
 0x103   :  { %v700_v9 = vadd.f32 %v1016_v57, %v699_v6  ;;  %v835_v10 = vadd.f32 %v834_v5, %v772_v7 }
 0x105   :  { %v836_v12 = vadd.f32 %v835_v10, %v773_v8  ;;  %v1020_v13 = vpop.f32.mrb[8].mxu0  ;;  %v701_v14 = vadd.f32 %v1017_v1, %v700_v9  ;;  %v1355_v15 = vpop.f32.mrb[8].mxu1 }
 0x106   :  { %634 = vst [vmem:[%s1683_s2 + $0x50] sm:$0xff] %v1020_v13  ;;  %v401_v16 = vpop.f32.mrb[9].mxu0  ;;  %666 = vst [vmem:[%s1683_s2 + $0x150] sm:$0xff] %v1355_v15  ;;  %v1364_v17 = vpop.f32.mrb[9].mxu1  ;;  %v777_v28 = vmul.f32 %v1020_v13, %v1020_v13 }
 0x107   :  { %632 = vst [vmem:[%s1683_s2 + $0x40] sm:$0xff] %v401_v16  ;;  %v702_v18 = vadd.f32 %v701_v14, %v401_v16  ;;  %v775_v19 = vmul.f32 %v401_v16, %v401_v16  ;;  %v837_v20 = vadd.f32 %v836_v12, %v774_v11  ;;  %v1021_v21 = vpop.f32.mrb[10].mxu0  ;;  %664 = vst [vmem:[%s1683_s2 + $0x140] sm:$0xff] %v1364_v17  ;;  %v1373_v22 = vpop.f32.mrb[10].mxu1 }
 0x108   :  { %635 = vst [vmem:[%s1683_s2 + $0x58] sm:$0xff] %v1021_v21  ;;  %v404_v23 = vpop.f32.mrb[11].mxu0  ;;  %667 = vst [vmem:[%s1683_s2 + $0x158] sm:$0xff] %v1373_v22  ;;  %v1382_v24 = vpop.f32.mrb[11].mxu1  ;;  %v778_v31 = vmul.f32 %v1021_v21, %v1021_v21 }
 0x109   :  { %v838_v25 = vadd.f32 %v837_v20, %v775_v19  ;;  %633 = vst [vmem:[%s1683_s2 + $0x48] sm:$0xff] %v404_v23  ;;  %v703_v26 = vadd.f32 %v702_v18, %v404_v23  ;;  %v776_v27 = vmul.f32 %v404_v23, %v404_v23  ;;  %665 = vst [vmem:[%s1683_s2 + $0x148] sm:$0xff] %v1382_v24 }
 0x10b   :  { %v704_v29 = vadd.f32 %v1020_v13, %v703_v26  ;;  %v839_v30 = vadd.f32 %v838_v25, %v776_v27 }
 0x10d   :  { %v840_v32 = vadd.f32 %v839_v30, %v777_v28  ;;  %v1024_v33 = vpop.f32.mrb[12].mxu0  ;;  %v705_v34 = vadd.f32 %v1021_v21, %v704_v29  ;;  %v1391_v35 = vpop.f32.mrb[12].mxu1 }
 0x10e   :  { %638 = vst [vmem:[%s1683_s2 + $0x70] sm:$0xff] %v1024_v33  ;;  %v417_v36 = vpop.f32.mrb[13].mxu0  ;;  %670 = vst [vmem:[%s1683_s2 + $0x170] sm:$0xff] %v1391_v35  ;;  %v1400_v37 = vpop.f32.mrb[13].mxu1  ;;  %v781_v52 = vmul.f32 %v1024_v33, %v1024_v33 }
 0x10f   :  { %636 = vst [vmem:[%s1683_s2 + $0x60] sm:$0xff] %v417_v36  ;;  %v706_v38 = vadd.f32 %v705_v34, %v417_v36  ;;  %v779_v39 = vmul.f32 %v417_v36, %v417_v36  ;;  %v841_v40 = vadd.f32 %v840_v32, %v778_v31  ;;  %v1025_v41 = vpop.f32.mrb[14].mxu0  ;;  %668 = vst [vmem:[%s1683_s2 + $0x160] sm:$0xff] %v1400_v37  ;;  %v1409_v43 = vpop.f32.mrb[14].mxu1 }
 0x110   :  { %639 = vst [vmem:[%s1683_s2 + $0x78] sm:$0xff] %v1025_v41  ;;  %v420_v45 = vpop.f32.mrb[15].mxu0  ;;  %671 = vst [vmem:[%s1683_s2 + $0x178] sm:$0xff] %v1409_v43  ;;  %v1418_v47 = vpop.f32.mrb[15].mxu1  ;;  %v782_v55 = vmul.f32 %v1025_v41, %v1025_v41 }
 0x111   :  { %v842_v49 = vadd.f32 %v841_v40, %v779_v39  ;;  %637 = vst [vmem:[%s1683_s2 + $0x68] sm:$0xff] %v420_v45  ;;  %v707_v50 = vadd.f32 %v706_v38, %v420_v45  ;;  %v780_v51 = vmul.f32 %v420_v45, %v420_v45  ;;  %669 = vst [vmem:[%s1683_s2 + $0x168] sm:$0xff] %v1418_v47 }
 0x113   :  { %v708_v53 = vadd.f32 %v1024_v33, %v707_v50  ;;  %v843_v54 = vadd.f32 %v842_v49, %v780_v51 }
 0x115   :  { %v844_v56 = vadd.f32 %v843_v54, %v781_v52  ;;  %v1028_v57 = vpop.f32.mrb[16].mxu0  ;;  %v709_v58 = vadd.f32 %v1025_v41, %v708_v53  ;;  %v1427_v60 = vpop.f32.mrb[16].mxu1 }
 0x116   :  { %642 = vst [vmem:[%s1683_s2 + $0x90] sm:$0xff] %v1028_v57  ;;  %v433_v62 = vpop.f32.mrb[17].mxu0  ;;  %674 = vst [vmem:[%s1683_s2 + $0x190] sm:$0xff] %v1427_v60  ;;  %v1436_v63 = vpop.f32.mrb[17].mxu1  ;;  %v785_v12 = vmul.f32 %v1028_v57, %v1028_v57 }
 0x117   :  { %640 = vst [vmem:[%s1683_s2 + $0x80] sm:$0xff] %v433_v62  ;;  %v710_v0 = vadd.f32 %v709_v58, %v433_v62  ;;  %v783_v1 = vmul.f32 %v433_v62, %v433_v62  ;;  %v845_v3 = vadd.f32 %v844_v56, %v782_v55  ;;  %v1029_v5 = vpop.f32.mrb[18].mxu0  ;;  %672 = vst [vmem:[%s1683_s2 + $0x180] sm:$0xff] %v1436_v63  ;;  %v1445_v6 = vpop.f32.mrb[18].mxu1 }
 0x118   :  { %643 = vst [vmem:[%s1683_s2 + $0x98] sm:$0xff] %v1029_v5  ;;  %v436_v7 = vpop.f32.mrb[19].mxu0  ;;  %675 = vst [vmem:[%s1683_s2 + $0x198] sm:$0xff] %v1445_v6  ;;  %v1454_v8 = vpop.f32.mrb[19].mxu1  ;;  %v786_v16 = vmul.f32 %v1029_v5, %v1029_v5 }
 0x119   :  { %v846_v9 = vadd.f32 %v845_v3, %v783_v1  ;;  %641 = vst [vmem:[%s1683_s2 + $0x88] sm:$0xff] %v436_v7  ;;  %v711_v10 = vadd.f32 %v710_v0, %v436_v7  ;;  %v784_v11 = vmul.f32 %v436_v7, %v436_v7  ;;  %673 = vst [vmem:[%s1683_s2 + $0x188] sm:$0xff] %v1454_v8 }
 0x11b   :  { %v712_v13 = vadd.f32 %v1028_v57, %v711_v10  ;;  %v847_v14 = vadd.f32 %v846_v9, %v784_v11 }
 0x11d   :  { %v848_v18 = vadd.f32 %v847_v14, %v785_v12  ;;  %v1032_v19 = vpop.f32.mrb[20].mxu0  ;;  %v713_v20 = vadd.f32 %v1029_v5, %v712_v13  ;;  %v1463_v21 = vpop.f32.mrb[20].mxu1 }
 0x11e   :  { %646 = vst [vmem:[%s1683_s2 + $0xb0] sm:$0xff] %v1032_v19  ;;  %v449_v23 = vpop.f32.mrb[21].mxu0  ;;  %678 = vst [vmem:[%s1683_s2 + $0x1b0] sm:$0xff] %v1463_v21  ;;  %v1472_v25 = vpop.f32.mrb[21].mxu1  ;;  %v789_v38 = vmul.f32 %v1032_v19, %v1032_v19 }
 0x11f   :  { %644 = vst [vmem:[%s1683_s2 + $0xa0] sm:$0xff] %v449_v23  ;;  %v714_v26 = vadd.f32 %v713_v20, %v449_v23  ;;  %v787_v27 = vmul.f32 %v449_v23, %v449_v23  ;;  %v849_v28 = vadd.f32 %v848_v18, %v786_v16  ;;  %v1033_v29 = vpop.f32.mrb[22].mxu0  ;;  %676 = vst [vmem:[%s1683_s2 + $0x1a0] sm:$0xff] %v1472_v25  ;;  %v1481_v30 = vpop.f32.mrb[22].mxu1 }
 0x120   :  { %647 = vst [vmem:[%s1683_s2 + $0xb8] sm:$0xff] %v1033_v29  ;;  %v452_v31 = vpop.f32.mrb[23].mxu0  ;;  %679 = vst [vmem:[%s1683_s2 + $0x1b8] sm:$0xff] %v1481_v30  ;;  %v1490_v32 = vpop.f32.mrb[23].mxu1  ;;  %v790_v41 = vmul.f32 %v1033_v29, %v1033_v29 }
 0x121   :  { %v850_v33 = vadd.f32 %v849_v28, %v787_v27  ;;  %645 = vst [vmem:[%s1683_s2 + $0xa8] sm:$0xff] %v452_v31  ;;  %v715_v34 = vadd.f32 %v714_v26, %v452_v31  ;;  %v788_v36 = vmul.f32 %v452_v31, %v452_v31  ;;  %677 = vst [vmem:[%s1683_s2 + $0x1a8] sm:$0xff] %v1490_v32 }
 0x123   :  { %v716_v39 = vadd.f32 %v1032_v19, %v715_v34  ;;  %v851_v40 = vadd.f32 %v850_v33, %v788_v36 }
 0x125   :  { %v852_v45 = vadd.f32 %v851_v40, %v789_v38  ;;  %v1036_v49 = vpop.f32.mrb[24].mxu0  ;;  %v717_v50 = vadd.f32 %v1033_v29, %v716_v39  ;;  %v1499_v51 = vpop.f32.mrb[24].mxu1 }
 0x126   :  { %650 = vst [vmem:[%s1683_s2 + $0xd0] sm:$0xff] %v1036_v49  ;;  %v465_v52 = vpop.f32.mrb[25].mxu0  ;;  %682 = vst [vmem:[%s1683_s2 + $0x1d0] sm:$0xff] %v1499_v51  ;;  %v1508_v53 = vpop.f32.mrb[25].mxu1  ;;  %v793_v7 = vmul.f32 %v1036_v49, %v1036_v49 }
 0x127   :  { %648 = vst [vmem:[%s1683_s2 + $0xc0] sm:$0xff] %v465_v52  ;;  %v718_v54 = vadd.f32 %v717_v50, %v465_v52  ;;  %v791_v55 = vmul.f32 %v465_v52, %v465_v52  ;;  %v853_v56 = vadd.f32 %v852_v45, %v790_v41  ;;  %v1037_v57 = vpop.f32.mrb[26].mxu0  ;;  %680 = vst [vmem:[%s1683_s2 + $0x1c0] sm:$0xff] %v1508_v53  ;;  %v1517_v58 = vpop.f32.mrb[26].mxu1 }
 0x128   :  { %651 = vst [vmem:[%s1683_s2 + $0xd8] sm:$0xff] %v1037_v57  ;;  %v468_v62 = vpop.f32.mrb[27].mxu0  ;;  %683 = vst [vmem:[%s1683_s2 + $0x1d8] sm:$0xff] %v1517_v58  ;;  %v1526_v0 = vpop.f32.mrb[27].mxu1  ;;  %v794_v11 = vmul.f32 %v1037_v57, %v1037_v57  ;;  %v799_v50 = vmul.f32 %v1292_v44, %v1292_v44 }
 0x129   :  { %v854_v1 = vadd.f32 %v853_v56, %v791_v55  ;;  %649 = vst [vmem:[%s1683_s2 + $0xc8] sm:$0xff] %v468_v62  ;;  %v719_v3 = vadd.f32 %v718_v54, %v468_v62  ;;  %v792_v5 = vmul.f32 %v468_v62, %v468_v62  ;;  %681 = vst [vmem:[%s1683_s2 + $0x1c8] sm:$0xff] %v1526_v0 }
 0x12a   :  { %v801_v62 = vmul.f32 %v1283_v42, %v1283_v42 }
 0x12b   :  { %v720_v9 = vadd.f32 %v1036_v49, %v719_v3  ;;  %v855_v10 = vadd.f32 %v854_v1, %v792_v5  ;;  %v802_v5 = vmul.f32 %v1301_v46, %v1301_v46 }
 0x12d   :  { %v856_v12 = vadd.f32 %v855_v10, %v793_v7  ;;  %v1040_v13 = vpop.f32.mrb[28].mxu0  ;;  %v721_v14 = vadd.f32 %v1037_v57, %v720_v9  ;;  %v1535_v16 = vpop.f32.mrb[28].mxu1  ;;  %v800_v57 = vmul.f32 %v1310_v48, %v1310_v48 }
 0x12e   :  { %654 = vst [vmem:[%s1683_s2 + $0xf0] sm:$0xff] %v1040_v13  ;;  %v481_v18 = vpop.f32.mrb[29].mxu0  ;;  %686 = vst [vmem:[%s1683_s2 + $0x1f0] sm:$0xff] %v1535_v16  ;;  %v1544_v19 = vpop.f32.mrb[29].mxu1  ;;  %v797_v38 = vmul.f32 %v1040_v13, %v1040_v13 }
 0x12f   :  { %652 = vst [vmem:[%s1683_s2 + $0xe0] sm:$0xff] %v481_v18  ;;  %v722_v20 = vadd.f32 %v721_v14, %v481_v18  ;;  %v795_v23 = vmul.f32 %v481_v18, %v481_v18  ;;  %v857_v26 = vadd.f32 %v856_v12, %v794_v11  ;;  %v1041_v27 = vpop.f32.mrb[30].mxu0  ;;  %684 = vst [vmem:[%s1683_s2 + $0x1e0] sm:$0xff] %v1544_v19  ;;  %v1553_v28 = vpop.f32.mrb[30].mxu1 }
 0x130   :  { %655 = vst [vmem:[%s1683_s2 + $0xf8] sm:$0xff] %v1041_v27  ;;  %v484_v29 = vpop.f32.mrb[31].mxu0  ;;  %687 = vst [vmem:[%s1683_s2 + $0x1f8] sm:$0xff] %v1553_v28  ;;  %v1562_v31 = vpop.f32.mrb[31].mxu1  ;;  %v798_v41 = vmul.f32 %v1041_v27, %v1041_v27 }
 0x131   :  { %v858_v33 = vadd.f32 %v857_v26, %v795_v23  ;;  %653 = vst [vmem:[%s1683_s2 + $0xe8] sm:$0xff] %v484_v29  ;;  %v723_v34 = vadd.f32 %v722_v20, %v484_v29  ;;  %v796_v36 = vmul.f32 %v484_v29, %v484_v29  ;;  %685 = vst [vmem:[%s1683_s2 + $0x1e8] sm:$0xff] %v1562_v31 }
 0x133   :  { %v724_v39 = vadd.f32 %v1040_v13, %v723_v34  ;;  %v859_v40 = vadd.f32 %v858_v33, %v796_v36  ;;  %v804_v13 = vmul.f32 %v1346_v4, %v1346_v4  ;;  %v808_v33 = vmul.f32 %v1382_v24, %v1382_v24 }
 0x135   :  { %v860_v45 = vadd.f32 %v859_v40, %v797_v38  ;;  %v725_v49 = vadd.f32 %v1041_v27, %v724_v39 }
 0x137   :  { %v726_v52 = vadd.f32 %v725_v49, %v1292_v44  ;;  %v861_v54 = vadd.f32 %v860_v45, %v798_v41  ;;  %v803_v44 = vmul.f32 %v1328_v61, %v1328_v61  ;;  %v812_v49 = vmul.f32 %v1418_v47, %v1418_v47 }
 0x139   :  { %v862_v55 = vadd.f32 %v861_v54, %v799_v50  ;;  %v727_v56 = vadd.f32 %v726_v52, %v1310_v48 }
 0x13b   :  { %v728_v1 = vadd.f32 %v1283_v42, %v727_v56  ;;  %v863_v3 = vadd.f32 %v862_v55, %v800_v57  ;;  %v805_v42 = vmul.f32 %v1319_v59, %v1319_v59 }
 0x13d   :  { %v864_v7 = vadd.f32 %v863_v3, %v801_v62  ;;  %v729_v9 = vadd.f32 %v1301_v46, %v728_v1  ;;  %v806_v46 = vmul.f32 %v1337_v2, %v1337_v2  ;;  %v816_v1 = vmul.f32 %v1454_v8, %v1454_v8 }
 0x13f   :  { %v730_v10 = vadd.f32 %v729_v9, %v1328_v61  ;;  %v865_v11 = vadd.f32 %v864_v7, %v802_v5  ;;  %v807_v61 = vmul.f32 %v1364_v17, %v1364_v17 }
 0x141   :  { %v866_v12 = vadd.f32 %v865_v11, %v803_v44  ;;  %v731_v48 = vadd.f32 %v730_v10, %v1346_v4 }
 0x143   :  { %v732_v14 = vadd.f32 %v1319_v59, %v731_v48  ;;  %v867_v18 = vadd.f32 %v866_v12, %v804_v13  ;;  %v809_v59 = vmul.f32 %v1355_v15, %v1355_v15  ;;  %v820_v12 = vmul.f32 %v1490_v32, %v1490_v32 }
 0x145   :  { %v868_v20 = vadd.f32 %v867_v18, %v805_v42  ;;  %v733_v23 = vadd.f32 %v1337_v2, %v732_v14  ;;  %v810_v2 = vmul.f32 %v1373_v22, %v1373_v22 }
 0x147   :  { %v734_v26 = vadd.f32 %v733_v23, %v1364_v17  ;;  %v869_v27 = vadd.f32 %v868_v20, %v806_v46  ;;  %v811_v17 = vmul.f32 %v1400_v37, %v1400_v37  ;;  %v824_v23 = vmul.f32 %v1526_v0, %v1526_v0 }
 0x149   :  { %v870_v29 = vadd.f32 %v869_v27, %v807_v61  ;;  %v735_v4 = vadd.f32 %v734_v26, %v1382_v24 }
 0x14b   :  { %v736_v34 = vadd.f32 %v1355_v15, %v735_v4  ;;  %v871_v36 = vadd.f32 %v870_v29, %v808_v33  ;;  %v813_v15 = vmul.f32 %v1391_v35, %v1391_v35 }
 0x14d   :  { %v872_v38 = vadd.f32 %v871_v36, %v809_v59  ;;  %v737_v39 = vadd.f32 %v1373_v22, %v736_v34  ;;  %v814_v22 = vmul.f32 %v1409_v43, %v1409_v43  ;;  %v828_v34 = vmul.f32 %v1562_v31, %v1562_v31 }
 0x14f   :  { %v738_v40 = vadd.f32 %v737_v39, %v1400_v37  ;;  %v873_v41 = vadd.f32 %v872_v38, %v810_v2  ;;  %v815_v37 = vmul.f32 %v1436_v63, %v1436_v63 }
 0x151   :  { %v874_v45 = vadd.f32 %v873_v41, %v811_v17  ;;  %v739_v24 = vadd.f32 %v738_v40, %v1418_v47 }
 0x153   :  { %v740_v50 = vadd.f32 %v1391_v35, %v739_v24  ;;  %v875_v52 = vadd.f32 %v874_v45, %v812_v49  ;;  %v817_v35 = vmul.f32 %v1427_v60, %v1427_v60 }
 0x155   :  { %v876_v54 = vadd.f32 %v875_v52, %v813_v15  ;;  %v741_v55 = vadd.f32 %v1409_v43, %v740_v50  ;;  %v818_v43 = vmul.f32 %v1445_v6, %v1445_v6 }
 0x157   :  { %v742_v56 = vadd.f32 %v741_v55, %v1436_v63  ;;  %v877_v57 = vadd.f32 %v876_v54, %v814_v22  ;;  %v819_v63 = vmul.f32 %v1472_v25, %v1472_v25 }
 0x159   :  { %v878_v62 = vadd.f32 %v877_v57, %v815_v37  ;;  %v743_v47 = vadd.f32 %v742_v56, %v1454_v8 }
 0x15b   :  { %v744_v3 = vadd.f32 %v1427_v60, %v743_v47  ;;  %v879_v5 = vadd.f32 %v878_v62, %v816_v1  ;;  %v821_v60 = vmul.f32 %v1463_v21, %v1463_v21 }
 0x15d   :  { %v880_v7 = vadd.f32 %v879_v5, %v817_v35  ;;  %v745_v9 = vadd.f32 %v1445_v6, %v744_v3  ;;  %v822_v6 = vmul.f32 %v1481_v30, %v1481_v30 }
 0x15f   :  { %v746_v44 = vadd.f32 %v745_v9, %v1472_v25  ;;  %v881_v10 = vadd.f32 %v880_v7, %v818_v43  ;;  %v823_v25 = vmul.f32 %v1508_v53, %v1508_v53 }
 0x161   :  { %v882_v11 = vadd.f32 %v881_v10, %v819_v63  ;;  %v747_v8 = vadd.f32 %v746_v44, %v1490_v32 }
 0x163   :  { %v748_v48 = vadd.f32 %v1463_v21, %v747_v8  ;;  %v883_v13 = vadd.f32 %v882_v11, %v820_v12  ;;  %v825_v21 = vmul.f32 %v1499_v51, %v1499_v51 }
 0x165   :  { %v884_v42 = vadd.f32 %v883_v13, %v821_v60  ;;  %v749_v14 = vadd.f32 %v1481_v30, %v748_v48  ;;  %v826_v30 = vmul.f32 %v1517_v58, %v1517_v58 }
 0x167   :  { %v750_v18 = vadd.f32 %v749_v14, %v1508_v53  ;;  %v885_v46 = vadd.f32 %v884_v42, %v822_v6  ;;  %v827_v53 = vmul.f32 %v1544_v19, %v1544_v19 }
 0x169   :  { %v886_v20 = vadd.f32 %v885_v46, %v823_v25  ;;  %v751_v32 = vadd.f32 %v750_v18, %v1526_v0 }
 0x16b   :  { %v752_v61 = vadd.f32 %v1499_v51, %v751_v32  ;;  %v887_v26 = vadd.f32 %v886_v20, %v824_v23  ;;  %v829_v51 = vmul.f32 %v1535_v16, %v1535_v16 }
 0x16d   :  { %v888_v27 = vadd.f32 %v887_v26, %v825_v21  ;;  %v753_v29 = vadd.f32 %v1517_v58, %v752_v61  ;;  %v830_v58 = vmul.f32 %v1553_v28, %v1553_v28 }
 0x16f   :  { %v754_v4 = vadd.f32 %v753_v29, %v1544_v19  ;;  %v889_v33 = vadd.f32 %v888_v27, %v826_v30 }
 0x171   :  { %v890_v59 = vadd.f32 %v889_v33, %v827_v53  ;;  %v755_v0 = vadd.f32 %v754_v4, %v1562_v31 }
 0x173   :  { %v756_v36 = vadd.f32 %v1535_v16, %v755_v0  ;;  %v891_v2 = vadd.f32 %v890_v59, %v828_v34  ;;  %v694_v16 = vld [vmem:[%s1681_s3] sm:$0x1] }
 0x175   :  { %v757_v38 = vadd.f32 %v1553_v28, %v756_v36  ;;  %v892_v39 = vadd.f32 %v891_v2, %v829_v51  ;;  %v766_v28 = vld [vmem:[%s1682_s4] sm:$0x1] }
 0x177   :  { %v758_v19 = vrot.slane %v757_v38, 4  ;;  %v893_v17 = vadd.f32 %v892_v39, %v830_v58 }
 0x179   :  { %v759_v40 = vadd.f32 %v758_v19, %v757_v38  ;;  %v894_v41 = vrot.slane %v893_v17, 4 }
 0x17b   :  { %v760_v45 = vrot.slane %v759_v40, 2  ;;  %v895_v24 = vadd.f32 %v894_v41, %v893_v17 }
 0x17d   :  { %v761_v49 = vadd.f32 %v760_v45, %v759_v40  ;;  %v896_v31 = vrot.slane %v895_v24, 2 }
 0x17f   :  { %v762_v15 = vrot.slane %v761_v49, 1  ;;  %v897_v50 = vadd.f32 %v896_v31, %v895_v24 }
 0x181   :  { %v763_v52 = vadd.f32 %v762_v15, %v761_v49  ;;  %v898_v22 = vrot.slane %v897_v50, 1 }
 0x183   :  { %v764_v54 = vadd.f32 %v763_v52, %v694_v16  ;;  %v899_v55 = vadd.f32 %v898_v22, %v897_v50 }
 0x185   :  { %765 = vst [vmem:[%s1681_s3] sm:$0x1] %v764_v54  ;;  %v900_v37 = vadd.f32 %v899_v55, %v766_v28 }
 0x187   :  { %901 = vst [vmem:[%s1682_s4] sm:$0x1] %v900_v37 }

// kernel: discriminator_forward.10
= control target key start
LH: loop header
LB: loop body
LE: loop exit
PB: predicated region body
PF: predicated region fallthrough
CT: control target
= control target key end

     0   :  { %v98_v7 = vlaneseq  ;;  %s1536_s1 = inlined_call_operand.vmem [shape: f32[1,128], index: 1, kind: input, shape index: {}]   ;;  %s1537_s2 = inlined_call_operand.vmem [shape: f32[1,128], index: 2, kind: input, shape index: {}]   ;;  %s1538_s3 = inlined_call_operand.vmem [shape: f32[1,128], index: 3, kind: input, shape index: {}]   ;;  %s1539_s0 = inlined_call_operand.vmem [shape: f32[512,128], index: 0, kind: input, shape index: {}]   ;;  %s1540_s4 = inlined_call_operand.vmem [shape: f32[1,128], index: 4, kind: input, shape index: {}]   ;;  %s1541_s5 = inlined_call_operand.vmem [shape: bf16[512,128], index: 5, kind: output, shape index: {}]  }
   0x1   :  { %v20_v0 = vld [vmem:[%s1536_s1] sm:$0x1]  ;;  %v34_v15 = vld [vmem:[%s1539_s0 + $0x8] sm:$0xff]  ;;  %v35_v16 = vld [vmem:[%s1539_s0 + $0x10] sm:$0xff] }
   0x2   :  { %v22_v1 = vld [vmem:[%s1537_s2] sm:$0x1]  ;;  %v21_v2 = vmul.f32 0.001953125, %v20_v0  ;;  %v99_v8 = vshrl.u32 %v98_v7, 7  ;;  %v36_v17 = vld [vmem:[%s1539_s0 + $0x18] sm:$0xff]  ;;  %v38_v21 = vld [vmem:[%s1539_s0 + $0x28] sm:$0xff] }
   0x3   :  { %v23_v3 = vmul.f32 0.001953125, %v22_v1  ;;  %v26_v9 = vld [vmem:[%s1538_s3] sm:$0x1]  ;;  %v39_v22 = vld [vmem:[%s1539_s0 + $0x30] sm:$0xff]  ;;  %v40_v23 = vld [vmem:[%s1539_s0 + $0x38] sm:$0xff] }
   0x4   :  { %v24_v4 = vmul.f32 %v21_v2, %v21_v2  ;;  %v100_v10 = vsub.s32 0, %v99_v8  ;;  %v30_v13 = vld [vmem:[%s1540_s4] sm:$0x1]  ;;  %v42_v25 = vld [vmem:[%s1539_s0 + $0x48] sm:$0xff]  ;;  %v43_v26 = vld [vmem:[%s1539_s0 + $0x50] sm:$0xff] }
   0x5   :  { %v33_v14 = vld [vmem:[%s1539_s0] sm:$0xff]  ;;  %v44_v31 = vld [vmem:[%s1539_s0 + $0x58] sm:$0xff]  ;;  %v46_v33 = vld [vmem:[%s1539_s0 + $0x68] sm:$0xff] }
   0x6   :  { %v25_v5 = vsub.f32 %v23_v3, %v24_v4  ;;  %v37_v18 = vld [vmem:[%s1539_s0 + $0x20] sm:$0xff] }
   0x7   :  { %v41_v24 = vld [vmem:[%s1539_s0 + $0x40] sm:$0xff] }
   0x8   :  { %v27_v6 = vadd.f32 1e-05, %v25_v5  ;;  %v45_v32 = vld [vmem:[%s1539_s0 + $0x60] sm:$0xff] }
   0xa   :  { %1072 = vrsqrt.f32 %v27_v6 }
  0x14   :  { %v1073_v11 = vpop.eup %1072 }
  0x15   :  { %v29_v12 = vmul.f32 %v1073_v11, %v26_v9 }
  0x17   :  { %v31_v19 = vmul.f32 %v29_v12, %v21_v2  ;;  %v1131_v20 = vrot.slane %v29_v12, %v100_v10 }
  0x19   :  { %v32_v27 = vsub.f32 %v30_v13, %v31_v19  ;;  %v103_v28 = vmul.f32 %v1131_v20, %v33_v14  ;;  %v104_v29 = vmul.f32 %v1131_v20, %v34_v15  ;;  %v105_v30 = vmul.f32 %v1131_v20, %v35_v16  ;;  %v47_v16 = vld [vmem:[%s1539_s0 + $0x70] sm:$0xff] }
  0x1a   :  { %v106_v34 = vmul.f32 %v1131_v20, %v36_v17  ;;  %v107_v35 = vmul.f32 %v1131_v20, %v37_v18  ;;  %v108_v36 = vmul.f32 %v1131_v20, %v38_v21  ;;  %v109_v37 = vmul.f32 %v1131_v20, %v39_v22 }
  0x1b   :  { %v1167_v38 = vrot.slane %v32_v27, %v100_v10  ;;  %v110_v39 = vmul.f32 %v1131_v20, %v40_v23  ;;  %v111_v40 = vmul.f32 %v1131_v20, %v41_v24  ;;  %v112_v41 = vmul.f32 %v1131_v20, %v42_v25  ;;  %v48_v24 = vld [vmem:[%s1539_s0 + $0x78] sm:$0xff]  ;;  %v49_v25 = vld [vmem:[%s1539_s0 + $0x80] sm:$0xff] }
  0x1c   :  { %v113_v42 = vmul.f32 %v1131_v20, %v43_v26  ;;  %v114_v43 = vmul.f32 %v1131_v20, %v44_v31  ;;  %v115_v44 = vmul.f32 %v1131_v20, %v45_v32  ;;  %v116_v45 = vmul.f32 %v1131_v20, %v46_v33  ;;  %v51_v31 = vld [vmem:[%s1539_s0 + $0x90] sm:$0xff]  ;;  %v52_v32 = vld [vmem:[%s1539_s0 + $0x98] sm:$0xff] }
  0x1d   :  { %v173_v46 = vadd.f32 %v1167_v38, %v103_v28  ;;  %v174_v47 = vadd.f32 %v1167_v38, %v104_v29  ;;  %v175_v48 = vadd.f32 %v1167_v38, %v105_v30  ;;  %v176_v49 = vadd.f32 %v1167_v38, %v106_v34  ;;  %v50_v30 = vld [vmem:[%s1539_s0 + $0x88] sm:$0xff] }
  0x1e   :  { %v177_v50 = vadd.f32 %v1167_v38, %v107_v35  ;;  %v178_v51 = vadd.f32 %v1167_v38, %v108_v36  ;;  %v179_v52 = vadd.f32 %v1167_v38, %v109_v37  ;;  %v180_v53 = vadd.f32 %v1167_v38, %v110_v39 }
  0x1f   :  { %vm237_vm0 = vcmp.gt.f32.partialorder %v173_v46, 0.0  ;;  %vm238_vm1 = vcmp.gt.f32.partialorder %v174_v47, 0.0  ;;  %v301_v54 = vmul.f32 0.2, %v173_v46  ;;  %v302_v55 = vmul.f32 0.2, %v174_v47 }
  0x20   :  { %vm239_vm2 = vcmp.gt.f32.partialorder %v175_v48, 0.0  ;;  %vm240_vm3 = vcmp.gt.f32.partialorder %v176_v49, 0.0  ;;  %v303_v56 = vmul.f32 0.2, %v175_v48  ;;  %v304_v57 = vmul.f32 0.2, %v176_v49 }
  0x21   :  { %v365_v58 = vsel %vm237_vm0, %v173_v46, %v301_v54  ;;  %v366_v59 = vsel %vm238_vm1, %v174_v47, %v302_v55  ;;  %vm241_vm4 = vcmp.gt.f32.partialorder %v177_v50, 0.0  ;;  %vm242_vm5 = vcmp.gt.f32.partialorder %v178_v51, 0.0  ;;  %v53_v54 = vld [vmem:[%s1539_s0 + $0xa0] sm:$0xff]  ;;  %v54_v55 = vld [vmem:[%s1539_s0 + $0xa8] sm:$0xff] }
  0x22   :  { %v884_v60 = vpack.c.bf16 %v366_v59, %v365_v58  ;;  %v367_v61 = vsel %vm239_vm2, %v175_v48, %v303_v56  ;;  %v368_v62 = vsel %vm240_vm3, %v176_v49, %v304_v57  ;;  %v305_v63 = vmul.f32 0.2, %v177_v50  ;;  %v55_v56 = vld [vmem:[%s1539_s0 + $0xb0] sm:$0xff] }
  0x23   :  { %v889_v0 = vpack.c.bf16 %v368_v62, %v367_v61  ;;  %v306_v1 = vmul.f32 0.2, %v178_v51  ;;  %vm243_vm6 = vcmp.gt.f32.partialorder %v179_v52, 0.0  ;;  %vm244_vm7 = vcmp.gt.f32.partialorder %v180_v53, 0.0  ;;  %v56_v61 = vld [vmem:[%s1539_s0 + $0xb8] sm:$0xff]  ;;  %v57_v62 = vld [vmem:[%s1539_s0 + $0xc0] sm:$0xff] }
  0x24   :  { %885 = vst [vmem:[%s1541_s5] sm:$0xff] %v884_v60   ;;  %v369_v2 = vsel %vm241_vm4, %v177_v50, %v305_v63  ;;  %v307_v3 = vmul.f32 0.2, %v179_v52  ;;  %v308_v4 = vmul.f32 0.2, %v180_v53  ;;  %v181_v5 = vadd.f32 %v1167_v38, %v111_v40 }
  0x25   :  { %1041 = vst [vmem:[%s1541_s5 + $0x8] sm:$0xff] %v889_v0   ;;  %v370_v6 = vsel %vm242_vm5, %v178_v51, %v306_v1  ;;  %v182_v7 = vadd.f32 %v1167_v38, %v112_v41  ;;  %v183_v8 = vadd.f32 %v1167_v38, %v113_v42  ;;  %v184_v9 = vadd.f32 %v1167_v38, %v114_v43 }
  0x26   :  { %v894_v10 = vpack.c.bf16 %v370_v6, %v369_v2  ;;  %v371_v11 = vsel %vm243_vm6, %v179_v52, %v307_v3  ;;  %v372_v12 = vsel %vm244_vm7, %v180_v53, %v308_v4  ;;  %vm245_vm8 = vcmp.gt.f32.partialorder %v181_v5, 0.0  ;;  %v58_v3 = vld [vmem:[%s1539_s0 + $0xc8] sm:$0xff] }
  0x27   :  { %v899_v13 = vpack.c.bf16 %v372_v12, %v371_v11  ;;  %vm246_vm9 = vcmp.gt.f32.partialorder %v182_v7, 0.0  ;;  %v309_v14 = vmul.f32 0.2, %v181_v5  ;;  %v310_v15 = vmul.f32 0.2, %v182_v7 }
  0x28   :  { %1042 = vst [vmem:[%s1541_s5 + $0x10] sm:$0xff] %v894_v10   ;;  %vm247_vm10 = vcmp.gt.f32.partialorder %v183_v8, 0.0  ;;  %vm248_vm11 = vcmp.gt.f32.partialorder %v184_v9, 0.0  ;;  %v311_v17 = vmul.f32 0.2, %v183_v8  ;;  %v185_v22 = vadd.f32 %v1167_v38, %v115_v44 }
  0x29   :  { %v312_v18 = vmul.f32 0.2, %v184_v9  ;;  %1043 = vst [vmem:[%s1541_s5 + $0x18] sm:$0xff] %v899_v13   ;;  %v373_v19 = vsel %vm245_vm8, %v181_v5, %v309_v14  ;;  %v374_v21 = vsel %vm246_vm9, %v182_v7, %v310_v15  ;;  %v186_v23 = vadd.f32 %v1167_v38, %v116_v45 }
  0x2a   :  { %v904_v26 = vpack.c.bf16 %v374_v21, %v373_v19  ;;  %v375_v27 = vsel %vm247_vm10, %v183_v8, %v311_v17  ;;  %v117_v29 = vmul.f32 %v1131_v20, %v47_v16  ;;  %vm249_vm12 = vcmp.gt.f32.partialorder %v185_v22, 0.0  ;;  %v59_v8 = vld [vmem:[%s1539_s0 + $0xd0] sm:$0xff]  ;;  %v60_v21 = vld [vmem:[%s1539_s0 + $0xd8] sm:$0xff] }
  0x2b   :  { %v376_v28 = vsel %vm248_vm11, %v184_v9, %v312_v18  ;;  %vm250_vm13 = vcmp.gt.f32.partialorder %v186_v23, 0.0  ;;  %v313_v34 = vmul.f32 0.2, %v185_v22  ;;  %v314_v35 = vmul.f32 0.2, %v186_v23 }
  0x2c   :  { %v909_v33 = vpack.c.bf16 %v376_v28, %v375_v27  ;;  %1044 = vst [vmem:[%s1541_s5 + $0x20] sm:$0xff] %v904_v26   ;;  %v118_v36 = vmul.f32 %v1131_v20, %v48_v24  ;;  %v187_v37 = vadd.f32 %v1167_v38, %v117_v29  ;;  %v119_v39 = vmul.f32 %v1131_v20, %v49_v25 }
  0x2d   :  { %v377_v40 = vsel %vm249_vm12, %v185_v22, %v313_v34  ;;  %v120_v41 = vmul.f32 %v1131_v20, %v50_v30  ;;  %v121_v42 = vmul.f32 %v1131_v20, %v51_v31  ;;  %v122_v43 = vmul.f32 %v1131_v20, %v52_v32  ;;  %v61_v30 = vld [vmem:[%s1539_s0 + $0xe0] sm:$0xff]  ;;  %v62_v31 = vld [vmem:[%s1539_s0 + $0xe8] sm:$0xff] }
  0x2e   :  { %1045 = vst [vmem:[%s1541_s5 + $0x28] sm:$0xff] %v909_v33   ;;  %v378_v44 = vsel %vm250_vm13, %v186_v23, %v314_v35  ;;  %v188_v45 = vadd.f32 %v1167_v38, %v118_v36  ;;  %vm251_vm14 = vcmp.gt.f32.partialorder %v187_v37, 0.0  ;;  %v315_v46 = vmul.f32 0.2, %v187_v37  ;;  %v63_v36 = vld [vmem:[%s1539_s0 + $0xf0] sm:$0xff] }
  0x2f   :  { %v914_v47 = vpack.c.bf16 %v378_v44, %v377_v40  ;;  %v189_v48 = vadd.f32 %v1167_v38, %v119_v39  ;;  %v190_v49 = vadd.f32 %v1167_v38, %v120_v41  ;;  %v191_v50 = vadd.f32 %v1167_v38, %v121_v42 }
  0x30   :  { %vm252_vm15 = vcmp.gt.f32.partialorder %v188_v45, 0.0  ;;  %v316_v51 = vmul.f32 0.2, %v188_v45  ;;  %v379_v52 = vsel %vm251_vm14, %v187_v37, %v315_v46  ;;  %v192_v53 = vadd.f32 %v1167_v38, %v122_v43  ;;  %v64_v37 = vld [vmem:[%s1539_s0 + $0xf8] sm:$0xff] }
  0x31   :  { %1046 = vst [vmem:[%s1541_s5 + $0x30] sm:$0xff] %v914_v47   ;;  %vm253_vm0 = vcmp.gt.f32.partialorder %v189_v48, 0.0  ;;  %vm254_vm1 = vcmp.gt.f32.partialorder %v190_v49, 0.0  ;;  %v317_v57 = vmul.f32 0.2, %v189_v48  ;;  %vm255_vm2 = vcmp.gt.f32.partialorder %v191_v50, 0.0 }
  0x32   :  { %v318_v58 = vmul.f32 0.2, %v190_v49  ;;  %v380_v59 = vsel %vm252_vm15, %v188_v45, %v316_v51  ;;  %vm256_vm3 = vcmp.gt.f32.partialorder %v192_v53, 0.0  ;;  %v319_v60 = vmul.f32 0.2, %v191_v50 }
  0x33   :  { %v919_v63 = vpack.c.bf16 %v380_v59, %v379_v52  ;;  %v381_v0 = vsel %vm253_vm0, %v189_v48, %v317_v57  ;;  %v320_v2 = vmul.f32 0.2, %v192_v53  ;;  %v123_v6 = vmul.f32 %v1131_v20, %v53_v54  ;;  %v65_v59 = vld [vmem:[%s1539_s0 + $0x100] sm:$0xff] }
  0x34   :  { %v382_v1 = vsel %vm254_vm1, %v190_v49, %v318_v58  ;;  %v383_v5 = vsel %vm255_vm2, %v191_v50, %v319_v60  ;;  %v124_v7 = vmul.f32 %v1131_v20, %v54_v55  ;;  %v125_v10 = vmul.f32 %v1131_v20, %v55_v56  ;;  %v66_v60 = vld [vmem:[%s1539_s0 + $0x108] sm:$0xff] }
  0x35   :  { %v924_v4 = vpack.c.bf16 %v382_v1, %v381_v0  ;;  %1047 = vst [vmem:[%s1541_s5 + $0x38] sm:$0xff] %v919_v63   ;;  %v384_v9 = vsel %vm256_vm3, %v192_v53, %v320_v2  ;;  %v126_v11 = vmul.f32 %v1131_v20, %v56_v61  ;;  %v127_v12 = vmul.f32 %v1131_v20, %v57_v62  ;;  %v67_v63 = vld [vmem:[%s1539_s0 + $0x110] sm:$0xff]  ;;  %v68_v0 = vld [vmem:[%s1539_s0 + $0x118] sm:$0xff] }
  0x36   :  { %v929_v13 = vpack.c.bf16 %v384_v9, %v383_v5  ;;  %v193_v14 = vadd.f32 %v1167_v38, %v123_v6  ;;  %v194_v15 = vadd.f32 %v1167_v38, %v124_v7  ;;  %v128_v16 = vmul.f32 %v1131_v20, %v58_v3  ;;  %v70_v9 = vld [vmem:[%s1539_s0 + $0x128] sm:$0xff] }
  0x37   :  { %1048 = vst [vmem:[%s1541_s5 + $0x40] sm:$0xff] %v924_v4   ;;  %v195_v17 = vadd.f32 %v1167_v38, %v125_v10  ;;  %v196_v18 = vadd.f32 %v1167_v38, %v126_v11  ;;  %v197_v19 = vadd.f32 %v1167_v38, %v127_v12  ;;  %v129_v22 = vmul.f32 %v1131_v20, %v59_v8  ;;  %v69_v4 = vld [vmem:[%s1539_s0 + $0x120] sm:$0xff] }
  0x38   :  { %1049 = vst [vmem:[%s1541_s5 + $0x48] sm:$0xff] %v929_v13   ;;  %vm257_vm4 = vcmp.gt.f32.partialorder %v193_v14, 0.0  ;;  %vm258_vm5 = vcmp.gt.f32.partialorder %v194_v15, 0.0  ;;  %v321_v23 = vmul.f32 0.2, %v193_v14  ;;  %v198_v29 = vadd.f32 %v1167_v38, %v128_v16 }
  0x39   :  { %v322_v24 = vmul.f32 0.2, %v194_v15  ;;  %vm259_vm6 = vcmp.gt.f32.partialorder %v195_v17, 0.0  ;;  %vm260_vm7 = vcmp.gt.f32.partialorder %v196_v18, 0.0  ;;  %v323_v25 = vmul.f32 0.2, %v195_v17 }
  0x3a   :  { %v324_v26 = vmul.f32 0.2, %v196_v18  ;;  %v385_v27 = vsel %vm257_vm4, %v193_v14, %v321_v23  ;;  %vm261_vm8 = vcmp.gt.f32.partialorder %v197_v19, 0.0  ;;  %v325_v35 = vmul.f32 0.2, %v197_v19  ;;  %v71_v23 = vld [vmem:[%s1539_s0 + $0x130] sm:$0xff] }
  0x3b   :  { %v386_v28 = vsel %vm258_vm5, %v194_v15, %v322_v24  ;;  %v387_v33 = vsel %vm259_vm6, %v195_v17, %v323_v25  ;;  %vm262_vm9 = vcmp.gt.f32.partialorder %v198_v29, 0.0  ;;  %v326_v40 = vmul.f32 0.2, %v198_v29 }
  0x3c   :  { %v934_v32 = vpack.c.bf16 %v386_v28, %v385_v27  ;;  %v388_v34 = vsel %vm260_vm7, %v196_v18, %v324_v26  ;;  %v130_v41 = vmul.f32 %v1131_v20, %v60_v21  ;;  %v389_v42 = vsel %vm261_vm8, %v197_v19, %v325_v35 }
  0x3d   :  { %v939_v39 = vpack.c.bf16 %v388_v34, %v387_v33  ;;  %v199_v43 = vadd.f32 %v1167_v38, %v129_v22  ;;  %v131_v44 = vmul.f32 %v1131_v20, %v61_v30  ;;  %v132_v45 = vmul.f32 %v1131_v20, %v62_v31  ;;  %v73_v33 = vld [vmem:[%s1539_s0 + $0x140] sm:$0xff] }
  0x3e   :  { %1050 = vst [vmem:[%s1541_s5 + $0x50] sm:$0xff] %v934_v32   ;;  %v390_v46 = vsel %vm262_vm9, %v198_v29, %v326_v40  ;;  %v200_v47 = vadd.f32 %v1167_v38, %v130_v41  ;;  %v133_v48 = vmul.f32 %v1131_v20, %v63_v36  ;;  %v134_v49 = vmul.f32 %v1131_v20, %v64_v37  ;;  %v72_v32 = vld [vmem:[%s1539_s0 + $0x138] sm:$0xff]  ;;  %v75_v40 = vld [vmem:[%s1539_s0 + $0x150] sm:$0xff] }
  0x3f   :  { %1051 = vst [vmem:[%s1541_s5 + $0x58] sm:$0xff] %v939_v39   ;;  %v944_v50 = vpack.c.bf16 %v390_v46, %v389_v42  ;;  %vm263_vm10 = vcmp.gt.f32.partialorder %v199_v43, 0.0  ;;  %v327_v51 = vmul.f32 0.2, %v199_v43  ;;  %v201_v52 = vadd.f32 %v1167_v38, %v131_v44  ;;  %v74_v39 = vld [vmem:[%s1539_s0 + $0x148] sm:$0xff]  ;;  %v76_v41 = vld [vmem:[%s1539_s0 + $0x158] sm:$0xff] }
  0x40   :  { %vm264_vm11 = vcmp.gt.f32.partialorder %v200_v47, 0.0  ;;  %v328_v53 = vmul.f32 0.2, %v200_v47  ;;  %v202_v54 = vadd.f32 %v1167_v38, %v132_v45  ;;  %v203_v55 = vadd.f32 %v1167_v38, %v133_v48 }
  0x41   :  { %1052 = vst [vmem:[%s1541_s5 + $0x60] sm:$0xff] %v944_v50   ;;  %v391_v56 = vsel %vm263_vm10, %v199_v43, %v327_v51  ;;  %vm265_vm12 = vcmp.gt.f32.partialorder %v201_v52, 0.0  ;;  %v329_v57 = vmul.f32 0.2, %v201_v52  ;;  %v204_v58 = vadd.f32 %v1167_v38, %v134_v49 }
  0x42   :  { %v392_v61 = vsel %vm264_vm11, %v200_v47, %v328_v53  ;;  %vm266_vm13 = vcmp.gt.f32.partialorder %v202_v54, 0.0  ;;  %v330_v62 = vmul.f32 0.2, %v202_v54  ;;  %vm267_vm14 = vcmp.gt.f32.partialorder %v203_v55, 0.0 }
  0x43   :  { %v949_v1 = vpack.c.bf16 %v392_v61, %v391_v56  ;;  %v393_v2 = vsel %vm265_vm12, %v201_v52, %v329_v57  ;;  %vm268_vm15 = vcmp.gt.f32.partialorder %v204_v58, 0.0  ;;  %v331_v3 = vmul.f32 0.2, %v203_v55 }
  0x44   :  { %v394_v5 = vsel %vm266_vm13, %v202_v54, %v330_v62  ;;  %v332_v6 = vmul.f32 0.2, %v204_v58  ;;  %v135_v7 = vmul.f32 %v1131_v20, %v65_v59  ;;  %v136_v8 = vmul.f32 %v1131_v20, %v66_v60  ;;  %v77_v62 = vld [vmem:[%s1539_s0 + $0x160] sm:$0xff] }
  0x45   :  { %1053 = vst [vmem:[%s1541_s5 + $0x68] sm:$0xff] %v949_v1   ;;  %v954_v10 = vpack.c.bf16 %v394_v5, %v393_v2  ;;  %v395_v11 = vsel %vm267_vm14, %v203_v55, %v331_v3  ;;  %v137_v12 = vmul.f32 %v1131_v20, %v67_v63  ;;  %v138_v13 = vmul.f32 %v1131_v20, %v68_v0  ;;  %v78_v63 = vld [vmem:[%s1539_s0 + $0x168] sm:$0xff]  ;;  %v79_v0 = vld [vmem:[%s1539_s0 + $0x170] sm:$0xff]  ;;  %v80_v5 = vld [vmem:[%s1539_s0 + $0x178] sm:$0xff] }
  0x46   :  { %v396_v14 = vsel %vm268_vm15, %v204_v58, %v332_v6  ;;  %v205_v15 = vadd.f32 %v1167_v38, %v135_v7  ;;  %v206_v16 = vadd.f32 %v1167_v38, %v136_v8  ;;  %v139_v17 = vmul.f32 %v1131_v20, %v69_v4  ;;  %v81_v6 = vld [vmem:[%s1539_s0 + $0x180] sm:$0xff] }
  0x47   :  { %1054 = vst [vmem:[%s1541_s5 + $0x70] sm:$0xff] %v954_v10   ;;  %v959_v18 = vpack.c.bf16 %v396_v14, %v395_v11  ;;  %v207_v19 = vadd.f32 %v1167_v38, %v137_v12  ;;  %v208_v21 = vadd.f32 %v1167_v38, %v138_v13  ;;  %v140_v22 = vmul.f32 %v1131_v20, %v70_v9  ;;  %v82_v11 = vld [vmem:[%s1539_s0 + $0x188] sm:$0xff] }
  0x48   :  { %vm269_vm0 = vcmp.gt.f32.partialorder %v205_v15, 0.0  ;;  %vm270_vm1 = vcmp.gt.f32.partialorder %v206_v16, 0.0  ;;  %v333_v24 = vmul.f32 0.2, %v205_v15  ;;  %v334_v25 = vmul.f32 0.2, %v206_v16 }
  0x49   :  { %1055 = vst [vmem:[%s1541_s5 + $0x78] sm:$0xff] %v959_v18   ;;  %vm271_vm2 = vcmp.gt.f32.partialorder %v207_v19, 0.0  ;;  %vm272_vm3 = vcmp.gt.f32.partialorder %v208_v21, 0.0  ;;  %v335_v26 = vmul.f32 0.2, %v207_v19  ;;  %v209_v30 = vadd.f32 %v1167_v38, %v139_v17 }
  0x4a   :  { %v336_v27 = vmul.f32 0.2, %v208_v21  ;;  %v397_v28 = vsel %vm269_vm0, %v205_v15, %v333_v24  ;;  %v398_v29 = vsel %vm270_vm1, %v206_v16, %v334_v25  ;;  %v210_v31 = vadd.f32 %v1167_v38, %v140_v22  ;;  %v83_v16 = vld [vmem:[%s1539_s0 + $0x190] sm:$0xff] }
  0x4b   :  { %v964_v34 = vpack.c.bf16 %v398_v29, %v397_v28  ;;  %v399_v35 = vsel %vm271_vm2, %v207_v19, %v335_v26  ;;  %v141_v37 = vmul.f32 %v1131_v20, %v71_v23  ;;  %vm273_vm4 = vcmp.gt.f32.partialorder %v209_v30, 0.0  ;;  %v84_v29 = vld [vmem:[%s1539_s0 + $0x198] sm:$0xff] }
  0x4c   :  { %v400_v36 = vsel %vm272_vm3, %v208_v21, %v336_v27  ;;  %vm274_vm5 = vcmp.gt.f32.partialorder %v210_v31, 0.0  ;;  %v337_v43 = vmul.f32 0.2, %v209_v30  ;;  %v338_v44 = vmul.f32 0.2, %v210_v31 }
  0x4d   :  { %v969_v42 = vpack.c.bf16 %v400_v36, %v399_v35  ;;  %1056 = vst [vmem:[%s1541_s5 + $0x80] sm:$0xff] %v964_v34   ;;  %v142_v45 = vmul.f32 %v1131_v20, %v72_v32  ;;  %v211_v46 = vadd.f32 %v1167_v38, %v141_v37  ;;  %v143_v47 = vmul.f32 %v1131_v20, %v73_v33 }
  0x4e   :  { %v401_v48 = vsel %vm273_vm4, %v209_v30, %v337_v43  ;;  %v144_v49 = vmul.f32 %v1131_v20, %v74_v39  ;;  %v145_v50 = vmul.f32 %v1131_v20, %v75_v40  ;;  %v146_v51 = vmul.f32 %v1131_v20, %v76_v41  ;;  %v85_v39 = vld [vmem:[%s1539_s0 + $0x1a0] sm:$0xff]  ;;  %v86_v40 = vld [vmem:[%s1539_s0 + $0x1a8] sm:$0xff] }
  0x4f   :  { %1057 = vst [vmem:[%s1541_s5 + $0x88] sm:$0xff] %v969_v42   ;;  %v402_v52 = vsel %vm274_vm5, %v210_v31, %v338_v44  ;;  %v212_v53 = vadd.f32 %v1167_v38, %v142_v45  ;;  %vm275_vm6 = vcmp.gt.f32.partialorder %v211_v46, 0.0  ;;  %v339_v54 = vmul.f32 0.2, %v211_v46  ;;  %v87_v45 = vld [vmem:[%s1539_s0 + $0x1b0] sm:$0xff] }
  0x50   :  { %v974_v55 = vpack.c.bf16 %v402_v52, %v401_v48  ;;  %v213_v56 = vadd.f32 %v1167_v38, %v143_v47  ;;  %v214_v57 = vadd.f32 %v1167_v38, %v144_v49  ;;  %v215_v58 = vadd.f32 %v1167_v38, %v145_v50 }
  0x51   :  { %vm276_vm7 = vcmp.gt.f32.partialorder %v212_v53, 0.0  ;;  %v340_v59 = vmul.f32 0.2, %v212_v53  ;;  %v403_v60 = vsel %vm275_vm6, %v211_v46, %v339_v54  ;;  %v216_v61 = vadd.f32 %v1167_v38, %v146_v51  ;;  %v88_v46 = vld [vmem:[%s1539_s0 + $0x1b8] sm:$0xff] }
  0x52   :  { %1058 = vst [vmem:[%s1541_s5 + $0x90] sm:$0xff] %v974_v55   ;;  %vm277_vm8 = vcmp.gt.f32.partialorder %v213_v56, 0.0  ;;  %vm278_vm9 = vcmp.gt.f32.partialorder %v214_v57, 0.0  ;;  %v341_v1 = vmul.f32 0.2, %v213_v56  ;;  %vm279_vm10 = vcmp.gt.f32.partialorder %v215_v58, 0.0 }
  0x53   :  { %v342_v2 = vmul.f32 0.2, %v214_v57  ;;  %v404_v3 = vsel %vm276_vm7, %v212_v53, %v340_v59  ;;  %vm280_vm11 = vcmp.gt.f32.partialorder %v216_v61, 0.0  ;;  %v343_v4 = vmul.f32 0.2, %v215_v58 }
  0x54   :  { %v979_v7 = vpack.c.bf16 %v404_v3, %v403_v60  ;;  %v405_v8 = vsel %vm277_vm8, %v213_v56, %v341_v1  ;;  %v344_v10 = vmul.f32 0.2, %v216_v61  ;;  %v147_v14 = vmul.f32 %v1131_v20, %v77_v62  ;;  %v89_v3 = vld [vmem:[%s1539_s0 + $0x1c0] sm:$0xff] }
  0x55   :  { %v406_v9 = vsel %vm278_vm9, %v214_v57, %v342_v2  ;;  %v407_v13 = vsel %vm279_vm10, %v215_v58, %v343_v4  ;;  %v148_v15 = vmul.f32 %v1131_v20, %v78_v63  ;;  %v149_v18 = vmul.f32 %v1131_v20, %v79_v0  ;;  %v90_v4 = vld [vmem:[%s1539_s0 + $0x1c8] sm:$0xff] }
  0x56   :  { %v984_v12 = vpack.c.bf16 %v406_v9, %v405_v8  ;;  %1059 = vst [vmem:[%s1541_s5 + $0x98] sm:$0xff] %v979_v7   ;;  %v408_v17 = vsel %vm280_vm11, %v216_v61, %v344_v10  ;;  %v150_v19 = vmul.f32 %v1131_v20, %v80_v5  ;;  %v151_v21 = vmul.f32 %v1131_v20, %v81_v6  ;;  %v91_v7 = vld [vmem:[%s1539_s0 + $0x1d0] sm:$0xff]  ;;  %v92_v8 = vld [vmem:[%s1539_s0 + $0x1d8] sm:$0xff] }
  0x57   :  { %v989_v22 = vpack.c.bf16 %v408_v17, %v407_v13  ;;  %v217_v23 = vadd.f32 %v1167_v38, %v147_v14  ;;  %v218_v24 = vadd.f32 %v1167_v38, %v148_v15  ;;  %v152_v25 = vmul.f32 %v1131_v20, %v82_v11  ;;  %v94_v17 = vld [vmem:[%s1539_s0 + $0x1e8] sm:$0xff] }
  0x58   :  { %1060 = vst [vmem:[%s1541_s5 + $0xa0] sm:$0xff] %v984_v12   ;;  %v219_v26 = vadd.f32 %v1167_v38, %v149_v18  ;;  %v220_v27 = vadd.f32 %v1167_v38, %v150_v19  ;;  %v221_v28 = vadd.f32 %v1167_v38, %v151_v21  ;;  %v153_v30 = vmul.f32 %v1131_v20, %v83_v16  ;;  %v93_v12 = vld [vmem:[%s1539_s0 + $0x1e0] sm:$0xff] }
  0x59   :  { %1061 = vst [vmem:[%s1541_s5 + $0xa8] sm:$0xff] %v989_v22   ;;  %vm281_vm12 = vcmp.gt.f32.partialorder %v217_v23, 0.0  ;;  %vm282_vm13 = vcmp.gt.f32.partialorder %v218_v24, 0.0  ;;  %v345_v31 = vmul.f32 0.2, %v217_v23  ;;  %v222_v37 = vadd.f32 %v1167_v38, %v152_v25 }
  0x5a   :  { %v346_v32 = vmul.f32 0.2, %v218_v24  ;;  %vm283_vm14 = vcmp.gt.f32.partialorder %v219_v26, 0.0  ;;  %vm284_vm15 = vcmp.gt.f32.partialorder %v220_v27, 0.0  ;;  %v347_v33 = vmul.f32 0.2, %v219_v26 }
  0x5b   :  { %v348_v34 = vmul.f32 0.2, %v220_v27  ;;  %v409_v35 = vsel %vm281_vm12, %v217_v23, %v345_v31  ;;  %vm285_vm0 = vcmp.gt.f32.partialorder %v221_v28, 0.0  ;;  %v349_v44 = vmul.f32 0.2, %v221_v28  ;;  %v95_v31 = vld [vmem:[%s1539_s0 + $0x1f0] sm:$0xff] }
  0x5c   :  { %v410_v36 = vsel %vm282_vm13, %v218_v24, %v346_v32  ;;  %v411_v42 = vsel %vm283_vm14, %v219_v26, %v347_v33  ;;  %vm286_vm1 = vcmp.gt.f32.partialorder %v222_v37, 0.0  ;;  %v350_v48 = vmul.f32 0.2, %v222_v37 }
  0x5d   :  { %v994_v41 = vpack.c.bf16 %v410_v36, %v409_v35  ;;  %v412_v43 = vsel %vm284_vm15, %v220_v27, %v348_v34  ;;  %v154_v49 = vmul.f32 %v1131_v20, %v84_v29  ;;  %v413_v50 = vsel %vm285_vm0, %v221_v28, %v349_v44 }
  0x5e   :  { %v999_v47 = vpack.c.bf16 %v412_v43, %v411_v42  ;;  %v223_v51 = vadd.f32 %v1167_v38, %v153_v30  ;;  %v155_v52 = vmul.f32 %v1131_v20, %v85_v39  ;;  %v156_v53 = vmul.f32 %v1131_v20, %v86_v40 }
  0x5f   :  { %1062 = vst [vmem:[%s1541_s5 + $0xb0] sm:$0xff] %v994_v41   ;;  %v414_v54 = vsel %vm286_vm1, %v222_v37, %v350_v48  ;;  %v224_v55 = vadd.f32 %v1167_v38, %v154_v49  ;;  %v157_v56 = vmul.f32 %v1131_v20, %v87_v45  ;;  %v158_v57 = vmul.f32 %v1131_v20, %v88_v46  ;;  %v96_v41 = vld [vmem:[%s1539_s0 + $0x1f8] sm:$0xff] }
  0x60   :  { %1063 = vst [vmem:[%s1541_s5 + $0xb8] sm:$0xff] %v999_v47   ;;  %v1004_v58 = vpack.c.bf16 %v414_v54, %v413_v50  ;;  %vm287_vm2 = vcmp.gt.f32.partialorder %v223_v51, 0.0  ;;  %v351_v59 = vmul.f32 0.2, %v223_v51  ;;  %v225_v60 = vadd.f32 %v1167_v38, %v155_v52 }
  0x61   :  { %vm288_vm3 = vcmp.gt.f32.partialorder %v224_v55, 0.0  ;;  %v352_v61 = vmul.f32 0.2, %v224_v55  ;;  %v226_v62 = vadd.f32 %v1167_v38, %v156_v53  ;;  %v227_v63 = vadd.f32 %v1167_v38, %v157_v56 }
  0x62   :  { %1064 = vst [vmem:[%s1541_s5 + $0xc0] sm:$0xff] %v1004_v58   ;;  %v415_v0 = vsel %vm287_vm2, %v223_v51, %v351_v59  ;;  %vm289_vm4 = vcmp.gt.f32.partialorder %v225_v60, 0.0  ;;  %v353_v1 = vmul.f32 0.2, %v225_v60  ;;  %v228_v2 = vadd.f32 %v1167_v38, %v158_v57 }
  0x63   :  { %v416_v5 = vsel %vm288_vm3, %v224_v55, %v352_v61  ;;  %vm290_vm5 = vcmp.gt.f32.partialorder %v226_v62, 0.0  ;;  %v354_v6 = vmul.f32 0.2, %v226_v62  ;;  %vm291_vm6 = vcmp.gt.f32.partialorder %v227_v63, 0.0 }
  0x64   :  { %v1009_v9 = vpack.c.bf16 %v416_v5, %v415_v0  ;;  %v417_v10 = vsel %vm289_vm4, %v225_v60, %v353_v1  ;;  %vm292_vm7 = vcmp.gt.f32.partialorder %v228_v2, 0.0  ;;  %v355_v11 = vmul.f32 0.2, %v227_v63 }
  0x65   :  { %v418_v13 = vsel %vm290_vm5, %v226_v62, %v354_v6  ;;  %v356_v14 = vmul.f32 0.2, %v228_v2  ;;  %v159_v15 = vmul.f32 %v1131_v20, %v89_v3  ;;  %v160_v16 = vmul.f32 %v1131_v20, %v90_v4 }
  0x66   :  { %1065 = vst [vmem:[%s1541_s5 + $0xc8] sm:$0xff] %v1009_v9   ;;  %v1014_v18 = vpack.c.bf16 %v418_v13, %v417_v10  ;;  %v419_v19 = vsel %vm291_vm6, %v227_v63, %v355_v11  ;;  %v161_v21 = vmul.f32 %v1131_v20, %v91_v7  ;;  %v162_v22 = vmul.f32 %v1131_v20, %v92_v8 }
  0x67   :  { %v420_v23 = vsel %vm292_vm7, %v228_v2, %v356_v14  ;;  %v229_v24 = vadd.f32 %v1167_v38, %v159_v15  ;;  %v230_v25 = vadd.f32 %v1167_v38, %v160_v16  ;;  %v163_v26 = vmul.f32 %v1131_v20, %v93_v12 }
  0x68   :  { %1066 = vst [vmem:[%s1541_s5 + $0xd0] sm:$0xff] %v1014_v18   ;;  %v1019_v27 = vpack.c.bf16 %v420_v23, %v419_v19  ;;  %v231_v28 = vadd.f32 %v1167_v38, %v161_v21  ;;  %v232_v29 = vadd.f32 %v1167_v38, %v162_v22  ;;  %v164_v30 = vmul.f32 %v1131_v20, %v94_v17 }
  0x69   :  { %vm293_vm8 = vcmp.gt.f32.partialorder %v229_v24, 0.0  ;;  %vm294_vm9 = vcmp.gt.f32.partialorder %v230_v25, 0.0  ;;  %v357_v32 = vmul.f32 0.2, %v229_v24  ;;  %v358_v33 = vmul.f32 0.2, %v230_v25 }
  0x6a   :  { %1067 = vst [vmem:[%s1541_s5 + $0xd8] sm:$0xff] %v1019_v27   ;;  %vm295_vm10 = vcmp.gt.f32.partialorder %v231_v28, 0.0  ;;  %vm296_vm11 = vcmp.gt.f32.partialorder %v232_v29, 0.0  ;;  %v359_v34 = vmul.f32 0.2, %v231_v28  ;;  %v233_v39 = vadd.f32 %v1167_v38, %v163_v26 }
  0x6b   :  { %v360_v35 = vmul.f32 0.2, %v232_v29  ;;  %v421_v36 = vsel %vm293_vm8, %v229_v24, %v357_v32  ;;  %v422_v37 = vsel %vm294_vm9, %v230_v25, %v358_v33  ;;  %v234_v40 = vadd.f32 %v1167_v38, %v164_v30 }
  0x6c   :  { %v1024_v42 = vpack.c.bf16 %v422_v37, %v421_v36  ;;  %v423_v43 = vsel %vm295_vm10, %v231_v28, %v359_v34  ;;  %v165_v45 = vmul.f32 %v1131_v20, %v95_v31  ;;  %vm297_vm12 = vcmp.gt.f32.partialorder %v233_v39, 0.0 }
  0x6d   :  { %v424_v44 = vsel %vm296_vm11, %v232_v29, %v360_v35  ;;  %vm298_vm13 = vcmp.gt.f32.partialorder %v234_v40, 0.0  ;;  %v361_v47 = vmul.f32 0.2, %v233_v39  ;;  %v362_v48 = vmul.f32 0.2, %v234_v40 }
  0x6e   :  { %v1029_v46 = vpack.c.bf16 %v424_v44, %v423_v43  ;;  %1068 = vst [vmem:[%s1541_s5 + $0xe0] sm:$0xff] %v1024_v42   ;;  %v166_v49 = vmul.f32 %v1131_v20, %v96_v41  ;;  %v235_v50 = vadd.f32 %v1167_v38, %v165_v45 }
  0x6f   :  { %v425_v51 = vsel %vm297_vm12, %v233_v39, %v361_v47  ;;  %v426_v52 = vsel %vm298_vm13, %v234_v40, %v362_v48 }
  0x70   :  { %1069 = vst [vmem:[%s1541_s5 + $0xe8] sm:$0xff] %v1029_v46   ;;  %v236_v53 = vadd.f32 %v1167_v38, %v166_v49  ;;  %vm299_vm14 = vcmp.gt.f32.partialorder %v235_v50, 0.0  ;;  %v363_v54 = vmul.f32 0.2, %v235_v50  ;;  %v1034_v55 = vpack.c.bf16 %v426_v52, %v425_v51 }
  0x72   :  { %vm300_vm15 = vcmp.gt.f32.partialorder %v236_v53, 0.0  ;;  %v364_v56 = vmul.f32 0.2, %v236_v53  ;;  %v427_v57 = vsel %vm299_vm14, %v235_v50, %v363_v54  ;;  %1070 = vst [vmem:[%s1541_s5 + $0xf0] sm:$0xff] %v1034_v55  }
  0x74   :  { %v428_v20 = vsel %vm300_vm15, %v236_v53, %v364_v56 }
  0x75   :  { %v1039_v58 = vpack.c.bf16 %v428_v20, %v427_v57 }
  0x77   :  { %1071 = vst [vmem:[%s1541_s5 + $0xf8] sm:$0xff] %v1039_v58  }

// kernel: discriminator_forward.11
= control target key start
LH: loop header
LB: loop body
LE: loop exit
PB: predicated region body
PF: predicated region fallthrough
CT: control target
= control target key end

     0   :  { %v587_v32 = vmov 0.0   ;;  %s793_s1 = inlined_call_operand.vmem [shape: bf16[256,128], index: 1, kind: input, shape index: {}]   ;;  %s794_s0 = inlined_call_operand.vmem [shape: bf16[128,256], index: 0, kind: input, shape index: {}]   ;;  %s795_s3 = inlined_call_operand.vmem [shape: f32[1,128], index: 3, kind: output, shape index: {1}]   ;;  %s796_s4 = inlined_call_operand.vmem [shape: f32[1,128], index: 4, kind: output, shape index: {2}]   ;;  %s797_s2 = inlined_call_operand.vmem [shape: f32[128,128], index: 2, kind: output, shape index: {0}]  }
   0x1   :  { %v547_v0 = vld [vmem:[%s793_s1 + $0x40] sm:$0xff]   ;;  %v549_v2 = vld [vmem:[%s793_s1 + $0x48] sm:$0xff]   ;;  %v551_v4 = vld [vmem:[%s793_s1 + $0x50] sm:$0xff]   ;;  %356 = vst [vmem:[%s795_s3] sm:$0x1] %v587_v32 }
   0x2   :  { %v548_v1 = vld [vmem:[%s793_s1] sm:$0xff]   ;;  %466 = vmatprep.subr.bf16.mxu0 %v547_v0  ;;  %530 = vmatprep.subr.bf16.mxu1 %v547_v0  ;;  %v550_v3 = vld [vmem:[%s793_s1 + $0x8] sm:$0xff]   ;;  %v552_v5 = vld [vmem:[%s793_s1 + $0x10] sm:$0xff]   ;;  %357 = vst [vmem:[%s796_s4] sm:$0x1] %v587_v32 }
   0x3   :  { %467 = vmatpush3.bf16.msra.mxu0 %v548_v1  ;;  %538 = vmatpush3.bf16.msra.mxu1 %v548_v1  ;;  %v553_v6 = vld [vmem:[%s793_s1 + $0x58] sm:$0xff]   ;;  %v555_v8 = vld [vmem:[%s793_s1 + $0x60] sm:$0xff]   ;;  %v557_v10 = vld [vmem:[%s793_s1 + $0x68] sm:$0xff]  }
   0x4   :  { %468 = vmatprep.subr.bf16.mxu0 %v549_v2  ;;  %531 = vmatprep.subr.bf16.mxu1 %v549_v2  ;;  %v554_v7 = vld [vmem:[%s793_s1 + $0x18] sm:$0xff]   ;;  %v556_v9 = vld [vmem:[%s793_s1 + $0x20] sm:$0xff]   ;;  %v558_v12 = vld [vmem:[%s793_s1 + $0x28] sm:$0xff]  }
   0x5   :  { %v565_v11 = vld [vmem:[%s794_s0 + $0x4] ss:$8 sps:$4 sm:$0xff]   ;;  %v559_v14 = vld [vmem:[%s793_s1 + $0x70] sm:$0xff]   ;;  %v561_v16 = vld [vmem:[%s793_s1 + $0x78] sm:$0xff]  }
   0x6   :  { %v571_v13 = vld [vmem:[%s794_s0 + $0x44] ss:$8 sps:$4 sm:$0xff]   ;;  %271 = vmatprep.mubr.bf16.mxu0 %v565_v11  ;;  %v560_v15 = vld [vmem:[%s793_s1 + $0x30] sm:$0xff]   ;;  %v562_v17 = vld [vmem:[%s793_s1 + $0x38] sm:$0xff]  }
   0x7   :  { %469 = vmatpush3.bf16.msra.mxu0 %v550_v3  ;;  %539 = vmatpush3.bf16.msra.mxu1 %v550_v3  ;;  %v563_v18 = vld [vmem:[%s794_s0] ss:$8 sps:$4 sm:$0xff]   ;;  %v566_v20 = vld [vmem:[%s794_s0 + $0x14] ss:$8 sps:$4 sm:$0xff]   ;;  %v568_v22 = vld [vmem:[%s794_s0 + $0x10] ss:$8 sps:$4 sm:$0xff]  }
   0x8   :  { %470 = vmatprep.subr.bf16.mxu0 %v551_v4  ;;  %532 = vmatprep.subr.bf16.mxu1 %v551_v4  ;;  %v569_v19 = vld [vmem:[%s794_s0 + $0x40] ss:$8 sps:$4 sm:$0xff]   ;;  %v575_v21 = vld [vmem:[%s794_s0 + $0x54] ss:$8 sps:$4 sm:$0xff]   ;;  %v577_v23 = vld [vmem:[%s794_s0 + $0x50] ss:$8 sps:$4 sm:$0xff]  }
   0x9   :  { %303 = vmatprep.mubr.bf16.mxu1 %v571_v13  ;;  %v572_v24 = vld [vmem:[%s794_s0 + $0x24] ss:$8 sps:$4 sm:$0xff]   ;;  %v574_v26 = vld [vmem:[%s794_s0 + $0x20] ss:$8 sps:$4 sm:$0xff]   ;;  %v578_v28 = vld [vmem:[%s794_s0 + $0x34] ss:$8 sps:$4 sm:$0xff]  }
   0xa   :  { %v581_v25 = vld [vmem:[%s794_s0 + $0x64] ss:$8 sps:$4 sm:$0xff]   ;;  %v583_v27 = vld [vmem:[%s794_s0 + $0x60] ss:$8 sps:$4 sm:$0xff]   ;;  %v584_v29 = vld [vmem:[%s794_s0 + $0x74] ss:$8 sps:$4 sm:$0xff]  }
   0xb   :  { %471 = vmatpush3.bf16.msra.mxu0 %v552_v5  ;;  %540 = vmatpush3.bf16.msra.mxu1 %v552_v5  ;;  %v580_v30 = vld [vmem:[%s794_s0 + $0x30] ss:$8 sps:$4 sm:$0xff]  }
   0xc   :  { %472 = vmatprep.subr.bf16.mxu0 %v553_v6  ;;  %533 = vmatprep.subr.bf16.mxu1 %v553_v6  ;;  %v586_v31 = vld [vmem:[%s794_s0 + $0x70] ss:$8 sps:$4 sm:$0xff]  }
   0xf   :  { %473 = vmatpush3.bf16.msra.mxu0 %v554_v7  ;;  %541 = vmatpush3.bf16.msra.mxu1 %v554_v7 }
  0x10   :  { %474 = vmatprep.subr.bf16.mxu0 %v555_v8  ;;  %534 = vmatprep.subr.bf16.mxu1 %v555_v8 }
  0x13   :  { %475 = vmatpush3.bf16.msra.mxu0 %v556_v9  ;;  %542 = vmatpush3.bf16.msra.mxu1 %v556_v9 }
  0x14   :  { %476 = vmatprep.subr.bf16.mxu0 %v557_v10  ;;  %535 = vmatprep.subr.bf16.mxu1 %v557_v10 }
  0x17   :  { %477 = vmatpush3.bf16.msra.mxu0 %v558_v12  ;;  %543 = vmatpush3.bf16.msra.mxu1 %v558_v12 }
  0x18   :  { %478 = vmatprep.subr.bf16.mxu0 %v559_v14  ;;  %536 = vmatprep.subr.bf16.mxu1 %v559_v14 }
  0x1b   :  { %479 = vmatpush3.bf16.msra.mxu0 %v560_v15  ;;  %544 = vmatpush3.bf16.msra.mxu1 %v560_v15 }
  0x1c   :  { %480 = vmatprep.subr.bf16.mxu0 %v561_v16  ;;  %537 = vmatprep.subr.bf16.mxu1 %v561_v16 }
  0x1f   :  { %481 = vmatpush3.bf16.msra.mxu0 %v562_v17  ;;  %545 = vmatpush3.bf16.msra.mxu1 %v562_v17 }
  0x22   :  { %272 = vmatmul.mubr.bf16.vlgmr.msra.gmra.mrb[0].mxu0 %v563_v18  ;;  %304 = vmatmul.mubr.bf16.vlgmr.msra.gmra.mrb[0].mxu1 %v569_v19 }
  0x23   :  { %279 = vmatprep.mubr.bf16.mxu0 %v566_v20  ;;  %311 = vmatprep.mubr.bf16.mxu1 %v575_v21 }
  0x2a   :  { %280 = vmatmul.mubr.bf16.gmra.mrb[4].mxu0 %v568_v22  ;;  %312 = vmatmul.mubr.bf16.gmra.mrb[4].mxu1 %v577_v23 }
  0x2b   :  { %287 = vmatprep.mubr.bf16.mxu0 %v572_v24  ;;  %319 = vmatprep.mubr.bf16.mxu1 %v581_v25 }
  0x32   :  { %288 = vmatmul.mubr.bf16.gmra.mrb[8].mxu0 %v574_v26  ;;  %320 = vmatmul.mubr.bf16.gmra.mrb[8].mxu1 %v583_v27 }
  0x33   :  { %295 = vmatprep.mubr.bf16.mxu0 %v578_v28  ;;  %327 = vmatprep.mubr.bf16.mxu1 %v584_v29 }
  0x3a   :  { %296 = vmatmul.mubr.bf16.gmra.mrb[12].mxu0 %v580_v30  ;;  %328 = vmatmul.mubr.bf16.gmra.mrb[12].mxu1 %v586_v31 }
  0xf5   :  { %v482_v33 = vpop.f32.mrb[0].mxu0  ;;  %v506_v34 = vpop.f32.mrb[0].mxu1 }
  0xf6   :  { %v483_v35 = vpop.f32.mrb[1].mxu0  ;;  %v507_v36 = vpop.f32.mrb[1].mxu1 }
  0xf7   :  { %v484_v37 = vadd.f32 %v483_v35, %v482_v33  ;;  %v485_v38 = vpop.f32.mrb[2].mxu0  ;;  %v715_v39 = vadd.f32 %v507_v36, %v506_v34  ;;  %v509_v40 = vpop.f32.mrb[2].mxu1 }
  0xf8   :  { %v486_v41 = vpop.f32.mrb[3].mxu0  ;;  %v510_v42 = vpop.f32.mrb[3].mxu1 }
  0xf9   :  { %336 = vst [vmem:[%s797_s2] sm:$0xff] %v484_v37  ;;  %v487_v43 = vadd.f32 %v486_v41, %v485_v38  ;;  %344 = vst [vmem:[%s797_s2 + $0x40] sm:$0xff] %v715_v39  ;;  %v724_v44 = vadd.f32 %v510_v42, %v509_v40  ;;  %v383_v45 = vmul.f32 %v484_v37, %v484_v37 }
  0xfa   :  { %v391_v38 = vmul.f32 %v715_v39, %v715_v39 }
  0xfb   :  { %337 = vst [vmem:[%s797_s2 + $0x8] sm:$0xff] %v487_v43  ;;  %v359_v46 = vadd.f32 %v487_v43, %v484_v37  ;;  %v384_v47 = vmul.f32 %v487_v43, %v487_v43  ;;  %345 = vst [vmem:[%s797_s2 + $0x48] sm:$0xff] %v724_v44  ;;  %v392_v42 = vmul.f32 %v724_v44, %v724_v44 }
  0xfd   :  { %v399_v48 = vadd.f32 %v384_v47, %v383_v45  ;;  %v488_v49 = vpop.f32.mrb[4].mxu0  ;;  %v512_v50 = vpop.f32.mrb[4].mxu1 }
  0xfe   :  { %v489_v51 = vpop.f32.mrb[5].mxu0  ;;  %v513_v52 = vpop.f32.mrb[5].mxu1 }
  0xff   :  { %v490_v53 = vadd.f32 %v489_v51, %v488_v49  ;;  %v491_v54 = vpop.f32.mrb[6].mxu0  ;;  %v733_v55 = vadd.f32 %v513_v52, %v512_v50  ;;  %v515_v56 = vpop.f32.mrb[6].mxu1 }
 0x100   :  { %v492_v57 = vpop.f32.mrb[7].mxu0  ;;  %v516_v58 = vpop.f32.mrb[7].mxu1 }
 0x101   :  { %338 = vst [vmem:[%s797_s2 + $0x10] sm:$0xff] %v490_v53  ;;  %v360_v59 = vadd.f32 %v490_v53, %v359_v46  ;;  %v385_v60 = vmul.f32 %v490_v53, %v490_v53  ;;  %v493_v61 = vadd.f32 %v492_v57, %v491_v54  ;;  %346 = vst [vmem:[%s797_s2 + $0x50] sm:$0xff] %v733_v55 }
 0x102   :  { %v517_v62 = vadd.f32 %v516_v58, %v515_v56  ;;  %v393_v46 = vmul.f32 %v733_v55, %v733_v55 }
 0x103   :  { %v400_v63 = vadd.f32 %v399_v48, %v385_v60  ;;  %339 = vst [vmem:[%s797_s2 + $0x18] sm:$0xff] %v493_v61  ;;  %v361_v0 = vadd.f32 %v493_v61, %v360_v59  ;;  %v386_v1 = vmul.f32 %v493_v61, %v493_v61 }
 0x104   :  { %347 = vst [vmem:[%s797_s2 + $0x58] sm:$0xff] %v517_v62  ;;  %v394_v49 = vmul.f32 %v517_v62, %v517_v62 }
 0x105   :  { %v401_v2 = vadd.f32 %v400_v63, %v386_v1  ;;  %v494_v3 = vpop.f32.mrb[8].mxu0  ;;  %v518_v4 = vpop.f32.mrb[8].mxu1 }
 0x106   :  { %v495_v5 = vpop.f32.mrb[9].mxu0  ;;  %v519_v6 = vpop.f32.mrb[9].mxu1 }
 0x107   :  { %v496_v7 = vadd.f32 %v495_v5, %v494_v3  ;;  %v497_v8 = vpop.f32.mrb[10].mxu0  ;;  %v520_v9 = vadd.f32 %v519_v6, %v518_v4  ;;  %v521_v10 = vpop.f32.mrb[10].mxu1 }
 0x108   :  { %v498_v11 = vpop.f32.mrb[11].mxu0  ;;  %v522_v12 = vpop.f32.mrb[11].mxu1 }
 0x109   :  { %340 = vst [vmem:[%s797_s2 + $0x20] sm:$0xff] %v496_v7  ;;  %v362_v13 = vadd.f32 %v496_v7, %v361_v0  ;;  %v387_v14 = vmul.f32 %v496_v7, %v496_v7  ;;  %v499_v15 = vadd.f32 %v498_v11, %v497_v8  ;;  %348 = vst [vmem:[%s797_s2 + $0x60] sm:$0xff] %v520_v9  ;;  %v358_v8 = vld [vmem:[%s795_s3] sm:$0x1] }
 0x10a   :  { %v523_v16 = vadd.f32 %v522_v12, %v521_v10  ;;  %v395_v53 = vmul.f32 %v520_v9, %v520_v9  ;;  %v382_v11 = vld [vmem:[%s796_s4] sm:$0x1] }
 0x10b   :  { %v402_v17 = vadd.f32 %v401_v2, %v387_v14  ;;  %341 = vst [vmem:[%s797_s2 + $0x28] sm:$0xff] %v499_v15  ;;  %v363_v18 = vadd.f32 %v499_v15, %v362_v13  ;;  %v388_v19 = vmul.f32 %v499_v15, %v499_v15 }
 0x10c   :  { %349 = vst [vmem:[%s797_s2 + $0x68] sm:$0xff] %v523_v16  ;;  %v396_v57 = vmul.f32 %v523_v16, %v523_v16 }
 0x10d   :  { %v403_v20 = vadd.f32 %v402_v17, %v388_v19  ;;  %v500_v21 = vpop.f32.mrb[12].mxu0  ;;  %v524_v22 = vpop.f32.mrb[12].mxu1 }
 0x10e   :  { %v501_v23 = vpop.f32.mrb[13].mxu0  ;;  %v525_v24 = vpop.f32.mrb[13].mxu1 }
 0x10f   :  { %v502_v25 = vadd.f32 %v501_v23, %v500_v21  ;;  %v503_v26 = vpop.f32.mrb[14].mxu0  ;;  %v526_v27 = vadd.f32 %v525_v24, %v524_v22  ;;  %v527_v28 = vpop.f32.mrb[14].mxu1 }
 0x110   :  { %v504_v29 = vpop.f32.mrb[15].mxu0  ;;  %v528_v30 = vpop.f32.mrb[15].mxu1 }
 0x111   :  { %342 = vst [vmem:[%s797_s2 + $0x30] sm:$0xff] %v502_v25  ;;  %v364_v31 = vadd.f32 %v502_v25, %v363_v18  ;;  %v389_v32 = vmul.f32 %v502_v25, %v502_v25  ;;  %v505_v33 = vadd.f32 %v504_v29, %v503_v26  ;;  %350 = vst [vmem:[%s797_s2 + $0x70] sm:$0xff] %v526_v27 }
 0x112   :  { %v529_v34 = vadd.f32 %v528_v30, %v527_v28  ;;  %v397_v58 = vmul.f32 %v526_v27, %v526_v27 }
 0x113   :  { %v404_v35 = vadd.f32 %v403_v20, %v389_v32  ;;  %343 = vst [vmem:[%s797_s2 + $0x38] sm:$0xff] %v505_v33  ;;  %v365_v36 = vadd.f32 %v505_v33, %v364_v31  ;;  %v390_v37 = vmul.f32 %v505_v33, %v505_v33 }
 0x114   :  { %351 = vst [vmem:[%s797_s2 + $0x78] sm:$0xff] %v529_v34  ;;  %v398_v63 = vmul.f32 %v529_v34, %v529_v34 }
 0x115   :  { %v366_v40 = vadd.f32 %v715_v39, %v365_v36  ;;  %v405_v41 = vadd.f32 %v404_v35, %v390_v37 }
 0x117   :  { %v367_v43 = vadd.f32 %v724_v44, %v366_v40  ;;  %v406_v45 = vadd.f32 %v405_v41, %v391_v38 }
 0x119   :  { %v407_v47 = vadd.f32 %v406_v45, %v392_v42  ;;  %v368_v48 = vadd.f32 %v733_v55, %v367_v43 }
 0x11b   :  { %v369_v50 = vadd.f32 %v517_v62, %v368_v48  ;;  %v408_v51 = vadd.f32 %v407_v47, %v393_v46 }
 0x11d   :  { %v370_v52 = vadd.f32 %v520_v9, %v369_v50  ;;  %v409_v54 = vadd.f32 %v408_v51, %v394_v49 }
 0x11f   :  { %v410_v39 = vadd.f32 %v409_v54, %v395_v53  ;;  %v371_v56 = vadd.f32 %v523_v16, %v370_v52 }
 0x121   :  { %v411_v59 = vadd.f32 %v410_v39, %v396_v57  ;;  %v372_v60 = vadd.f32 %v526_v27, %v371_v56 }
 0x123   :  { %v412_v44 = vadd.f32 %v411_v59, %v397_v58  ;;  %v373_v61 = vadd.f32 %v529_v34, %v372_v60 }
 0x125   :  { %v374_v0 = vrot.slane %v373_v61, 4  ;;  %v413_v1 = vadd.f32 %v412_v44, %v398_v63 }
 0x127   :  { %v375_v2 = vadd.f32 %v374_v0, %v373_v61  ;;  %v414_v3 = vrot.slane %v413_v1, 4 }
 0x129   :  { %v376_v55 = vrot.slane %v375_v2, 2  ;;  %v415_v4 = vadd.f32 %v414_v3, %v413_v1 }
 0x12b   :  { %v377_v62 = vadd.f32 %v376_v55, %v375_v2  ;;  %v416_v5 = vrot.slane %v415_v4, 2 }
 0x12d   :  { %v378_v6 = vrot.slane %v377_v62, 1  ;;  %v417_v7 = vadd.f32 %v416_v5, %v415_v4 }
 0x12f   :  { %v379_v9 = vadd.f32 %v378_v6, %v377_v62  ;;  %v418_v10 = vrot.slane %v417_v7, 1 }
 0x131   :  { %v380_v12 = vadd.f32 %v379_v9, %v358_v8  ;;  %v419_v13 = vadd.f32 %v418_v10, %v417_v7 }
 0x133   :  { %381 = vst [vmem:[%s795_s3] sm:$0x1] %v380_v12  ;;  %v420_v14 = vadd.f32 %v419_v13, %v382_v11 }
 0x135   :  { %421 = vst [vmem:[%s796_s4] sm:$0x1] %v420_v14 }

// kernel: discriminator_forward.12
= control target key start
LH: loop header
LB: loop body
LE: loop exit
PB: predicated region body
PF: predicated region fallthrough
CT: control target
= control target key end

     0   :  { %v50_v7 = vlaneseq  ;;  %s456_s1 = inlined_call_operand.vmem [shape: f32[1,128], index: 1, kind: input, shape index: {}]   ;;  %s457_s2 = inlined_call_operand.vmem [shape: f32[1,128], index: 2, kind: input, shape index: {}]   ;;  %s458_s3 = inlined_call_operand.vmem [shape: f32[1,128], index: 3, kind: input, shape index: {}]   ;;  %s459_s0 = inlined_call_operand.vmem [shape: f32[128,128], index: 0, kind: input, shape index: {}]   ;;  %s460_s4 = inlined_call_operand.vmem [shape: f32[1,128], index: 4, kind: input, shape index: {}]   ;;  %s461_s5 = inlined_call_operand.vmem [shape: bf16[128,128], index: 5, kind: output, shape index: {}]  }
   0x1   :  { %v20_v0 = vld [vmem:[%s456_s1] sm:$0x1]  ;;  %v34_v15 = vld [vmem:[%s459_s0 + $0x8] sm:$0xff]  ;;  %v35_v16 = vld [vmem:[%s459_s0 + $0x10] sm:$0xff] }
   0x2   :  { %v22_v1 = vld [vmem:[%s457_s2] sm:$0x1]  ;;  %v21_v2 = vmul.f32 0.0078125, %v20_v0  ;;  %v51_v8 = vshrl.u32 %v50_v7, 7  ;;  %v36_v17 = vld [vmem:[%s459_s0 + $0x18] sm:$0xff]  ;;  %v38_v21 = vld [vmem:[%s459_s0 + $0x28] sm:$0xff] }
   0x3   :  { %v23_v3 = vmul.f32 0.0078125, %v22_v1  ;;  %v26_v9 = vld [vmem:[%s458_s3] sm:$0x1]  ;;  %v39_v22 = vld [vmem:[%s459_s0 + $0x30] sm:$0xff]  ;;  %v40_v23 = vld [vmem:[%s459_s0 + $0x38] sm:$0xff] }
   0x4   :  { %v24_v4 = vmul.f32 %v21_v2, %v21_v2  ;;  %v52_v10 = vsub.s32 0, %v51_v8  ;;  %v30_v13 = vld [vmem:[%s460_s4] sm:$0x1]  ;;  %v42_v25 = vld [vmem:[%s459_s0 + $0x48] sm:$0xff]  ;;  %v43_v26 = vld [vmem:[%s459_s0 + $0x50] sm:$0xff] }
   0x5   :  { %v33_v14 = vld [vmem:[%s459_s0] sm:$0xff]  ;;  %v44_v31 = vld [vmem:[%s459_s0 + $0x58] sm:$0xff]  ;;  %v46_v33 = vld [vmem:[%s459_s0 + $0x68] sm:$0xff] }
   0x6   :  { %v25_v5 = vsub.f32 %v23_v3, %v24_v4  ;;  %v37_v18 = vld [vmem:[%s459_s0 + $0x20] sm:$0xff] }
   0x7   :  { %v41_v24 = vld [vmem:[%s459_s0 + $0x40] sm:$0xff] }
   0x8   :  { %v27_v6 = vadd.f32 1e-05, %v25_v5  ;;  %v45_v32 = vld [vmem:[%s459_s0 + $0x60] sm:$0xff] }
   0xa   :  { %304 = vrsqrt.f32 %v27_v6 }
  0x14   :  { %v305_v11 = vpop.eup %304 }
  0x15   :  { %v29_v12 = vmul.f32 %v305_v11, %v26_v9 }
  0x17   :  { %v31_v19 = vmul.f32 %v29_v12, %v21_v2  ;;  %v363_v20 = vrot.slane %v29_v12, %v52_v10 }
  0x19   :  { %v32_v27 = vsub.f32 %v30_v13, %v31_v19  ;;  %v55_v28 = vmul.f32 %v363_v20, %v33_v14  ;;  %v56_v29 = vmul.f32 %v363_v20, %v34_v15  ;;  %v57_v30 = vmul.f32 %v363_v20, %v35_v16  ;;  %v47_v16 = vld [vmem:[%s459_s0 + $0x70] sm:$0xff] }
  0x1a   :  { %v58_v34 = vmul.f32 %v363_v20, %v36_v17  ;;  %v59_v35 = vmul.f32 %v363_v20, %v37_v18  ;;  %v60_v36 = vmul.f32 %v363_v20, %v38_v21  ;;  %v61_v37 = vmul.f32 %v363_v20, %v39_v22 }
  0x1b   :  { %v399_v38 = vrot.slane %v32_v27, %v52_v10  ;;  %v62_v39 = vmul.f32 %v363_v20, %v40_v23  ;;  %v63_v40 = vmul.f32 %v363_v20, %v41_v24  ;;  %v64_v41 = vmul.f32 %v363_v20, %v42_v25  ;;  %v48_v24 = vld [vmem:[%s459_s0 + $0x78] sm:$0xff] }
  0x1c   :  { %v65_v42 = vmul.f32 %v363_v20, %v43_v26  ;;  %v66_v43 = vmul.f32 %v363_v20, %v44_v31  ;;  %v67_v44 = vmul.f32 %v363_v20, %v45_v32  ;;  %v68_v45 = vmul.f32 %v363_v20, %v46_v33 }
  0x1d   :  { %v77_v46 = vadd.f32 %v399_v38, %v55_v28  ;;  %v78_v47 = vadd.f32 %v399_v38, %v56_v29  ;;  %v79_v48 = vadd.f32 %v399_v38, %v57_v30  ;;  %v80_v49 = vadd.f32 %v399_v38, %v58_v34 }
  0x1e   :  { %v81_v50 = vadd.f32 %v399_v38, %v59_v35  ;;  %v82_v51 = vadd.f32 %v399_v38, %v60_v36  ;;  %v83_v52 = vadd.f32 %v399_v38, %v61_v37  ;;  %v84_v53 = vadd.f32 %v399_v38, %v62_v39 }
  0x1f   :  { %vm93_vm0 = vcmp.gt.f32.partialorder %v77_v46, 0.0  ;;  %vm94_vm1 = vcmp.gt.f32.partialorder %v78_v47, 0.0  ;;  %v109_v54 = vmul.f32 0.2, %v77_v46  ;;  %v110_v55 = vmul.f32 0.2, %v78_v47 }
  0x20   :  { %vm95_vm2 = vcmp.gt.f32.partialorder %v79_v48, 0.0  ;;  %vm96_vm3 = vcmp.gt.f32.partialorder %v80_v49, 0.0  ;;  %v111_v56 = vmul.f32 0.2, %v79_v48  ;;  %v112_v57 = vmul.f32 0.2, %v80_v49 }
  0x21   :  { %v125_v58 = vsel %vm93_vm0, %v77_v46, %v109_v54  ;;  %v126_v59 = vsel %vm94_vm1, %v78_v47, %v110_v55  ;;  %vm97_vm4 = vcmp.gt.f32.partialorder %v81_v50, 0.0  ;;  %vm98_vm5 = vcmp.gt.f32.partialorder %v82_v51, 0.0 }
  0x22   :  { %v260_v60 = vpack.c.bf16 %v126_v59, %v125_v58  ;;  %v127_v61 = vsel %vm95_vm2, %v79_v48, %v111_v56  ;;  %v128_v62 = vsel %vm96_vm3, %v80_v49, %v112_v57  ;;  %v113_v63 = vmul.f32 0.2, %v81_v50 }
  0x23   :  { %v265_v0 = vpack.c.bf16 %v128_v62, %v127_v61  ;;  %v114_v1 = vmul.f32 0.2, %v82_v51  ;;  %vm99_vm6 = vcmp.gt.f32.partialorder %v83_v52, 0.0  ;;  %vm100_vm7 = vcmp.gt.f32.partialorder %v84_v53, 0.0 }
  0x24   :  { %261 = vst [vmem:[%s461_s5] sm:$0xff] %v260_v60   ;;  %v129_v2 = vsel %vm97_vm4, %v81_v50, %v113_v63  ;;  %v115_v3 = vmul.f32 0.2, %v83_v52  ;;  %v116_v4 = vmul.f32 0.2, %v84_v53  ;;  %v85_v5 = vadd.f32 %v399_v38, %v63_v40 }
  0x25   :  { %297 = vst [vmem:[%s461_s5 + $0x8] sm:$0xff] %v265_v0   ;;  %v130_v6 = vsel %vm98_vm5, %v82_v51, %v114_v1  ;;  %v86_v7 = vadd.f32 %v399_v38, %v64_v41  ;;  %v87_v8 = vadd.f32 %v399_v38, %v65_v42  ;;  %v88_v9 = vadd.f32 %v399_v38, %v66_v43 }
  0x26   :  { %v270_v10 = vpack.c.bf16 %v130_v6, %v129_v2  ;;  %v131_v11 = vsel %vm99_vm6, %v83_v52, %v115_v3  ;;  %v132_v12 = vsel %vm100_vm7, %v84_v53, %v116_v4  ;;  %vm101_vm8 = vcmp.gt.f32.partialorder %v85_v5, 0.0 }
  0x27   :  { %v275_v13 = vpack.c.bf16 %v132_v12, %v131_v11  ;;  %vm102_vm9 = vcmp.gt.f32.partialorder %v86_v7, 0.0  ;;  %v117_v14 = vmul.f32 0.2, %v85_v5  ;;  %v118_v15 = vmul.f32 0.2, %v86_v7 }
  0x28   :  { %298 = vst [vmem:[%s461_s5 + $0x10] sm:$0xff] %v270_v10   ;;  %vm103_vm10 = vcmp.gt.f32.partialorder %v87_v8, 0.0  ;;  %vm104_vm11 = vcmp.gt.f32.partialorder %v88_v9, 0.0  ;;  %v119_v17 = vmul.f32 0.2, %v87_v8  ;;  %v89_v22 = vadd.f32 %v399_v38, %v67_v44 }
  0x29   :  { %v120_v18 = vmul.f32 0.2, %v88_v9  ;;  %299 = vst [vmem:[%s461_s5 + $0x18] sm:$0xff] %v275_v13   ;;  %v133_v19 = vsel %vm101_vm8, %v85_v5, %v117_v14  ;;  %v134_v21 = vsel %vm102_vm9, %v86_v7, %v118_v15  ;;  %v90_v23 = vadd.f32 %v399_v38, %v68_v45 }
  0x2a   :  { %v280_v25 = vpack.c.bf16 %v134_v21, %v133_v19  ;;  %v135_v26 = vsel %vm103_vm10, %v87_v8, %v119_v17  ;;  %v69_v28 = vmul.f32 %v363_v20, %v47_v16  ;;  %vm105_vm12 = vcmp.gt.f32.partialorder %v89_v22, 0.0 }
  0x2b   :  { %v136_v27 = vsel %vm104_vm11, %v88_v9, %v120_v18  ;;  %vm106_vm13 = vcmp.gt.f32.partialorder %v90_v23, 0.0  ;;  %v121_v30 = vmul.f32 0.2, %v89_v22  ;;  %v122_v31 = vmul.f32 0.2, %v90_v23 }
  0x2c   :  { %v285_v29 = vpack.c.bf16 %v136_v27, %v135_v26  ;;  %300 = vst [vmem:[%s461_s5 + $0x20] sm:$0xff] %v280_v25   ;;  %v70_v32 = vmul.f32 %v363_v20, %v48_v24  ;;  %v91_v33 = vadd.f32 %v399_v38, %v69_v28 }
  0x2d   :  { %v137_v34 = vsel %vm105_vm12, %v89_v22, %v121_v30  ;;  %v138_v35 = vsel %vm106_vm13, %v90_v23, %v122_v31 }
  0x2e   :  { %301 = vst [vmem:[%s461_s5 + $0x28] sm:$0xff] %v285_v29   ;;  %v92_v36 = vadd.f32 %v399_v38, %v70_v32  ;;  %vm107_vm14 = vcmp.gt.f32.partialorder %v91_v33, 0.0  ;;  %v123_v37 = vmul.f32 0.2, %v91_v33  ;;  %v290_v39 = vpack.c.bf16 %v138_v35, %v137_v34 }
  0x30   :  { %vm108_vm15 = vcmp.gt.f32.partialorder %v92_v36, 0.0  ;;  %v124_v40 = vmul.f32 0.2, %v92_v36  ;;  %v139_v41 = vsel %vm107_vm14, %v91_v33, %v123_v37  ;;  %302 = vst [vmem:[%s461_s5 + $0x30] sm:$0xff] %v290_v39  }
  0x32   :  { %v140_v20 = vsel %vm108_vm15, %v92_v36, %v124_v40 }
  0x33   :  { %v295_v42 = vpack.c.bf16 %v140_v20, %v139_v41 }
  0x35   :  { %303 = vst [vmem:[%s461_s5 + $0x38] sm:$0xff] %v295_v42  }

// kernel: discriminator_forward.14
= control target key start
LH: loop header
LB: loop body
LE: loop exit
PB: predicated region body
PF: predicated region fallthrough
CT: control target
= control target key end

     0   :  { %v38_v7 = vlaneseq  ;;  %s174_s1 = inlined_call_operand.vmem [shape: f32[1,128], index: 1, kind: input, shape index: {}]   ;;  %s175_s2 = inlined_call_operand.vmem [shape: f32[1,128], index: 2, kind: input, shape index: {}]   ;;  %s176_s3 = inlined_call_operand.vmem [shape: f32[1,128], index: 3, kind: input, shape index: {}]   ;;  %s177_s4 = inlined_call_operand.vmem [shape: f32[1,128], index: 4, kind: input, shape index: {}]   ;;  %s178_s0 = inlined_call_operand.vmem [shape: f32[32,128], index: 0, kind: input, shape index: {}]   ;;  %s179_s5 = inlined_call_operand.vmem [shape: bf16[32,128], index: 5, kind: output, shape index: {}]  }
   0x1   :  { %v20_v0 = vld [vmem:[%s174_s1] sm:$0x1]  ;;  %v34_v15 = vld [vmem:[%s178_s0 + $0x8] sm:$0xff]  ;;  %v35_v16 = vld [vmem:[%s178_s0 + $0x10] sm:$0xff] }
   0x2   :  { %v22_v1 = vld [vmem:[%s175_s2] sm:$0x1]  ;;  %v21_v2 = vmul.f32 0.03125, %v20_v0  ;;  %v39_v8 = vshrl.u32 %v38_v7, 7  ;;  %v36_v19 = vld [vmem:[%s178_s0 + $0x18] sm:$0xff] }
   0x3   :  { %v23_v3 = vmul.f32 0.03125, %v22_v1  ;;  %v26_v9 = vld [vmem:[%s176_s3] sm:$0x1] }
   0x4   :  { %v24_v4 = vmul.f32 %v21_v2, %v21_v2  ;;  %v40_v10 = vsub.s32 0, %v39_v8  ;;  %v30_v13 = vld [vmem:[%s177_s4] sm:$0x1] }
   0x5   :  { %v33_v14 = vld [vmem:[%s178_s0] sm:$0xff] }
   0x6   :  { %v25_v5 = vsub.f32 %v23_v3, %v24_v4 }
   0x8   :  { %v27_v6 = vadd.f32 1e-05, %v25_v5 }
   0xa   :  { %112 = vrsqrt.f32 %v27_v6 }
  0x14   :  { %v113_v11 = vpop.eup %112 }
  0x15   :  { %v29_v12 = vmul.f32 %v113_v11, %v26_v9 }
  0x17   :  { %v31_v17 = vmul.f32 %v29_v12, %v21_v2  ;;  %v41_v18 = vrot.slane %v29_v12, %v40_v10 }
  0x19   :  { %v32_v20 = vsub.f32 %v30_v13, %v31_v17  ;;  %v43_v21 = vmul.f32 %v41_v18, %v33_v14  ;;  %v44_v22 = vmul.f32 %v41_v18, %v34_v15  ;;  %v45_v23 = vmul.f32 %v41_v18, %v35_v16 }
  0x1a   :  { %v46_v24 = vmul.f32 %v41_v18, %v36_v19 }
  0x1b   :  { %v51_v25 = vrot.slane %v32_v20, %v40_v10 }
  0x1d   :  { %v53_v26 = vadd.f32 %v51_v25, %v43_v21  ;;  %v54_v27 = vadd.f32 %v51_v25, %v44_v22  ;;  %v55_v28 = vadd.f32 %v51_v25, %v45_v23  ;;  %v56_v29 = vadd.f32 %v51_v25, %v46_v24 }
  0x1f   :  { %vm57_vm0 = vcmp.gt.f32.partialorder %v53_v26, 0.0  ;;  %vm58_vm1 = vcmp.gt.f32.partialorder %v54_v27, 0.0  ;;  %v61_v30 = vmul.f32 0.2, %v53_v26  ;;  %v62_v31 = vmul.f32 0.2, %v54_v27 }
  0x20   :  { %vm59_vm2 = vcmp.gt.f32.partialorder %v55_v28, 0.0  ;;  %vm60_vm3 = vcmp.gt.f32.partialorder %v56_v29, 0.0  ;;  %v63_v32 = vmul.f32 0.2, %v55_v28  ;;  %v64_v33 = vmul.f32 0.2, %v56_v29 }
  0x21   :  { %v65_v34 = vsel %vm57_vm0, %v53_v26, %v61_v30  ;;  %v66_v35 = vsel %vm58_vm1, %v54_v27, %v62_v31 }
  0x22   :  { %v104_v36 = vpack.c.bf16 %v66_v35, %v65_v34  ;;  %v67_v37 = vsel %vm59_vm2, %v55_v28, %v63_v32  ;;  %v68_v38 = vsel %vm60_vm3, %v56_v29, %v64_v33 }
  0x23   :  { %v109_v39 = vpack.c.bf16 %v68_v38, %v67_v37 }
  0x24   :  { %105 = vst [vmem:[%s179_s5] sm:$0xff] %v104_v36  }
  0x25   :  { %111 = vst [vmem:[%s179_s5 + $0x8] sm:$0xff] %v109_v39  }

// kernel: discriminator_forward.13
= control target key start
LH: loop header
LB: loop body
LE: loop exit
PB: predicated region body
PF: predicated region fallthrough
CT: control target
= control target key end

     0   :  { %v608_v40 = vmov 0.0   ;;  %s784_s1 = inlined_call_operand.vmem [shape: bf16[512,128], index: 1, kind: input, shape index: {}]   ;;  %s785_s0 = inlined_call_operand.vmem [shape: bf16[32,512], index: 0, kind: input, shape index: {}]   ;;  %s786_s3 = inlined_call_operand.vmem [shape: f32[1,128], index: 3, kind: output, shape index: {1}]   ;;  %s787_s4 = inlined_call_operand.vmem [shape: f32[1,128], index: 4, kind: output, shape index: {2}]   ;;  %s788_s2 = inlined_call_operand.vmem [shape: f32[32,128], index: 2, kind: output, shape index: {0}]  }
   0x1   :  { %v564_v0 = vld [vmem:[%s784_s1 + $0x40] sm:$0xff]   ;;  %v568_v4 = vld [vmem:[%s784_s1 + $0x48] sm:$0xff]   ;;  %v572_v8 = vld [vmem:[%s784_s1 + $0x50] sm:$0xff]   ;;  %425 = vst [vmem:[%s786_s3] sm:$0x1] %v608_v40 }
   0x2   :  { %v565_v1 = vld [vmem:[%s784_s1 + $0xc0] sm:$0xff]   ;;  %507 = vmatprep.subr.bf16.mxu0 %v564_v0  ;;  %v569_v5 = vld [vmem:[%s784_s1 + $0xc8] sm:$0xff]   ;;  %v573_v9 = vld [vmem:[%s784_s1 + $0xd0] sm:$0xff]   ;;  %426 = vst [vmem:[%s787_s4] sm:$0x1] %v608_v40 }
   0x3   :  { %v566_v2 = vld [vmem:[%s784_s1] sm:$0xff]   ;;  %535 = vmatprep.subr.bf16.mxu1 %v565_v1  ;;  %v570_v6 = vld [vmem:[%s784_s1 + $0x8] sm:$0xff]   ;;  %v574_v10 = vld [vmem:[%s784_s1 + $0x10] sm:$0xff]  }
   0x4   :  { %v567_v3 = vld [vmem:[%s784_s1 + $0x80] sm:$0xff]   ;;  %508 = vmatpush3.bf16.msra.mxu0 %v566_v2  ;;  %v571_v7 = vld [vmem:[%s784_s1 + $0x88] sm:$0xff]   ;;  %v575_v11 = vld [vmem:[%s784_s1 + $0x90] sm:$0xff]  }
   0x5   :  { %536 = vmatpush3.bf16.msra.mxu1 %v567_v3  ;;  %509 = vmatprep.subr.bf16.mxu0 %v568_v4  ;;  %v576_v12 = vld [vmem:[%s784_s1 + $0x58] sm:$0xff]   ;;  %v580_v16 = vld [vmem:[%s784_s1 + $0x60] sm:$0xff]   ;;  %v584_v20 = vld [vmem:[%s784_s1 + $0x68] sm:$0xff]  }
   0x6   :  { %537 = vmatprep.subr.bf16.mxu1 %v569_v5  ;;  %v577_v13 = vld [vmem:[%s784_s1 + $0xd8] sm:$0xff]   ;;  %v581_v17 = vld [vmem:[%s784_s1 + $0xe0] sm:$0xff]   ;;  %v585_v21 = vld [vmem:[%s784_s1 + $0xe8] sm:$0xff]  }
   0x7   :  { %v578_v14 = vld [vmem:[%s784_s1 + $0x18] sm:$0xff]   ;;  %v582_v18 = vld [vmem:[%s784_s1 + $0x20] sm:$0xff]   ;;  %v586_v22 = vld [vmem:[%s784_s1 + $0x28] sm:$0xff]  }
   0x8   :  { %510 = vmatpush3.bf16.msra.mxu0 %v570_v6  ;;  %v579_v15 = vld [vmem:[%s784_s1 + $0x98] sm:$0xff]   ;;  %v583_v19 = vld [vmem:[%s784_s1 + $0xa0] sm:$0xff]   ;;  %v587_v23 = vld [vmem:[%s784_s1 + $0xa8] sm:$0xff]  }
   0x9   :  { %538 = vmatpush3.bf16.msra.mxu1 %v571_v7  ;;  %511 = vmatprep.subr.bf16.mxu0 %v572_v8  ;;  %v588_v24 = vld [vmem:[%s784_s1 + $0x70] sm:$0xff]   ;;  %v592_v28 = vld [vmem:[%s784_s1 + $0x78] sm:$0xff]  }
   0xa   :  { %539 = vmatprep.subr.bf16.mxu1 %v573_v9  ;;  %v589_v25 = vld [vmem:[%s784_s1 + $0xf0] sm:$0xff]   ;;  %v593_v29 = vld [vmem:[%s784_s1 + $0xf8] sm:$0xff]  }
   0xb   :  { %v590_v26 = vld [vmem:[%s784_s1 + $0x30] sm:$0xff]   ;;  %v594_v30 = vld [vmem:[%s784_s1 + $0x38] sm:$0xff]  }
   0xc   :  { %512 = vmatpush3.bf16.msra.mxu0 %v574_v10  ;;  %v591_v27 = vld [vmem:[%s784_s1 + $0xb0] sm:$0xff]   ;;  %v595_v31 = vld [vmem:[%s784_s1 + $0xb8] sm:$0xff]  }
   0xd   :  { %540 = vmatpush3.bf16.msra.mxu1 %v575_v11  ;;  %513 = vmatprep.subr.bf16.mxu0 %v576_v12  ;;  %v596_v32 = vld [vmem:[%s785_s0] ss:$16 sps:$4 sm:$0xff]   ;;  %v598_v33 = vld [vmem:[%s785_s0 + $0x4] ss:$16 sps:$4 sm:$0xff]   ;;  %v599_v34 = vld [vmem:[%s785_s0 + $0x8] ss:$16 sps:$4 sm:$0xff]  }
   0xe   :  { %541 = vmatprep.subr.bf16.mxu1 %v577_v13  ;;  %v601_v35 = vld [vmem:[%s785_s0 + $0xc] ss:$16 sps:$4 sm:$0xff]   ;;  %351 = vmatprep.mubr.bf16.mxu0 %v598_v33  ;;  %v602_v36 = vld [vmem:[%s785_s0 + $0x24] ss:$16 sps:$4 sm:$0xff]   ;;  %v606_v38 = vld [vmem:[%s785_s0 + $0x20] ss:$16 sps:$4 sm:$0xff]  }
   0xf   :  { %400 = vmatprep.mubr.bf16.mxu1 %v601_v35  ;;  %v604_v37 = vld [vmem:[%s785_s0 + $0x2c] ss:$16 sps:$4 sm:$0xff]   ;;  %v607_v39 = vld [vmem:[%s785_s0 + $0x28] ss:$16 sps:$4 sm:$0xff]  }
  0x10   :  { %514 = vmatpush3.bf16.msra.mxu0 %v578_v14 }
  0x11   :  { %542 = vmatpush3.bf16.msra.mxu1 %v579_v15  ;;  %515 = vmatprep.subr.bf16.mxu0 %v580_v16 }
  0x12   :  { %543 = vmatprep.subr.bf16.mxu1 %v581_v17 }
  0x14   :  { %516 = vmatpush3.bf16.msra.mxu0 %v582_v18 }
  0x15   :  { %544 = vmatpush3.bf16.msra.mxu1 %v583_v19  ;;  %517 = vmatprep.subr.bf16.mxu0 %v584_v20 }
  0x16   :  { %545 = vmatprep.subr.bf16.mxu1 %v585_v21 }
  0x18   :  { %518 = vmatpush3.bf16.msra.mxu0 %v586_v22 }
  0x19   :  { %546 = vmatpush3.bf16.msra.mxu1 %v587_v23  ;;  %519 = vmatprep.subr.bf16.mxu0 %v588_v24  ;;  %v427_v24 = vld [vmem:[%s786_s3] sm:$0x1] }
  0x1a   :  { %547 = vmatprep.subr.bf16.mxu1 %v589_v25 }
  0x1c   :  { %520 = vmatpush3.bf16.msra.mxu0 %v590_v26 }
  0x1d   :  { %548 = vmatpush3.bf16.msra.mxu1 %v591_v27  ;;  %521 = vmatprep.subr.bf16.mxu0 %v592_v28  ;;  %v439_v27 = vld [vmem:[%s787_s4] sm:$0x1] }
  0x1e   :  { %549 = vmatprep.subr.bf16.mxu1 %v593_v29 }
  0x20   :  { %522 = vmatpush3.bf16.msra.mxu0 %v594_v30 }
  0x21   :  { %550 = vmatpush3.bf16.msra.mxu1 %v595_v31 }
  0x23   :  { %352 = vmatmul.mubr.bf16.vlgmr.msra.gmra.mrb[0].mxu0 %v596_v32 }
  0x24   :  { %401 = vmatmul.mubr.bf16.vlgmr.msra.gmra.mrb[0].mxu1 %v599_v34  ;;  %359 = vmatprep.mubr.bf16.mxu0 %v602_v36 }
  0x25   :  { %408 = vmatprep.mubr.bf16.mxu1 %v604_v37 }
  0x2b   :  { %360 = vmatmul.mubr.bf16.gmra.mrb[4].mxu0 %v606_v38 }
  0x2c   :  { %409 = vmatmul.mubr.bf16.gmra.mrb[4].mxu1 %v607_v39 }
  0xf6   :  { %v523_v41 = vpop.f32.mrb[0].mxu0 }
  0xf7   :  { %v551_v42 = vpop.f32.mrb[0].mxu1  ;;  %v524_v43 = vpop.f32.mrb[1].mxu0 }
  0xf8   :  { %v525_v44 = vadd.f32 %v524_v43, %v523_v41  ;;  %v552_v45 = vpop.f32.mrb[1].mxu1  ;;  %v526_v46 = vpop.f32.mrb[2].mxu0 }
  0xf9   :  { %v553_v47 = vadd.f32 %v552_v45, %v551_v42  ;;  %v554_v48 = vpop.f32.mrb[2].mxu1  ;;  %v527_v49 = vpop.f32.mrb[3].mxu0 }
  0xfa   :  { %v528_v50 = vadd.f32 %v527_v49, %v526_v46  ;;  %v555_v51 = vpop.f32.mrb[3].mxu1 }
  0xfb   :  { %v403_v52 = vadd.f32 %v553_v47, %v525_v44  ;;  %v556_v53 = vadd.f32 %v555_v51, %v554_v48 }
  0xfd   :  { %417 = vst [vmem:[%s788_s2] sm:$0xff] %v403_v52  ;;  %v406_v54 = vadd.f32 %v556_v53, %v528_v50  ;;  %v440_v56 = vmul.f32 %v403_v52, %v403_v52 }
  0xfe   :  { %v529_v55 = vpop.f32.mrb[4].mxu0 }
  0xff   :  { %418 = vst [vmem:[%s788_s2 + $0x8] sm:$0xff] %v406_v54  ;;  %v428_v57 = vadd.f32 %v406_v54, %v403_v52  ;;  %v441_v58 = vmul.f32 %v406_v54, %v406_v54  ;;  %v557_v59 = vpop.f32.mrb[4].mxu1  ;;  %v530_v60 = vpop.f32.mrb[5].mxu0 }
 0x100   :  { %v531_v61 = vadd.f32 %v530_v60, %v529_v55  ;;  %v558_v62 = vpop.f32.mrb[5].mxu1  ;;  %v532_v63 = vpop.f32.mrb[6].mxu0 }
 0x101   :  { %v444_v0 = vadd.f32 %v441_v58, %v440_v56  ;;  %v559_v1 = vadd.f32 %v558_v62, %v557_v59  ;;  %v560_v2 = vpop.f32.mrb[6].mxu1  ;;  %v533_v3 = vpop.f32.mrb[7].mxu0 }
 0x102   :  { %v534_v4 = vadd.f32 %v533_v3, %v532_v63  ;;  %v561_v5 = vpop.f32.mrb[7].mxu1 }
 0x103   :  { %v411_v6 = vadd.f32 %v559_v1, %v531_v61  ;;  %v562_v7 = vadd.f32 %v561_v5, %v560_v2 }
 0x105   :  { %419 = vst [vmem:[%s788_s2 + $0x10] sm:$0xff] %v411_v6  ;;  %v429_v8 = vadd.f32 %v428_v57, %v411_v6  ;;  %v442_v9 = vmul.f32 %v411_v6, %v411_v6  ;;  %v414_v10 = vadd.f32 %v562_v7, %v534_v4 }
 0x107   :  { %v445_v11 = vadd.f32 %v444_v0, %v442_v9  ;;  %420 = vst [vmem:[%s788_s2 + $0x18] sm:$0xff] %v414_v10  ;;  %v430_v12 = vadd.f32 %v429_v8, %v414_v10  ;;  %v443_v13 = vmul.f32 %v414_v10, %v414_v10 }
 0x109   :  { %v431_v14 = vrot.slane %v430_v12, 4  ;;  %v446_v15 = vadd.f32 %v445_v11, %v443_v13 }
 0x10b   :  { %v432_v16 = vadd.f32 %v431_v14, %v430_v12  ;;  %v447_v17 = vrot.slane %v446_v15, 4 }
 0x10d   :  { %v433_v18 = vrot.slane %v432_v16, 2  ;;  %v448_v19 = vadd.f32 %v447_v17, %v446_v15 }
 0x10f   :  { %v434_v20 = vadd.f32 %v433_v18, %v432_v16  ;;  %v449_v21 = vrot.slane %v448_v19, 2 }
 0x111   :  { %v435_v22 = vrot.slane %v434_v20, 1  ;;  %v450_v23 = vadd.f32 %v449_v21, %v448_v19 }
 0x113   :  { %v436_v25 = vadd.f32 %v435_v22, %v434_v20  ;;  %v451_v26 = vrot.slane %v450_v23, 1 }
 0x115   :  { %v437_v28 = vadd.f32 %v436_v25, %v427_v24  ;;  %v452_v29 = vadd.f32 %v451_v26, %v450_v23 }
 0x117   :  { %438 = vst [vmem:[%s786_s3] sm:$0x1] %v437_v28  ;;  %v453_v30 = vadd.f32 %v452_v29, %v439_v27 }
 0x119   :  { %454 = vst [vmem:[%s787_s4] sm:$0x1] %v453_v30 }

// kernel: discriminator_forward.15
= control target key start
LH: loop header
LB: loop body
LE: loop exit
PB: predicated region body
PF: predicated region fallthrough
CT: control target
= control target key end

     0   :  { %s1194_s1 = inlined_call_operand.vmem [shape: bf16[1024,128], index: 1, kind: input, shape index: {}]   ;;  %s1195_s0 = inlined_call_operand.vmem [shape: bf16[8,1024], index: 0, kind: input, shape index: {}]   ;;  %s1196_s2 = inlined_call_operand.vmem [shape: f32[1,128], index: 2, kind: input, shape index: {}]   ;;  %s1197_s3 = inlined_call_operand.vmem [shape: f32[8,128], index: 3, kind: output, shape index: {}]  }
   0x1   :  { %v892_v0 = vld [vmem:[%s1194_s1 + $0x40] sm:$0xff]   ;;  %v896_v4 = vld [vmem:[%s1194_s1 + $0x48] sm:$0xff]   ;;  %v900_v8 = vld [vmem:[%s1194_s1 + $0x50] sm:$0xff]  }
   0x2   :  { %v893_v1 = vld [vmem:[%s1194_s1 + $0xc0] sm:$0xff]   ;;  %804 = vmatprep.subr.bf16.mxu0 %v892_v0  ;;  %v897_v5 = vld [vmem:[%s1194_s1 + $0xc8] sm:$0xff]   ;;  %v901_v9 = vld [vmem:[%s1194_s1 + $0xd0] sm:$0xff]  }
   0x3   :  { %v894_v2 = vld [vmem:[%s1194_s1] sm:$0xff]   ;;  %826 = vmatprep.subr.bf16.mxu1 %v893_v1  ;;  %v898_v6 = vld [vmem:[%s1194_s1 + $0x8] sm:$0xff]   ;;  %v902_v10 = vld [vmem:[%s1194_s1 + $0x10] sm:$0xff]  }
   0x4   :  { %v895_v3 = vld [vmem:[%s1194_s1 + $0x80] sm:$0xff]   ;;  %805 = vmatpush3.bf16.msra.mxu0 %v894_v2  ;;  %v899_v7 = vld [vmem:[%s1194_s1 + $0x88] sm:$0xff]   ;;  %v903_v11 = vld [vmem:[%s1194_s1 + $0x90] sm:$0xff]  }
   0x5   :  { %827 = vmatpush3.bf16.msra.mxu1 %v895_v3  ;;  %806 = vmatprep.subr.bf16.mxu0 %v896_v4  ;;  %v904_v12 = vld [vmem:[%s1194_s1 + $0x58] sm:$0xff]   ;;  %v908_v16 = vld [vmem:[%s1194_s1 + $0x60] sm:$0xff]   ;;  %v912_v20 = vld [vmem:[%s1194_s1 + $0x68] sm:$0xff]  }
   0x6   :  { %828 = vmatprep.subr.bf16.mxu1 %v897_v5  ;;  %v905_v13 = vld [vmem:[%s1194_s1 + $0xd8] sm:$0xff]   ;;  %v909_v17 = vld [vmem:[%s1194_s1 + $0xe0] sm:$0xff]   ;;  %v913_v21 = vld [vmem:[%s1194_s1 + $0xe8] sm:$0xff]  }
   0x7   :  { %v906_v14 = vld [vmem:[%s1194_s1 + $0x18] sm:$0xff]   ;;  %v910_v18 = vld [vmem:[%s1194_s1 + $0x20] sm:$0xff]   ;;  %v914_v22 = vld [vmem:[%s1194_s1 + $0x28] sm:$0xff]  }
   0x8   :  { %807 = vmatpush3.bf16.msra.mxu0 %v898_v6  ;;  %v907_v15 = vld [vmem:[%s1194_s1 + $0x98] sm:$0xff]   ;;  %v911_v19 = vld [vmem:[%s1194_s1 + $0xa0] sm:$0xff]   ;;  %v915_v23 = vld [vmem:[%s1194_s1 + $0xa8] sm:$0xff]  }
   0x9   :  { %829 = vmatpush3.bf16.msra.mxu1 %v899_v7  ;;  %808 = vmatprep.subr.bf16.mxu0 %v900_v8  ;;  %v916_v24 = vld [vmem:[%s1194_s1 + $0x70] sm:$0xff]   ;;  %v920_v28 = vld [vmem:[%s1194_s1 + $0x78] sm:$0xff]   ;;  %v15_v32 = vld [vmem:[%s1195_s0] sm:$0xff] }
   0xa   :  { %830 = vmatprep.subr.bf16.mxu1 %v901_v9  ;;  %v917_v25 = vld [vmem:[%s1194_s1 + $0xf0] sm:$0xff]   ;;  %v921_v29 = vld [vmem:[%s1194_s1 + $0xf8] sm:$0xff]   ;;  %v16_v33 = vld [vmem:[%s1195_s0 + $0x8] sm:$0xff]  ;;  %v732_v34 = vcombine.low %v15_v32, %v15_v32  ;;  %v733_v35 = vcombine.high %v15_v32, %v15_v32 }
   0xb   :  { %v918_v26 = vld [vmem:[%s1194_s1 + $0x30] sm:$0xff]   ;;  %v922_v30 = vld [vmem:[%s1194_s1 + $0x38] sm:$0xff]   ;;  %v734_v36 = vcombine.low %v16_v33, %v16_v33  ;;  %v735_v37 = vcombine.high %v16_v33, %v16_v33  ;;  %v928_v38 = vld [vmem:[%s1194_s1 + $0x140] sm:$0xff]  }
   0xc   :  { %809 = vmatpush3.bf16.msra.mxu0 %v902_v10  ;;  %v919_v27 = vld [vmem:[%s1194_s1 + $0xb0] sm:$0xff]   ;;  %v923_v31 = vld [vmem:[%s1194_s1 + $0xb8] sm:$0xff]   ;;  %v929_v39 = vld [vmem:[%s1194_s1 + $0x1c0] sm:$0xff]   ;;  %598 = vmatprep.mubr.bf16.mxu0 %v733_v35 }
   0xd   :  { %831 = vmatpush3.bf16.msra.mxu1 %v903_v11  ;;  %810 = vmatprep.subr.bf16.mxu0 %v904_v12  ;;  %v930_v40 = vld [vmem:[%s1194_s1 + $0x100] sm:$0xff]   ;;  %v932_v42 = vld [vmem:[%s1194_s1 + $0x148] sm:$0xff]   ;;  %v936_v46 = vld [vmem:[%s1194_s1 + $0x150] sm:$0xff]  }
   0xe   :  { %832 = vmatprep.subr.bf16.mxu1 %v905_v13  ;;  %638 = vmatprep.mubr.bf16.mxu1 %v735_v37  ;;  %v931_v41 = vld [vmem:[%s1194_s1 + $0x180] sm:$0xff]   ;;  %v933_v43 = vld [vmem:[%s1194_s1 + $0x1c8] sm:$0xff]   ;;  %v937_v47 = vld [vmem:[%s1194_s1 + $0x1d0] sm:$0xff]  }
   0xf   :  { %v934_v44 = vld [vmem:[%s1194_s1 + $0x108] sm:$0xff]   ;;  %v938_v48 = vld [vmem:[%s1194_s1 + $0x110] sm:$0xff]   ;;  %v940_v50 = vld [vmem:[%s1194_s1 + $0x158] sm:$0xff]  }
  0x10   :  { %811 = vmatpush3.bf16.msra.mxu0 %v906_v14  ;;  %v935_v45 = vld [vmem:[%s1194_s1 + $0x188] sm:$0xff]   ;;  %v939_v49 = vld [vmem:[%s1194_s1 + $0x190] sm:$0xff]   ;;  %v941_v51 = vld [vmem:[%s1194_s1 + $0x1d8] sm:$0xff]  }
  0x11   :  { %833 = vmatpush3.bf16.msra.mxu1 %v907_v15  ;;  %812 = vmatprep.subr.bf16.mxu0 %v908_v16  ;;  %v942_v52 = vld [vmem:[%s1194_s1 + $0x118] sm:$0xff]   ;;  %v944_v54 = vld [vmem:[%s1194_s1 + $0x160] sm:$0xff]   ;;  %v948_v58 = vld [vmem:[%s1194_s1 + $0x168] sm:$0xff]  }
  0x12   :  { %834 = vmatprep.subr.bf16.mxu1 %v909_v17  ;;  %v943_v53 = vld [vmem:[%s1194_s1 + $0x198] sm:$0xff]   ;;  %v945_v55 = vld [vmem:[%s1194_s1 + $0x1e0] sm:$0xff]   ;;  %v949_v59 = vld [vmem:[%s1194_s1 + $0x1e8] sm:$0xff]  }
  0x13   :  { %v946_v56 = vld [vmem:[%s1194_s1 + $0x120] sm:$0xff]   ;;  %v950_v60 = vld [vmem:[%s1194_s1 + $0x128] sm:$0xff]   ;;  %v952_v62 = vld [vmem:[%s1194_s1 + $0x170] sm:$0xff]  }
  0x14   :  { %813 = vmatpush3.bf16.msra.mxu0 %v910_v18  ;;  %v947_v57 = vld [vmem:[%s1194_s1 + $0x1a0] sm:$0xff]   ;;  %v951_v61 = vld [vmem:[%s1194_s1 + $0x1a8] sm:$0xff]   ;;  %v953_v63 = vld [vmem:[%s1194_s1 + $0x1f0] sm:$0xff]  }
  0x15   :  { %835 = vmatpush3.bf16.msra.mxu1 %v911_v19  ;;  %814 = vmatprep.subr.bf16.mxu0 %v912_v20  ;;  %v954_v0 = vld [vmem:[%s1194_s1 + $0x130] sm:$0xff]   ;;  %v956_v2 = vld [vmem:[%s1194_s1 + $0x178] sm:$0xff]   ;;  %v731_v14 = vld [vmem:[%s1196_s2] ss:$0 sm:$0xff] }
  0x16   :  { %836 = vmatprep.subr.bf16.mxu1 %v913_v21  ;;  %v955_v1 = vld [vmem:[%s1194_s1 + $0x1b0] sm:$0xff]   ;;  %v957_v3 = vld [vmem:[%s1194_s1 + $0x1f8] sm:$0xff]  }
  0x17   :  { %v958_v4 = vld [vmem:[%s1194_s1 + $0x138] sm:$0xff]   ;;  %v17_v6 = vld [vmem:[%s1195_s0 + $0x10] sm:$0xff] }
  0x18   :  { %815 = vmatpush3.bf16.msra.mxu0 %v914_v22  ;;  %v959_v5 = vld [vmem:[%s1194_s1 + $0x1b8] sm:$0xff]   ;;  %v736_v7 = vcombine.low %v17_v6, %v17_v6  ;;  %v737_v8 = vcombine.high %v17_v6, %v17_v6 }
  0x19   :  { %837 = vmatpush3.bf16.msra.mxu1 %v915_v23  ;;  %816 = vmatprep.subr.bf16.mxu0 %v916_v24  ;;  %v18_v9 = vld [vmem:[%s1195_s0 + $0x18] sm:$0xff] }
  0x1a   :  { %838 = vmatprep.subr.bf16.mxu1 %v917_v25  ;;  %v738_v10 = vcombine.low %v18_v9, %v18_v9  ;;  %v739_v11 = vcombine.high %v18_v9, %v18_v9 }
  0x1c   :  { %817 = vmatpush3.bf16.msra.mxu0 %v918_v26 }
  0x1d   :  { %839 = vmatpush3.bf16.msra.mxu1 %v919_v27  ;;  %818 = vmatprep.subr.bf16.mxu0 %v920_v28 }
  0x1e   :  { %840 = vmatprep.subr.bf16.mxu1 %v921_v29 }
  0x20   :  { %819 = vmatpush3.bf16.msra.mxu0 %v922_v30 }
  0x21   :  { %841 = vmatpush3.bf16.msra.mxu1 %v923_v31  ;;  %848 = vmatprep.subr.bf16.mxu0 %v928_v38 }
  0x22   :  { %870 = vmatprep.subr.bf16.mxu1 %v929_v39 }
  0x23   :  { %599 = vmatmul.mubr.bf16.vlgmr.msra.gmra.mrb[0].mxu0 %v732_v34 }
  0x24   :  { %639 = vmatmul.mubr.bf16.vlgmr.msra.gmra.mrb[0].mxu1 %v734_v36  ;;  %849 = vmatpush3.bf16.msra.mxu0 %v930_v40 }
  0x25   :  { %871 = vmatpush3.bf16.msra.mxu1 %v931_v41  ;;  %850 = vmatprep.subr.bf16.mxu0 %v932_v42 }
  0x26   :  { %872 = vmatprep.subr.bf16.mxu1 %v933_v43  ;;  %678 = vmatprep.mubr.bf16.mxu0 %v737_v8 }
  0x27   :  { %718 = vmatprep.mubr.bf16.mxu1 %v739_v11 }
  0x28   :  { %851 = vmatpush3.bf16.msra.mxu0 %v934_v44 }
  0x29   :  { %873 = vmatpush3.bf16.msra.mxu1 %v935_v45  ;;  %852 = vmatprep.subr.bf16.mxu0 %v936_v46 }
  0x2a   :  { %874 = vmatprep.subr.bf16.mxu1 %v937_v47 }
  0x2c   :  { %853 = vmatpush3.bf16.msra.mxu0 %v938_v48 }
  0x2d   :  { %875 = vmatpush3.bf16.msra.mxu1 %v939_v49  ;;  %854 = vmatprep.subr.bf16.mxu0 %v940_v50 }
  0x2e   :  { %876 = vmatprep.subr.bf16.mxu1 %v941_v51 }
  0x30   :  { %855 = vmatpush3.bf16.msra.mxu0 %v942_v52 }
  0x31   :  { %877 = vmatpush3.bf16.msra.mxu1 %v943_v53  ;;  %856 = vmatprep.subr.bf16.mxu0 %v944_v54 }
  0x32   :  { %878 = vmatprep.subr.bf16.mxu1 %v945_v55 }
  0x34   :  { %857 = vmatpush3.bf16.msra.mxu0 %v946_v56 }
  0x35   :  { %879 = vmatpush3.bf16.msra.mxu1 %v947_v57  ;;  %858 = vmatprep.subr.bf16.mxu0 %v948_v58 }
  0x36   :  { %880 = vmatprep.subr.bf16.mxu1 %v949_v59 }
  0x38   :  { %859 = vmatpush3.bf16.msra.mxu0 %v950_v60 }
  0x39   :  { %881 = vmatpush3.bf16.msra.mxu1 %v951_v61  ;;  %860 = vmatprep.subr.bf16.mxu0 %v952_v62 }
  0x3a   :  { %882 = vmatprep.subr.bf16.mxu1 %v953_v63 }
  0x3c   :  { %861 = vmatpush3.bf16.msra.mxu0 %v954_v0 }
  0x3d   :  { %883 = vmatpush3.bf16.msra.mxu1 %v955_v1  ;;  %862 = vmatprep.subr.bf16.mxu0 %v956_v2 }
  0x3e   :  { %884 = vmatprep.subr.bf16.mxu1 %v957_v3 }
  0x40   :  { %863 = vmatpush3.bf16.msra.mxu0 %v958_v4 }
  0x41   :  { %885 = vmatpush3.bf16.msra.mxu1 %v959_v5 }
  0x43   :  { %679 = vmatmul.mubr.bf16.vlgmr.msra.gmra.mrb[4].mxu0 %v736_v7 }
  0x44   :  { %719 = vmatmul.mubr.bf16.vlgmr.msra.gmra.mrb[4].mxu1 %v738_v10 }
  0xf6   :  { %v820_v12 = vpop.f32.mrb[0].mxu0 }
  0xf7   :  { %v842_v13 = vpop.f32.mrb[0].mxu1  ;;  %v821_v15 = vpop.f32.mrb[1].mxu0 }
  0xf8   :  { %v843_v16 = vpop.f32.mrb[1].mxu1  ;;  %v822_v17 = vadd.f32 %v821_v15, %v820_v12  ;;  %v823_v19 = vpop.f32.mrb[2].mxu0 }
  0xf9   :  { %v844_v18 = vadd.f32 %v843_v16, %v842_v13  ;;  %v845_v20 = vpop.f32.mrb[2].mxu1  ;;  %v824_v21 = vpop.f32.mrb[3].mxu0 }
  0xfa   :  { %v846_v22 = vpop.f32.mrb[3].mxu1  ;;  %v601_v23 = vadd.f32 %v822_v17, %v731_v14 }
  0xfc   :  { %v641_v24 = vadd.f32 %v844_v18, %v601_v23 }
 0x116   :  { %v864_v25 = vpop.f32.mrb[4].mxu0 }
 0x117   :  { %v886_v26 = vpop.f32.mrb[4].mxu1  ;;  %v865_v27 = vpop.f32.mrb[5].mxu0 }
 0x118   :  { %v887_v28 = vpop.f32.mrb[5].mxu1  ;;  %v866_v29 = vadd.f32 %v865_v27, %v864_v25  ;;  %v867_v31 = vpop.f32.mrb[6].mxu0 }
 0x119   :  { %v888_v30 = vadd.f32 %v887_v28, %v886_v26  ;;  %v889_v32 = vpop.f32.mrb[6].mxu1  ;;  %v868_v33 = vpop.f32.mrb[7].mxu0 }
 0x11a   :  { %v890_v34 = vpop.f32.mrb[7].mxu1  ;;  %v681_v35 = vadd.f32 %v866_v29, %v641_v24 }
 0x11c   :  { %v721_v36 = vadd.f32 %v888_v30, %v681_v35 }
 0x11e   :  { %726 = vst [vmem:[%s1197_s3] sm:$0xff] %v721_v36 }

</bundles_post_ra>
